<compile_context>
chip_gen: v7x
topology: tpu7x:2x2x1
jax: 0.10.0
libtpu: 0.0.40
codegen_flags: <defaults>
</compile_context>

<pallas_src>
import jax
import jax.numpy as jnp
from jax import lax
from jax.experimental import pallas as pl
from jax.experimental.pallas import tpu as pltpu


LANE = 128
_SMEM_SPEC = pl.BlockSpec(memory_space=pltpu.MemorySpace.SMEM)


def _round_up(x, m):
    return (x + m - 1) // m * m


# --------------------------------------------------------------------------
# Fused per-block Pallas kernel.
# --------------------------------------------------------------------------

def _make_block_kernel(s, H, W, Ho, Wo, Cip, Cop, equal, R, C):
    """Build the fused FixupBasicBlock kernel for one static configuration.

    s        : conv1 stride
    H, W     : input spatial dims;   Ho, Wo = H//s, W//s (output spatial dims)
    Cip, Cop : lane-padded (multiple of 128) in / out channel counts
    equal    : identity shortcut (cin == cout, stride 1)
    R, C     : per-parity-group padded spatial dims ((H+2)//s, (W+2)//s)
    """
    G = s * s
    M = Ho * Wo
    bf16 = jnp.bfloat16

    def kernel(*refs):
        if equal:
            scal_ref, x_ref, w1_ref, w2_ref, o_ref, a_ref, h_ref = refs
            wsc_ref = None
        else:
            scal_ref, x_ref, w1_ref, w2_ref, wsc_ref, o_ref, a_ref, h_ref = refs

        b1a = scal_ref[0]
        b1b = scal_ref[1]
        b2a = scal_ref[2]
        b2b = scal_ref[3]
        scale = scal_ref[4]

        # ---- a1b = relu(x + b1a) + b1b written into the zero-padded conv1
        #      input scratch (VMEM).  Only interior pixels are written so the
        #      conv zero-padding stays exact (border stays 0).
        a_ref[...] = jnp.zeros_like(a_ref)
        if s == 1:
            x = x_ref[0]                                   # (H, W, Cip) f32
            a_ref[1:H + 1, 1:W + 1, :] = jnp.maximum(x + b1a, 0.0) + b1b
        else:
            for pr in range(s):
                r0 = -((pr - 1) // s)                      # ceil((1 - pr)/s)
                nr = (H - pr) // s - r0 + 1
                for pc in range(s):
                    c0 = -((pc - 1) // s)
                    nc = (W - pc) // s - c0 + 1
                    g = pr * s + pc
                    xg = x_ref[0, g * R + r0:g * R + r0 + nr, c0:c0 + nc, :]
                    a_ref[g * R + r0:g * R + r0 + nr, c0:c0 + nc, :] = (
                        jnp.maximum(xg + b1a, 0.0) + b1b)

        # ---- conv1: 3x3 stride-s as 9 accumulated MXU matmuls (bf16 -> f32).
        acc = jnp.zeros((M, Cop), jnp.float32)
        for kh in range(3):
            for kw in range(3):
                g = (kh % s) * s + (kw % s)
                dr, dc = kh // s, kw // s
                tap = a_ref[g * R + dr:g * R + dr + Ho, dc:dc + Wo, :]
                tap = tap.reshape(M, Cip).astype(bf16)
                acc = acc + jnp.dot(tap, w1_ref[kh * 3 + kw],
                                    preferred_element_type=jnp.float32)

        # ---- h = relu(conv1 + b2a) + b2b -> zero-padded conv2 input scratch.
        # TODO(synk): dropout (dropRate > 0) not implemented; dropRate == 0.0.
        h = jnp.maximum(acc + b2a, 0.0) + b2b
        h_ref[...] = jnp.zeros_like(h_ref)
        h_ref[1:Ho + 1, 1:Wo + 1, :] = h.reshape(Ho, Wo, Cop)

        # ---- conv2: 3x3 stride-1, again 9 accumulated MXU matmuls.
        acc2 = jnp.zeros((M, Cop), jnp.float32)
        for kh in range(3):
            for kw in range(3):
                tap = h_ref[kh:kh + Ho, kw:kw + Wo, :]
                tap = tap.reshape(M, Cop).astype(bf16)
                acc2 = acc2 + jnp.dot(tap, w2_ref[kh * 3 + kw],
                                      preferred_element_type=jnp.float32)

        # ---- shortcut + scale (residual path stays f32).
        if equal:
            short = x_ref[0].reshape(M, Cip)               # raw x (Cip == Cop)
        else:
            if s == 1:
                sc_in = x_ref[0]                           # (H, W, Cip)
            else:
                g1 = (1 % s) * s + (1 % s)                 # parity group of
                r1 = 1 // s                                # original rows 0,s,..
                c1 = 1 // s
                sc_in = x_ref[0, g1 * R + r1:g1 * R + r1 + Ho, c1:c1 + Wo, :]
            a1s = jnp.maximum(sc_in + b1a, 0.0).astype(bf16).reshape(M, Cip)
            short = jnp.dot(a1s, wsc_ref[...],
                            preferred_element_type=jnp.float32)

        o_ref[0] = (acc2 * scale + short).reshape(Ho, Wo, Cop)

    return kernel


def fixup_basic_block(x_pad, p, stride):
    """One FixupBasicBlock.  `x_pad` is NHWC with channels already zero-padded
    to a multiple of 128; returns NHWC with out-channels padded likewise."""
    n, h, w, cip = x_pad.shape
    cin, cout = p["w1"].shape[2], p["w1"].shape[3]
    assert cip == _round_up(cin, LANE)
    cop = _round_up(cout, LANE)
    s = int(stride)
    assert h % s == 0 and w % s == 0 and (h + 2) % s == 0 and (w + 2) % s == 0
    ho, wo = h // s, w // s
    equal = (cin == cout) and (s == 1)
    assert equal or ("wsc" in p), "downsample block needs a 1x1 shortcut conv"

    R, C = (h + 2) // s, (w + 2) // s
    G = s * s

    # Weights: tap-major, zero-padded to lane-dense channel counts, bf16.
    w1 = jnp.pad(p["w1"].reshape(9, cin, cout),
                 ((0, 0), (0, cip - cin), (0, cop - cout))).astype(jnp.bfloat16)
    w2 = jnp.pad(p["w2"].reshape(9, cout, cout),
                 ((0, 0), (0, cop - cout), (0, cop - cout))).astype(jnp.bfloat16)
    scal = jnp.stack([p["b1a"], p["b1b"], p["b2a"], p["b2b"],
                      p["scale"]]).astype(jnp.float32)

    if s == 1:
        x_in = x_pad                                        # (n, h, w, cip)
        x_spec = pl.BlockSpec((1, h, w, cip), lambda i: (i, 0, 0, 0))
    else:
        # Space-to-depth of the spatially padded input: parity group
        # g = pr*s + pc holds padded pixel (s*r + pr, s*c + pc) at row g*R + r,
        # column c, so every conv tap is a contiguous static slice in-kernel.
        xp = jnp.pad(x_pad, ((0, 0), (1, 1), (1, 1), (0, 0)))
        x_in = xp.reshape(n, R, s, C, s, cip).transpose(0, 2, 4, 1, 3, 5)
        x_in = x_in.reshape(n, G * R, C, cip)
        x_spec = pl.BlockSpec((1, G * R, C, cip), lambda i: (i, 0, 0, 0))

    in_specs = [_SMEM_SPEC,
                x_spec,
                pl.BlockSpec((9, cip, cop), lambda i: (0, 0, 0)),
                pl.BlockSpec((9, cop, cop), lambda i: (0, 0, 0))]
    args = [scal, x_in, w1, w2]
    if not equal:
        wsc = jnp.pad(p["wsc"], ((0, cip - cin), (0, cop - cout))
                      ).astype(jnp.bfloat16)
        in_specs.append(pl.BlockSpec((cip, cop), lambda i: (0, 0)))
        args.append(wsc)

    kernel = _make_block_kernel(s, h, w, ho, wo, cip, cop, equal, R, C)
    out = pl.pallas_call(
        kernel,
        out_shape=jax.ShapeDtypeStruct((n, ho, wo, cop), jnp.float32),
        grid=(n,),
        in_specs=in_specs,
        out_specs=pl.BlockSpec((1, ho, wo, cop), lambda i: (i, 0, 0, 0)),
        scratch_shapes=[pltpu.VMEM((G * R, C, cip), jnp.float32),
                        pltpu.VMEM((ho + 2, wo + 2, cop), jnp.float32)],
        compiler_params=pltpu.CompilerParams(
            dimension_semantics=("parallel",),
            vmem_limit_bytes=64 * 1024 * 1024),
    )(*args)
    return out


def fixup_network_block(x_nchw, params, strides):
    """FixupNetworkBlock.forward: sequential Fixup basic blocks (NCHW in/out)."""
    x = jnp.transpose(x_nchw, (0, 2, 3, 1)).astype(jnp.float32)     # NHWC
    cin0 = x.shape[-1]
    x = jnp.pad(x, ((0, 0), (0, 0), (0, 0),
                    (0, _round_up(cin0, LANE) - cin0)))             # lane pad
    for p, s in zip(params, strides):
        x = fixup_basic_block(x, p, s)       # stays lane-padded across blocks
    cout = params[-1]["w1"].shape[-1]
    x = x[..., :cout]
    return jnp.transpose(x, (0, 3, 1, 2))                           # NCHW


# --------------------------------------------------------------------------
# Pure-JAX reference (lax.conv, f32) for verification.
# --------------------------------------------------------------------------

def _ref_block(x, p, stride):
    dn = ("NHWC", "HWIO", "NHWC")
    cin, cout = x.shape[-1], p["w1"].shape[-1]
    a1 = jax.nn.relu(x + p["b1a"])
    h = lax.conv_general_dilated(a1 + p["b1b"], p["w1"], (stride, stride),
                                 [(1, 1), (1, 1)], dimension_numbers=dn)
    h = jax.nn.relu(h + p["b2a"])
    h = lax.conv_general_dilated(h + p["b2b"], p["w2"], (1, 1),
                                 [(1, 1), (1, 1)], dimension_numbers=dn)
    out = h * p["scale"]
    if cin == cout:
        short = x
    else:
        wsc = p["wsc"].reshape(1, 1, cin, cout)
        short = lax.conv_general_dilated(a1, wsc, (stride, stride),
                                         [(0, 0), (0, 0)], dimension_numbers=dn)
    return short + out


def fixup_network_block_ref(x_nchw, params, strides):
    x = jnp.transpose(x_nchw, (0, 2, 3, 1))
    for p, s in zip(params, strides):
        x = _ref_block(x, p, s)
    return jnp.transpose(x, (0, 3, 1, 2))


# --------------------------------------------------------------------------
# Deterministic parameter construction (synthetic, not a checkpoint).
# --------------------------------------------------------------------------

def init_block_params(key, cin, cout):
    k1, k2, k3, kb = jax.random.split(key, 4)
    b = 0.05 * jax.random.normal(kb, (4,), jnp.float32)
    p = {
        "w1": jax.random.normal(k1, (3, 3, cin, cout), jnp.float32)
              * (1.0 / (9 * cin) ** 0.5),
        "w2": jax.random.normal(k2, (3, 3, cout, cout), jnp.float32)
              * (1.0 / (9 * cout) ** 0.5),
        "b1a": b[0], "b1b": b[1], "b2a": b[2], "b2b": b[3],
        "scale": jnp.float32(1.0),
    }
    if cin != cout:
        p["wsc"] = jax.random.normal(k3, (cin, cout), jnp.float32) * (1.0 / cin ** 0.5)
    return p


if __name__ == "__main__":
    key = jax.random.PRNGKey(0)
    kx, kp = jax.random.split(key)

    # FixupNetworkBlock(nb_layers=2, in_planes=4, out_planes=8, block, stride=2)
    N, in_planes, out_planes, H, W = 2, 4, 8, 16, 16
    nb_layers, stride = 2, 2

    x_nchw = jax.random.normal(kx, (N, in_planes, H, W), jnp.float32)

    layer_keys = jax.random.split(kp, nb_layers)
    params, strides = [], []
    for i in range(nb_layers):
        cin = in_planes if i == 0 else out_planes
        s = stride if i == 0 else 1
        params.append(init_block_params(layer_keys[i], cin, out_planes))
        strides.append(s)

    fwd = jax.jit(lambda xx, pp: fixup_network_block(xx, pp, strides))
    out = jax.block_until_ready(fwd(x_nchw, params))

    assert out.shape == (N, out_planes, H // stride, W // stride), out.shape

    ref = jax.block_until_ready(fixup_network_block_ref(x_nchw, params, strides))
    max_ref = float(jnp.max(jnp.abs(ref)))
    max_err = float(jnp.max(jnp.abs(out - ref)))
    # bf16 matmul operands (f32 accumulation) vs f32 reference -> allow ~1%
    # of the output scale; structural bugs would be O(1) relative.
    assert max_err <= 5e-2 * max(1.0, max_ref), (max_err, max_ref)

    print("KERNEL_OK")
</pallas_src>

<mosaic_0001>
module attributes {stable_mosaic.version = 11 : i64} {
  func.func @kernel(%arg0: i32, %arg1: memref<5xf32, #tpu.memory_space<smem>>, %arg2: memref<1x8x8x128xf32, #tpu.memory_space<vmem>>, %arg3: memref<9x128x128xbf16, #tpu.memory_space<vmem>>, %arg4: memref<9x128x128xbf16, #tpu.memory_space<vmem>>, %arg5: memref<1x8x8x128xf32, #tpu.memory_space<vmem>>, %arg6: memref<10x10x128xf32, #tpu.memory_space<vmem>>, %arg7: memref<10x10x128xf32, #tpu.memory_space<vmem>>) attributes {dimension_semantics = [#tpu.dimension_semantics<parallel>], iteration_bounds = array<i64: 2>, scalar_prefetch = 0 : i64, scratch_operands = 2 : i64, tpu.core_type = #tpu.core_type<tc>, window_params = [{transform_indices = @transform_0, window_bounds = array<i64: 5>}, {transform_indices = @transform_1, window_bounds = array<i64: 1, 8, 8, 128>}, {pipeline_mode = #tpu.pipeline_mode<synchronous>, transform_indices = @transform_2, window_bounds = array<i64: 9, 128, 128>}, {pipeline_mode = #tpu.pipeline_mode<synchronous>, transform_indices = @transform_3, window_bounds = array<i64: 9, 128, 128>}, {transform_indices = @transform_4, window_bounds = array<i64: 1, 8, 8, 128>}]} {
    %c0 = arith.constant 0 : index
    %0 = memref.load %arg1[%c0] : memref<5xf32, #tpu.memory_space<smem>>
    %c1 = arith.constant 1 : index
    %1 = memref.load %arg1[%c1] : memref<5xf32, #tpu.memory_space<smem>>
    %c2 = arith.constant 2 : index
    %2 = memref.load %arg1[%c2] : memref<5xf32, #tpu.memory_space<smem>>
    %c3 = arith.constant 3 : index
    %3 = memref.load %arg1[%c3] : memref<5xf32, #tpu.memory_space<smem>>
    %c4 = arith.constant 4 : index
    %4 = memref.load %arg1[%c4] : memref<5xf32, #tpu.memory_space<smem>>
    %cst = arith.constant 0.000000e+00 : f32
    %5 = vector.broadcast %cst : f32 to vector<10x10x128xf32>
    %c0_0 = arith.constant 0 : index
    %c0_1 = arith.constant 0 : index
    %c0_2 = arith.constant 0 : index
    %6 = vector.load %arg6[%c0_0, %c0_1, %c0_2] : memref<10x10x128xf32, #tpu.memory_space<vmem>>, vector<10x10x128xf32>
    tpu.vector_store %arg6[%c0_0, %c0_1, %c0_2], %5 {strides = array<i32>} : memref<10x10x128xf32, #tpu.memory_space<vmem>>, vector<10x10x128xf32>,
    %c0_3 = arith.constant 0 : index
    %c0_4 = arith.constant 0 : index
    %c0_5 = arith.constant 0 : index
    %c0_6 = arith.constant 0 : index
    %7 = vector.load %arg2[%c0_3, %c0_4, %c0_5, %c0_6] : memref<1x8x8x128xf32, #tpu.memory_space<vmem>>, vector<1x8x8x128xf32>
    %8 = vector.shape_cast %7 : vector<1x8x8x128xf32> to vector<8x8x128xf32>
    %9 = vector.broadcast %0 : f32 to vector<8x8x128xf32>
    %10 = arith.addf %8, %9 : vector<8x8x128xf32>
    %cst_7 = arith.constant 0.000000e+00 : f32
    %11 = vector.broadcast %cst_7 : f32 to vector<8x8x128xf32>
    %12 = arith.maximumf %10, %11 : vector<8x8x128xf32>
    %13 = vector.broadcast %1 : f32 to vector<8x8x128xf32>
    %14 = arith.addf %12, %13 : vector<8x8x128xf32>
    %c1_8 = arith.constant 1 : index
    %c1_9 = arith.constant 1 : index
    %c0_10 = arith.constant 0 : index
    %15 = vector.load %arg6[%c1_8, %c1_9, %c0_10] : memref<10x10x128xf32, #tpu.memory_space<vmem>>, vector<8x8x128xf32>
    tpu.vector_store %arg6[%c1_8, %c1_9, %c0_10], %14 {strides = array<i32>} : memref<10x10x128xf32, #tpu.memory_space<vmem>>, vector<8x8x128xf32>,
    %cst_11 = arith.constant 0.000000e+00 : f32
    %16 = vector.broadcast %cst_11 : f32 to vector<64x128xf32>
    %c0_12 = arith.constant 0 : index
    %c0_13 = arith.constant 0 : index
    %c0_14 = arith.constant 0 : index
    %17 = vector.load %arg6[%c0_12, %c0_13, %c0_14] : memref<10x10x128xf32, #tpu.memory_space<vmem>>, vector<8x8x128xf32>
    %18 = vector.shape_cast %17 : vector<8x8x128xf32> to vector<64x128xf32>
    %19 = arith.truncf %18 : vector<64x128xf32> to vector<64x128xbf16>
    %c0_15 = arith.constant 0 : index
    %c0_16 = arith.constant 0 : index
    %c0_17 = arith.constant 0 : index
    %20 = vector.load %arg3[%c0_15, %c0_16, %c0_17] : memref<9x128x128xbf16, #tpu.memory_space<vmem>>, vector<1x128x128xbf16>
    %21 = vector.shape_cast %20 : vector<1x128x128xbf16> to vector<128x128xbf16>
    %cst_18 = arith.constant dense<0.000000e+00> : vector<64x128xf32>
    %22 = tpu.matmul %19, %21, %cst_18 {dimension_numbers = #tpu.dot_dimension_numbers<[1], [0], [0], [1], [0, 0, 1, 1], [], []>} : vector<64x128xbf16>, vector<128x128xbf16>, vector<64x128xf32> -> vector<64x128xf32>
    %23 = arith.addf %16, %22 : vector<64x128xf32>
    %c0_19 = arith.constant 0 : index
    %c1_20 = arith.constant 1 : index
    %c0_21 = arith.constant 0 : index
    %24 = vector.load %arg6[%c0_19, %c1_20, %c0_21] : memref<10x10x128xf32, #tpu.memory_space<vmem>>, vector<8x8x128xf32>
    %25 = vector.shape_cast %24 : vector<8x8x128xf32> to vector<64x128xf32>
    %26 = arith.truncf %25 : vector<64x128xf32> to vector<64x128xbf16>
    %c1_22 = arith.constant 1 : index
    %c0_23 = arith.constant 0 : index
    %c0_24 = arith.constant 0 : index
    %27 = vector.load %arg3[%c1_22, %c0_23, %c0_24] : memref<9x128x128xbf16, #tpu.memory_space<vmem>>, vector<1x128x128xbf16>
    %28 = vector.shape_cast %27 : vector<1x128x128xbf16> to vector<128x128xbf16>
    %cst_25 = arith.constant dense<0.000000e+00> : vector<64x128xf32>
    %29 = tpu.matmul %26, %28, %cst_25 {dimension_numbers = #tpu.dot_dimension_numbers<[1], [0], [0], [1], [0, 0, 1, 1], [], []>} : vector<64x128xbf16>, vector<128x128xbf16>, vector<64x128xf32> -> vector<64x128xf32>
    %30 = arith.addf %23, %29 : vector<64x128xf32>
    %c0_26 = arith.constant 0 : index
    %c2_27 = arith.constant 2 : index
    %c0_28 = arith.constant 0 : index
    %31 = vector.load %arg6[%c0_26, %c2_27, %c0_28] : memref<10x10x128xf32, #tpu.memory_space<vmem>>, vector<8x8x128xf32>
    %32 = vector.shape_cast %31 : vector<8x8x128xf32> to vector<64x128xf32>
    %33 = arith.truncf %32 : vector<64x128xf32> to vector<64x128xbf16>
    %c2_29 = arith.constant 2 : index
    %c0_30 = arith.constant 0 : index
    %c0_31 = arith.constant 0 : index
    %34 = vector.load %arg3[%c2_29, %c0_30, %c0_31] : memref<9x128x128xbf16, #tpu.memory_space<vmem>>, vector<1x128x128xbf16>
    %35 = vector.shape_cast %34 : vector<1x128x128xbf16> to vector<128x128xbf16>
    %cst_32 = arith.constant dense<0.000000e+00> : vector<64x128xf32>
    %36 = tpu.matmul %33, %35, %cst_32 {dimension_numbers = #tpu.dot_dimension_numbers<[1], [0], [0], [1], [0, 0, 1, 1], [], []>} : vector<64x128xbf16>, vector<128x128xbf16>, vector<64x128xf32> -> vector<64x128xf32>
    %37 = arith.addf %30, %36 : vector<64x128xf32>
    %c1_33 = arith.constant 1 : index
    %c0_34 = arith.constant 0 : index
    %c0_35 = arith.constant 0 : index
    %38 = vector.load %arg6[%c1_33, %c0_34, %c0_35] : memref<10x10x128xf32, #tpu.memory_space<vmem>>, vector<8x8x128xf32>
    %39 = vector.shape_cast %38 : vector<8x8x128xf32> to vector<64x128xf32>
    %40 = arith.truncf %39 : vector<64x128xf32> to vector<64x128xbf16>
    %c3_36 = arith.constant 3 : index
    %c0_37 = arith.constant 0 : index
    %c0_38 = arith.constant 0 : index
    %41 = vector.load %arg3[%c3_36, %c0_37, %c0_38] : memref<9x128x128xbf16, #tpu.memory_space<vmem>>, vector<1x128x128xbf16>
    %42 = vector.shape_cast %41 : vector<1x128x128xbf16> to vector<128x128xbf16>
    %cst_39 = arith.constant dense<0.000000e+00> : vector<64x128xf32>
    %43 = tpu.matmul %40, %42, %cst_39 {dimension_numbers = #tpu.dot_dimension_numbers<[1], [0], [0], [1], [0, 0, 1, 1], [], []>} : vector<64x128xbf16>, vector<128x128xbf16>, vector<64x128xf32> -> vector<64x128xf32>
    %44 = arith.addf %37, %43 : vector<64x128xf32>
    %c1_40 = arith.constant 1 : index
    %c1_41 = arith.constant 1 : index
    %c0_42 = arith.constant 0 : index
    %45 = vector.load %arg6[%c1_40, %c1_41, %c0_42] : memref<10x10x128xf32, #tpu.memory_space<vmem>>, vector<8x8x128xf32>
    %46 = vector.shape_cast %45 : vector<8x8x128xf32> to vector<64x128xf32>
    %47 = arith.truncf %46 : vector<64x128xf32> to vector<64x128xbf16>
    %c4_43 = arith.constant 4 : index
    %c0_44 = arith.constant 0 : index
    %c0_45 = arith.constant 0 : index
    %48 = vector.load %arg3[%c4_43, %c0_44, %c0_45] : memref<9x128x128xbf16, #tpu.memory_space<vmem>>, vector<1x128x128xbf16>
    %49 = vector.shape_cast %48 : vector<1x128x128xbf16> to vector<128x128xbf16>
    %cst_46 = arith.constant dense<0.000000e+00> : vector<64x128xf32>
    %50 = tpu.matmul %47, %49, %cst_46 {dimension_numbers = #tpu.dot_dimension_numbers<[1], [0], [0], [1], [0, 0, 1, 1], [], []>} : vector<64x128xbf16>, vector<128x128xbf16>, vector<64x128xf32> -> vector<64x128xf32>
    %51 = arith.addf %44, %50 : vector<64x128xf32>
    %c1_47 = arith.constant 1 : index
    %c2_48 = arith.constant 2 : index
    %c0_49 = arith.constant 0 : index
    %52 = vector.load %arg6[%c1_47, %c2_48, %c0_49] : memref<10x10x128xf32, #tpu.memory_space<vmem>>, vector<8x8x128xf32>
    %53 = vector.shape_cast %52 : vector<8x8x128xf32> to vector<64x128xf32>
    %54 = arith.truncf %53 : vector<64x128xf32> to vector<64x128xbf16>
    %c5 = arith.constant 5 : index
    %c0_50 = arith.constant 0 : index
    %c0_51 = arith.constant 0 : index
    %55 = vector.load %arg3[%c5, %c0_50, %c0_51] : memref<9x128x128xbf16, #tpu.memory_space<vmem>>, vector<1x128x128xbf16>
    %56 = vector.shape_cast %55 : vector<1x128x128xbf16> to vector<128x128xbf16>
    %cst_52 = arith.constant dense<0.000000e+00> : vector<64x128xf32>
    %57 = tpu.matmul %54, %56, %cst_52 {dimension_numbers = #tpu.dot_dimension_numbers<[1], [0], [0], [1], [0, 0, 1, 1], [], []>} : vector<64x128xbf16>, vector<128x128xbf16>, vector<64x128xf32> -> vector<64x128xf32>
    %58 = arith.addf %51, %57 : vector<64x128xf32>
    %c2_53 = arith.constant 2 : index
    %c0_54 = arith.constant 0 : index
    %c0_55 = arith.constant 0 : index
    %59 = vector.load %arg6[%c2_53, %c0_54, %c0_55] : memref<10x10x128xf32, #tpu.memory_space<vmem>>, vector<8x8x128xf32>
    %60 = vector.shape_cast %59 : vector<8x8x128xf32> to vector<64x128xf32>
    %61 = arith.truncf %60 : vector<64x128xf32> to vector<64x128xbf16>
    %c6 = arith.constant 6 : index
    %c0_56 = arith.constant 0 : index
    %c0_57 = arith.constant 0 : index
    %62 = vector.load %arg3[%c6, %c0_56, %c0_57] : memref<9x128x128xbf16, #tpu.memory_space<vmem>>, vector<1x128x128xbf16>
    %63 = vector.shape_cast %62 : vector<1x128x128xbf16> to vector<128x128xbf16>
    %cst_58 = arith.constant dense<0.000000e+00> : vector<64x128xf32>
    %64 = tpu.matmul %61, %63, %cst_58 {dimension_numbers = #tpu.dot_dimension_numbers<[1], [0], [0], [1], [0, 0, 1, 1], [], []>} : vector<64x128xbf16>, vector<128x128xbf16>, vector<64x128xf32> -> vector<64x128xf32>
    %65 = arith.addf %58, %64 : vector<64x128xf32>
    %c2_59 = arith.constant 2 : index
    %c1_60 = arith.constant 1 : index
    %c0_61 = arith.constant 0 : index
    %66 = vector.load %arg6[%c2_59, %c1_60, %c0_61] : memref<10x10x128xf32, #tpu.memory_space<vmem>>, vector<8x8x128xf32>
    %67 = vector.shape_cast %66 : vector<8x8x128xf32> to vector<64x128xf32>
    %68 = arith.truncf %67 : vector<64x128xf32> to vector<64x128xbf16>
    %c7 = arith.constant 7 : index
    %c0_62 = arith.constant 0 : index
    %c0_63 = arith.constant 0 : index
    %69 = vector.load %arg3[%c7, %c0_62, %c0_63] : memref<9x128x128xbf16, #tpu.memory_space<vmem>>, vector<1x128x128xbf16>
    %70 = vector.shape_cast %69 : vector<1x128x128xbf16> to vector<128x128xbf16>
    %cst_64 = arith.constant dense<0.000000e+00> : vector<64x128xf32>
    %71 = tpu.matmul %68, %70, %cst_64 {dimension_numbers = #tpu.dot_dimension_numbers<[1], [0], [0], [1], [0, 0, 1, 1], [], []>} : vector<64x128xbf16>, vector<128x128xbf16>, vector<64x128xf32> -> vector<64x128xf32>
    %72 = arith.addf %65, %71 : vector<64x128xf32>
    %c2_65 = arith.constant 2 : index
    %c2_66 = arith.constant 2 : index
    %c0_67 = arith.constant 0 : index
    %73 = vector.load %arg6[%c2_65, %c2_66, %c0_67] : memref<10x10x128xf32, #tpu.memory_space<vmem>>, vector<8x8x128xf32>
    %74 = vector.shape_cast %73 : vector<8x8x128xf32> to vector<64x128xf32>
    %75 = arith.truncf %74 : vector<64x128xf32> to vector<64x128xbf16>
    %c8 = arith.constant 8 : index
    %c0_68 = arith.constant 0 : index
    %c0_69 = arith.constant 0 : index
    %76 = vector.load %arg3[%c8, %c0_68, %c0_69] : memref<9x128x128xbf16, #tpu.memory_space<vmem>>, vector<1x128x128xbf16>
    %77 = vector.shape_cast %76 : vector<1x128x128xbf16> to vector<128x128xbf16>
    %cst_70 = arith.constant dense<0.000000e+00> : vector<64x128xf32>
    %78 = tpu.matmul %75, %77, %cst_70 {dimension_numbers = #tpu.dot_dimension_numbers<[1], [0], [0], [1], [0, 0, 1, 1], [], []>} : vector<64x128xbf16>, vector<128x128xbf16>, vector<64x128xf32> -> vector<64x128xf32>
    %79 = arith.addf %72, %78 : vector<64x128xf32>
    %80 = vector.broadcast %2 : f32 to vector<64x128xf32>
    %81 = arith.addf %79, %80 : vector<64x128xf32>
    %cst_71 = arith.constant 0.000000e+00 : f32
    %82 = vector.broadcast %cst_71 : f32 to vector<64x128xf32>
    %83 = arith.maximumf %81, %82 : vector<64x128xf32>
    %84 = vector.broadcast %3 : f32 to vector<64x128xf32>
    %85 = arith.addf %83, %84 : vector<64x128xf32>
    %cst_72 = arith.constant 0.000000e+00 : f32
    %86 = vector.broadcast %cst_72 : f32 to vector<10x10x128xf32>
    %c0_73 = arith.constant 0 : index
    %c0_74 = arith.constant 0 : index
    %c0_75 = arith.constant 0 : index
    %87 = vector.load %arg7[%c0_73, %c0_74, %c0_75] : memref<10x10x128xf32, #tpu.memory_space<vmem>>, vector<10x10x128xf32>
    tpu.vector_store %arg7[%c0_73, %c0_74, %c0_75], %86 {strides = array<i32>} : memref<10x10x128xf32, #tpu.memory_space<vmem>>, vector<10x10x128xf32>,
    %88 = vector.shape_cast %85 : vector<64x128xf32> to vector<8x8x128xf32>
    %c1_76 = arith.constant 1 : index
    %c1_77 = arith.constant 1 : index
    %c0_78 = arith.constant 0 : index
    %89 = vector.load %arg7[%c1_76, %c1_77, %c0_78] : memref<10x10x128xf32, #tpu.memory_space<vmem>>, vector<8x8x128xf32>
    tpu.vector_store %arg7[%c1_76, %c1_77, %c0_78], %88 {strides = array<i32>} : memref<10x10x128xf32, #tpu.memory_space<vmem>>, vector<8x8x128xf32>,
    %cst_79 = arith.constant 0.000000e+00 : f32
    %90 = vector.broadcast %cst_79 : f32 to vector<64x128xf32>
    %c0_80 = arith.constant 0 : index
    %c0_81 = arith.constant 0 : index
    %c0_82 = arith.constant 0 : index
    %91 = vector.load %arg7[%c0_80, %c0_81, %c0_82] : memref<10x10x128xf32, #tpu.memory_space<vmem>>, vector<8x8x128xf32>
    %92 = vector.shape_cast %91 : vector<8x8x128xf32> to vector<64x128xf32>
    %93 = arith.truncf %92 : vector<64x128xf32> to vector<64x128xbf16>
    %c0_83 = arith.constant 0 : index
    %c0_84 = arith.constant 0 : index
    %c0_85 = arith.constant 0 : index
    %94 = vector.load %arg4[%c0_83, %c0_84, %c0_85] : memref<9x128x128xbf16, #tpu.memory_space<vmem>>, vector<1x128x128xbf16>
    %95 = vector.shape_cast %94 : vector<1x128x128xbf16> to vector<128x128xbf16>
    %cst_86 = arith.constant dense<0.000000e+00> : vector<64x128xf32>
    %96 = tpu.matmul %93, %95, %cst_86 {dimension_numbers = #tpu.dot_dimension_numbers<[1], [0], [0], [1], [0, 0, 1, 1], [], []>} : vector<64x128xbf16>, vector<128x128xbf16>, vector<64x128xf32> -> vector<64x128xf32>
    %97 = arith.addf %90, %96 : vector<64x128xf32>
    %c0_87 = arith.constant 0 : index
    %c1_88 = arith.constant 1 : index
    %c0_89 = arith.constant 0 : index
    %98 = vector.load %arg7[%c0_87, %c1_88, %c0_89] : memref<10x10x128xf32, #tpu.memory_space<vmem>>, vector<8x8x128xf32>
    %99 = vector.shape_cast %98 : vector<8x8x128xf32> to vector<64x128xf32>
    %100 = arith.truncf %99 : vector<64x128xf32> to vector<64x128xbf16>
    %c1_90 = arith.constant 1 : index
    %c0_91 = arith.constant 0 : index
    %c0_92 = arith.constant 0 : index
    %101 = vector.load %arg4[%c1_90, %c0_91, %c0_92] : memref<9x128x128xbf16, #tpu.memory_space<vmem>>, vector<1x128x128xbf16>
    %102 = vector.shape_cast %101 : vector<1x128x128xbf16> to vector<128x128xbf16>
    %cst_93 = arith.constant dense<0.000000e+00> : vector<64x128xf32>
    %103 = tpu.matmul %100, %102, %cst_93 {dimension_numbers = #tpu.dot_dimension_numbers<[1], [0], [0], [1], [0, 0, 1, 1], [], []>} : vector<64x128xbf16>, vector<128x128xbf16>, vector<64x128xf32> -> vector<64x128xf32>
    %104 = arith.addf %97, %103 : vector<64x128xf32>
    %c0_94 = arith.constant 0 : index
    %c2_95 = arith.constant 2 : index
    %c0_96 = arith.constant 0 : index
    %105 = vector.load %arg7[%c0_94, %c2_95, %c0_96] : memref<10x10x128xf32, #tpu.memory_space<vmem>>, vector<8x8x128xf32>
    %106 = vector.shape_cast %105 : vector<8x8x128xf32> to vector<64x128xf32>
    %107 = arith.truncf %106 : vector<64x128xf32> to vector<64x128xbf16>
    %c2_97 = arith.constant 2 : index
    %c0_98 = arith.constant 0 : index
    %c0_99 = arith.constant 0 : index
    %108 = vector.load %arg4[%c2_97, %c0_98, %c0_99] : memref<9x128x128xbf16, #tpu.memory_space<vmem>>, vector<1x128x128xbf16>
    %109 = vector.shape_cast %108 : vector<1x128x128xbf16> to vector<128x128xbf16>
    %cst_100 = arith.constant dense<0.000000e+00> : vector<64x128xf32>
    %110 = tpu.matmul %107, %109, %cst_100 {dimension_numbers = #tpu.dot_dimension_numbers<[1], [0], [0], [1], [0, 0, 1, 1], [], []>} : vector<64x128xbf16>, vector<128x128xbf16>, vector<64x128xf32> -> vector<64x128xf32>
    %111 = arith.addf %104, %110 : vector<64x128xf32>
    %c1_101 = arith.constant 1 : index
    %c0_102 = arith.constant 0 : index
    %c0_103 = arith.constant 0 : index
    %112 = vector.load %arg7[%c1_101, %c0_102, %c0_103] : memref<10x10x128xf32, #tpu.memory_space<vmem>>, vector<8x8x128xf32>
    %113 = vector.shape_cast %112 : vector<8x8x128xf32> to vector<64x128xf32>
    %114 = arith.truncf %113 : vector<64x128xf32> to vector<64x128xbf16>
    %c3_104 = arith.constant 3 : index
    %c0_105 = arith.constant 0 : index
    %c0_106 = arith.constant 0 : index
    %115 = vector.load %arg4[%c3_104, %c0_105, %c0_106] : memref<9x128x128xbf16, #tpu.memory_space<vmem>>, vector<1x128x128xbf16>
    %116 = vector.shape_cast %115 : vector<1x128x128xbf16> to vector<128x128xbf16>
    %cst_107 = arith.constant dense<0.000000e+00> : vector<64x128xf32>
    %117 = tpu.matmul %114, %116, %cst_107 {dimension_numbers = #tpu.dot_dimension_numbers<[1], [0], [0], [1], [0, 0, 1, 1], [], []>} : vector<64x128xbf16>, vector<128x128xbf16>, vector<64x128xf32> -> vector<64x128xf32>
    %118 = arith.addf %111, %117 : vector<64x128xf32>
    %c1_108 = arith.constant 1 : index
    %c1_109 = arith.constant 1 : index
    %c0_110 = arith.constant 0 : index
    %119 = vector.load %arg7[%c1_108, %c1_109, %c0_110] : memref<10x10x128xf32, #tpu.memory_space<vmem>>, vector<8x8x128xf32>
    %120 = vector.shape_cast %119 : vector<8x8x128xf32> to vector<64x128xf32>
    %121 = arith.truncf %120 : vector<64x128xf32> to vector<64x128xbf16>
    %c4_111 = arith.constant 4 : index
    %c0_112 = arith.constant 0 : index
    %c0_113 = arith.constant 0 : index
    %122 = vector.load %arg4[%c4_111, %c0_112, %c0_113] : memref<9x128x128xbf16, #tpu.memory_space<vmem>>, vector<1x128x128xbf16>
    %123 = vector.shape_cast %122 : vector<1x128x128xbf16> to vector<128x128xbf16>
    %cst_114 = arith.constant dense<0.000000e+00> : vector<64x128xf32>
    %124 = tpu.matmul %121, %123, %cst_114 {dimension_numbers = #tpu.dot_dimension_numbers<[1], [0], [0], [1], [0, 0, 1, 1], [], []>} : vector<64x128xbf16>, vector<128x128xbf16>, vector<64x128xf32> -> vector<64x128xf32>
    %125 = arith.addf %118, %124 : vector<64x128xf32>
    %c1_115 = arith.constant 1 : index
    %c2_116 = arith.constant 2 : index
    %c0_117 = arith.constant 0 : index
    %126 = vector.load %arg7[%c1_115, %c2_116, %c0_117] : memref<10x10x128xf32, #tpu.memory_space<vmem>>, vector<8x8x128xf32>
    %127 = vector.shape_cast %126 : vector<8x8x128xf32> to vector<64x128xf32>
    %128 = arith.truncf %127 : vector<64x128xf32> to vector<64x128xbf16>
    %c5_118 = arith.constant 5 : index
    %c0_119 = arith.constant 0 : index
    %c0_120 = arith.constant 0 : index
    %129 = vector.load %arg4[%c5_118, %c0_119, %c0_120] : memref<9x128x128xbf16, #tpu.memory_space<vmem>>, vector<1x128x128xbf16>
    %130 = vector.shape_cast %129 : vector<1x128x128xbf16> to vector<128x128xbf16>
    %cst_121 = arith.constant dense<0.000000e+00> : vector<64x128xf32>
    %131 = tpu.matmul %128, %130, %cst_121 {dimension_numbers = #tpu.dot_dimension_numbers<[1], [0], [0], [1], [0, 0, 1, 1], [], []>} : vector<64x128xbf16>, vector<128x128xbf16>, vector<64x128xf32> -> vector<64x128xf32>
    %132 = arith.addf %125, %131 : vector<64x128xf32>
    %c2_122 = arith.constant 2 : index
    %c0_123 = arith.constant 0 : index
    %c0_124 = arith.constant 0 : index
    %133 = vector.load %arg7[%c2_122, %c0_123, %c0_124] : memref<10x10x128xf32, #tpu.memory_space<vmem>>, vector<8x8x128xf32>
    %134 = vector.shape_cast %133 : vector<8x8x128xf32> to vector<64x128xf32>
    %135 = arith.truncf %134 : vector<64x128xf32> to vector<64x128xbf16>
    %c6_125 = arith.constant 6 : index
    %c0_126 = arith.constant 0 : index
    %c0_127 = arith.constant 0 : index
    %136 = vector.load %arg4[%c6_125, %c0_126, %c0_127] : memref<9x128x128xbf16, #tpu.memory_space<vmem>>, vector<1x128x128xbf16>
    %137 = vector.shape_cast %136 : vector<1x128x128xbf16> to vector<128x128xbf16>
    %cst_128 = arith.constant dense<0.000000e+00> : vector<64x128xf32>
    %138 = tpu.matmul %135, %137, %cst_128 {dimension_numbers = #tpu.dot_dimension_numbers<[1], [0], [0], [1], [0, 0, 1, 1], [], []>} : vector<64x128xbf16>, vector<128x128xbf16>, vector<64x128xf32> -> vector<64x128xf32>
    %139 = arith.addf %132, %138 : vector<64x128xf32>
    %c2_129 = arith.constant 2 : index
    %c1_130 = arith.constant 1 : index
    %c0_131 = arith.constant 0 : index
    %140 = vector.load %arg7[%c2_129, %c1_130, %c0_131] : memref<10x10x128xf32, #tpu.memory_space<vmem>>, vector<8x8x128xf32>
    %141 = vector.shape_cast %140 : vector<8x8x128xf32> to vector<64x128xf32>
    %142 = arith.truncf %141 : vector<64x128xf32> to vector<64x128xbf16>
    %c7_132 = arith.constant 7 : index
    %c0_133 = arith.constant 0 : index
    %c0_134 = arith.constant 0 : index
    %143 = vector.load %arg4[%c7_132, %c0_133, %c0_134] : memref<9x128x128xbf16, #tpu.memory_space<vmem>>, vector<1x128x128xbf16>
    %144 = vector.shape_cast %143 : vector<1x128x128xbf16> to vector<128x128xbf16>
    %cst_135 = arith.constant dense<0.000000e+00> : vector<64x128xf32>
    %145 = tpu.matmul %142, %144, %cst_135 {dimension_numbers = #tpu.dot_dimension_numbers<[1], [0], [0], [1], [0, 0, 1, 1], [], []>} : vector<64x128xbf16>, vector<128x128xbf16>, vector<64x128xf32> -> vector<64x128xf32>
    %146 = arith.addf %139, %145 : vector<64x128xf32>
    %c2_136 = arith.constant 2 : index
    %c2_137 = arith.constant 2 : index
    %c0_138 = arith.constant 0 : index
    %147 = vector.load %arg7[%c2_136, %c2_137, %c0_138] : memref<10x10x128xf32, #tpu.memory_space<vmem>>, vector<8x8x128xf32>
    %148 = vector.shape_cast %147 : vector<8x8x128xf32> to vector<64x128xf32>
    %149 = arith.truncf %148 : vector<64x128xf32> to vector<64x128xbf16>
    %c8_139 = arith.constant 8 : index
    %c0_140 = arith.constant 0 : index
    %c0_141 = arith.constant 0 : index
    %150 = vector.load %arg4[%c8_139, %c0_140, %c0_141] : memref<9x128x128xbf16, #tpu.memory_space<vmem>>, vector<1x128x128xbf16>
    %151 = vector.shape_cast %150 : vector<1x128x128xbf16> to vector<128x128xbf16>
    %cst_142 = arith.constant dense<0.000000e+00> : vector<64x128xf32>
    %152 = tpu.matmul %149, %151, %cst_142 {dimension_numbers = #tpu.dot_dimension_numbers<[1], [0], [0], [1], [0, 0, 1, 1], [], []>} : vector<64x128xbf16>, vector<128x128xbf16>, vector<64x128xf32> -> vector<64x128xf32>
    %153 = arith.addf %146, %152 : vector<64x128xf32>
    %c0_143 = arith.constant 0 : index
    %c0_144 = arith.constant 0 : index
    %c0_145 = arith.constant 0 : index
    %c0_146 = arith.constant 0 : index
    %154 = vector.load %arg2[%c0_143, %c0_144, %c0_145, %c0_146] : memref<1x8x8x128xf32, #tpu.memory_space<vmem>>, vector<1x8x8x128xf32>
    %155 = vector.shape_cast %154 : vector<1x8x8x128xf32> to vector<8x8x128xf32>
    %156 = vector.shape_cast %155 : vector<8x8x128xf32> to vector<64x128xf32>
    %157 = vector.broadcast %4 : f32 to vector<64x128xf32>
    %158 = arith.mulf %153, %157 : vector<64x128xf32>
    %159 = arith.addf %158, %156 : vector<64x128xf32>
    %160 = vector.shape_cast %159 : vector<64x128xf32> to vector<8x8x128xf32>
    %c0_147 = arith.constant 0 : index
    %c0_148 = arith.constant 0 : index
    %c0_149 = arith.constant 0 : index
    %c0_150 = arith.constant 0 : index
    %161 = vector.load %arg5[%c0_147, %c0_148, %c0_149, %c0_150] : memref<1x8x8x128xf32, #tpu.memory_space<vmem>>, vector<1x8x8x128xf32>
    %162 = vector.shape_cast %161 : vector<1x8x8x128xf32> to vector<8x8x128xf32>
    %163 = vector.shape_cast %160 : vector<8x8x128xf32> to vector<1x8x8x128xf32>
    tpu.vector_store %arg5[%c0_147, %c0_148, %c0_149, %c0_150], %163 {strides = array<i32>} : memref<1x8x8x128xf32, #tpu.memory_space<vmem>>, vector<1x8x8x128xf32>,
    return
  }
  func.func @transform_0(%arg0: i32) -> i32 {
    %c0_i32 = arith.constant 0 : i32
    %c0_i32_0 = arith.constant 0 : i32
    return %c0_i32 : i32
  }
  func.func @transform_1(%arg0: i32) -> (i32, i32, i32, i32) {
    %c0_i32 = arith.constant 0 : i32
    %c0_i32_0 = arith.constant 0 : i32
    %c0_i32_1 = arith.constant 0 : i32
    %c0_i32_2 = arith.constant 0 : i32
    return %arg0, %c0_i32, %c0_i32_0, %c0_i32_1 : i32, i32, i32, i32
  }
  func.func @transform_2(%arg0: i32) -> (i32, i32, i32) {
    %c0_i32 = arith.constant 0 : i32
    %c0_i32_0 = arith.constant 0 : i32
    %c0_i32_1 = arith.constant 0 : i32
    %c0_i32_2 = arith.constant 0 : i32
    return %c0_i32, %c0_i32_0, %c0_i32_1 : i32, i32, i32
  }
  func.func @transform_3(%arg0: i32) -> (i32, i32, i32) {
    %c0_i32 = arith.constant 0 : i32
    %c0_i32_0 = arith.constant 0 : i32
    %c0_i32_1 = arith.constant 0 : i32
    %c0_i32_2 = arith.constant 0 : i32
    return %c0_i32, %c0_i32_0, %c0_i32_1 : i32, i32, i32
  }
  func.func @transform_4(%arg0: i32) -> (i32, i32, i32, i32) {
    %c0_i32 = arith.constant 0 : i32
    %c0_i32_0 = arith.constant 0 : i32
    %c0_i32_1 = arith.constant 0 : i32
    %c0_i32_2 = arith.constant 0 : i32
    return %arg0, %c0_i32, %c0_i32_0, %c0_i32_1 : i32, i32, i32, i32
  }
}

module attributes {stable_mosaic.version = 11 : i64} {
  func.func @kernel(%arg0: i32, %arg1: memref<5xf32, #tpu.memory_space<smem>>, %arg2: memref<1x36x9x128xf32, #tpu.memory_space<vmem>>, %arg3: memref<9x128x128xbf16, #tpu.memory_space<vmem>>, %arg4: memref<9x128x128xbf16, #tpu.memory_space<vmem>>, %arg5: memref<128x128xbf16, #tpu.memory_space<vmem>>, %arg6: memref<1x8x8x128xf32, #tpu.memory_space<vmem>>, %arg7: memref<36x9x128xf32, #tpu.memory_space<vmem>>, %arg8: memref<10x10x128xf32, #tpu.memory_space<vmem>>) attributes {dimension_semantics = [#tpu.dimension_semantics<parallel>], iteration_bounds = array<i64: 2>, scalar_prefetch = 0 : i64, scratch_operands = 2 : i64, tpu.core_type = #tpu.core_type<tc>, window_params = [{transform_indices = @transform_0, window_bounds = array<i64: 5>}, {transform_indices = @transform_1, window_bounds = array<i64: 1, 36, 9, 128>}, {pipeline_mode = #tpu.pipeline_mode<synchronous>, transform_indices = @transform_2, window_bounds = array<i64: 9, 128, 128>}, {pipeline_mode = #tpu.pipeline_mode<synchronous>, transform_indices = @transform_3, window_bounds = array<i64: 9, 128, 128>}, {pipeline_mode = #tpu.pipeline_mode<synchronous>, transform_indices = @transform_4, window_bounds = array<i64: 128, 128>}, {transform_indices = @transform_5, window_bounds = array<i64: 1, 8, 8, 128>}]} {
    %c0 = arith.constant 0 : index
    %0 = memref.load %arg1[%c0] : memref<5xf32, #tpu.memory_space<smem>>
    %c1 = arith.constant 1 : index
    %1 = memref.load %arg1[%c1] : memref<5xf32, #tpu.memory_space<smem>>
    %c2 = arith.constant 2 : index
    %2 = memref.load %arg1[%c2] : memref<5xf32, #tpu.memory_space<smem>>
    %c3 = arith.constant 3 : index
    %3 = memref.load %arg1[%c3] : memref<5xf32, #tpu.memory_space<smem>>
    %c4 = arith.constant 4 : index
    %4 = memref.load %arg1[%c4] : memref<5xf32, #tpu.memory_space<smem>>
    %cst = arith.constant 0.000000e+00 : f32
    %5 = vector.broadcast %cst : f32 to vector<36x9x128xf32>
    %c0_0 = arith.constant 0 : index
    %c0_1 = arith.constant 0 : index
    %c0_2 = arith.constant 0 : index
    %6 = vector.load %arg7[%c0_0, %c0_1, %c0_2] : memref<36x9x128xf32, #tpu.memory_space<vmem>>, vector<36x9x128xf32>
    tpu.vector_store %arg7[%c0_0, %c0_1, %c0_2], %5 {strides = array<i32>} : memref<36x9x128xf32, #tpu.memory_space<vmem>>, vector<36x9x128xf32>,
    %c0_3 = arith.constant 0 : index
    %c1_4 = arith.constant 1 : index
    %c1_5 = arith.constant 1 : index
    %c0_6 = arith.constant 0 : index
    %7 = vector.load %arg2[%c0_3, %c1_4, %c1_5, %c0_6] : memref<1x36x9x128xf32, #tpu.memory_space<vmem>>, vector<1x8x8x128xf32>
    %8 = vector.shape_cast %7 : vector<1x8x8x128xf32> to vector<8x8x128xf32>
    %9 = vector.broadcast %0 : f32 to vector<8x8x128xf32>
    %10 = arith.addf %8, %9 : vector<8x8x128xf32>
    %cst_7 = arith.constant 0.000000e+00 : f32
    %11 = vector.broadcast %cst_7 : f32 to vector<8x8x128xf32>
    %12 = arith.maximumf %10, %11 : vector<8x8x128xf32>
    %13 = vector.broadcast %1 : f32 to vector<8x8x128xf32>
    %14 = arith.addf %12, %13 : vector<8x8x128xf32>
    %c1_8 = arith.constant 1 : index
    %c1_9 = arith.constant 1 : index
    %c0_10 = arith.constant 0 : index
    %15 = vector.load %arg7[%c1_8, %c1_9, %c0_10] : memref<36x9x128xf32, #tpu.memory_space<vmem>>, vector<8x8x128xf32>
    tpu.vector_store %arg7[%c1_8, %c1_9, %c0_10], %14 {strides = array<i32>} : memref<36x9x128xf32, #tpu.memory_space<vmem>>, vector<8x8x128xf32>,
    %c0_11 = arith.constant 0 : index
    %c10 = arith.constant 10 : index
    %c0_12 = arith.constant 0 : index
    %c0_13 = arith.constant 0 : index
    %16 = vector.load %arg2[%c0_11, %c10, %c0_12, %c0_13] : memref<1x36x9x128xf32, #tpu.memory_space<vmem>>, vector<1x8x8x128xf32>
    %17 = vector.shape_cast %16 : vector<1x8x8x128xf32> to vector<8x8x128xf32>
    %18 = vector.broadcast %0 : f32 to vector<8x8x128xf32>
    %19 = arith.addf %17, %18 : vector<8x8x128xf32>
    %cst_14 = arith.constant 0.000000e+00 : f32
    %20 = vector.broadcast %cst_14 : f32 to vector<8x8x128xf32>
    %21 = arith.maximumf %19, %20 : vector<8x8x128xf32>
    %22 = vector.broadcast %1 : f32 to vector<8x8x128xf32>
    %23 = arith.addf %21, %22 : vector<8x8x128xf32>
    %c10_15 = arith.constant 10 : index
    %c0_16 = arith.constant 0 : index
    %c0_17 = arith.constant 0 : index
    %24 = vector.load %arg7[%c10_15, %c0_16, %c0_17] : memref<36x9x128xf32, #tpu.memory_space<vmem>>, vector<8x8x128xf32>
    tpu.vector_store %arg7[%c10_15, %c0_16, %c0_17], %23 {strides = array<i32>} : memref<36x9x128xf32, #tpu.memory_space<vmem>>, vector<8x8x128xf32>,
    %c0_18 = arith.constant 0 : index
    %c18 = arith.constant 18 : index
    %c1_19 = arith.constant 1 : index
    %c0_20 = arith.constant 0 : index
    %25 = vector.load %arg2[%c0_18, %c18, %c1_19, %c0_20] : memref<1x36x9x128xf32, #tpu.memory_space<vmem>>, vector<1x8x8x128xf32>
    %26 = vector.shape_cast %25 : vector<1x8x8x128xf32> to vector<8x8x128xf32>
    %27 = vector.broadcast %0 : f32 to vector<8x8x128xf32>
    %28 = arith.addf %26, %27 : vector<8x8x128xf32>
    %cst_21 = arith.constant 0.000000e+00 : f32
    %29 = vector.broadcast %cst_21 : f32 to vector<8x8x128xf32>
    %30 = arith.maximumf %28, %29 : vector<8x8x128xf32>
    %31 = vector.broadcast %1 : f32 to vector<8x8x128xf32>
    %32 = arith.addf %30, %31 : vector<8x8x128xf32>
    %c18_22 = arith.constant 18 : index
    %c1_23 = arith.constant 1 : index
    %c0_24 = arith.constant 0 : index
    %33 = vector.load %arg7[%c18_22, %c1_23, %c0_24] : memref<36x9x128xf32, #tpu.memory_space<vmem>>, vector<8x8x128xf32>
    tpu.vector_store %arg7[%c18_22, %c1_23, %c0_24], %32 {strides = array<i32>} : memref<36x9x128xf32, #tpu.memory_space<vmem>>, vector<8x8x128xf32>,
    %c0_25 = arith.constant 0 : index
    %c27 = arith.constant 27 : index
    %c0_26 = arith.constant 0 : index
    %c0_27 = arith.constant 0 : index
    %34 = vector.load %arg2[%c0_25, %c27, %c0_26, %c0_27] : memref<1x36x9x128xf32, #tpu.memory_space<vmem>>, vector<1x8x8x128xf32>
    %35 = vector.shape_cast %34 : vector<1x8x8x128xf32> to vector<8x8x128xf32>
    %36 = vector.broadcast %0 : f32 to vector<8x8x128xf32>
    %37 = arith.addf %35, %36 : vector<8x8x128xf32>
    %cst_28 = arith.constant 0.000000e+00 : f32
    %38 = vector.broadcast %cst_28 : f32 to vector<8x8x128xf32>
    %39 = arith.maximumf %37, %38 : vector<8x8x128xf32>
    %40 = vector.broadcast %1 : f32 to vector<8x8x128xf32>
    %41 = arith.addf %39, %40 : vector<8x8x128xf32>
    %c27_29 = arith.constant 27 : index
    %c0_30 = arith.constant 0 : index
    %c0_31 = arith.constant 0 : index
    %42 = vector.load %arg7[%c27_29, %c0_30, %c0_31] : memref<36x9x128xf32, #tpu.memory_space<vmem>>, vector<8x8x128xf32>
    tpu.vector_store %arg7[%c27_29, %c0_30, %c0_31], %41 {strides = array<i32>} : memref<36x9x128xf32, #tpu.memory_space<vmem>>, vector<8x8x128xf32>,
    %cst_32 = arith.constant 0.000000e+00 : f32
    %43 = vector.broadcast %cst_32 : f32 to vector<64x128xf32>
    %c0_33 = arith.constant 0 : index
    %c0_34 = arith.constant 0 : index
    %c0_35 = arith.constant 0 : index
    %44 = vector.load %arg7[%c0_33, %c0_34, %c0_35] : memref<36x9x128xf32, #tpu.memory_space<vmem>>, vector<8x8x128xf32>
    %45 = vector.shape_cast %44 : vector<8x8x128xf32> to vector<64x128xf32>
    %46 = arith.truncf %45 : vector<64x128xf32> to vector<64x128xbf16>
    %c0_36 = arith.constant 0 : index
    %c0_37 = arith.constant 0 : index
    %c0_38 = arith.constant 0 : index
    %47 = vector.load %arg3[%c0_36, %c0_37, %c0_38] : memref<9x128x128xbf16, #tpu.memory_space<vmem>>, vector<1x128x128xbf16>
    %48 = vector.shape_cast %47 : vector<1x128x128xbf16> to vector<128x128xbf16>
    %cst_39 = arith.constant dense<0.000000e+00> : vector<64x128xf32>
    %49 = tpu.matmul %46, %48, %cst_39 {dimension_numbers = #tpu.dot_dimension_numbers<[1], [0], [0], [1], [0, 0, 1, 1], [], []>} : vector<64x128xbf16>, vector<128x128xbf16>, vector<64x128xf32> -> vector<64x128xf32>
    %50 = arith.addf %43, %49 : vector<64x128xf32>
    %c9 = arith.constant 9 : index
    %c0_40 = arith.constant 0 : index
    %c0_41 = arith.constant 0 : index
    %51 = vector.load %arg7[%c9, %c0_40, %c0_41] : memref<36x9x128xf32, #tpu.memory_space<vmem>>, vector<8x8x128xf32>
    %52 = vector.shape_cast %51 : vector<8x8x128xf32> to vector<64x128xf32>
    %53 = arith.truncf %52 : vector<64x128xf32> to vector<64x128xbf16>
    %c1_42 = arith.constant 1 : index
    %c0_43 = arith.constant 0 : index
    %c0_44 = arith.constant 0 : index
    %54 = vector.load %arg3[%c1_42, %c0_43, %c0_44] : memref<9x128x128xbf16, #tpu.memory_space<vmem>>, vector<1x128x128xbf16>
    %55 = vector.shape_cast %54 : vector<1x128x128xbf16> to vector<128x128xbf16>
    %cst_45 = arith.constant dense<0.000000e+00> : vector<64x128xf32>
    %56 = tpu.matmul %53, %55, %cst_45 {dimension_numbers = #tpu.dot_dimension_numbers<[1], [0], [0], [1], [0, 0, 1, 1], [], []>} : vector<64x128xbf16>, vector<128x128xbf16>, vector<64x128xf32> -> vector<64x128xf32>
    %57 = arith.addf %50, %56 : vector<64x128xf32>
    %c0_46 = arith.constant 0 : index
    %c1_47 = arith.constant 1 : index
    %c0_48 = arith.constant 0 : index
    %58 = vector.load %arg7[%c0_46, %c1_47, %c0_48] : memref<36x9x128xf32, #tpu.memory_space<vmem>>, vector<8x8x128xf32>
    %59 = vector.shape_cast %58 : vector<8x8x128xf32> to vector<64x128xf32>
    %60 = arith.truncf %59 : vector<64x128xf32> to vector<64x128xbf16>
    %c2_49 = arith.constant 2 : index
    %c0_50 = arith.constant 0 : index
    %c0_51 = arith.constant 0 : index
    %61 = vector.load %arg3[%c2_49, %c0_50, %c0_51] : memref<9x128x128xbf16, #tpu.memory_space<vmem>>, vector<1x128x128xbf16>
    %62 = vector.shape_cast %61 : vector<1x128x128xbf16> to vector<128x128xbf16>
    %cst_52 = arith.constant dense<0.000000e+00> : vector<64x128xf32>
    %63 = tpu.matmul %60, %62, %cst_52 {dimension_numbers = #tpu.dot_dimension_numbers<[1], [0], [0], [1], [0, 0, 1, 1], [], []>} : vector<64x128xbf16>, vector<128x128xbf16>, vector<64x128xf32> -> vector<64x128xf32>
    %64 = arith.addf %57, %63 : vector<64x128xf32>
    %c18_53 = arith.constant 18 : index
    %c0_54 = arith.constant 0 : index
    %c0_55 = arith.constant 0 : index
    %65 = vector.load %arg7[%c18_53, %c0_54, %c0_55] : memref<36x9x128xf32, #tpu.memory_space<vmem>>, vector<8x8x128xf32>
    %66 = vector.shape_cast %65 : vector<8x8x128xf32> to vector<64x128xf32>
    %67 = arith.truncf %66 : vector<64x128xf32> to vector<64x128xbf16>
    %c3_56 = arith.constant 3 : index
    %c0_57 = arith.constant 0 : index
    %c0_58 = arith.constant 0 : index
    %68 = vector.load %arg3[%c3_56, %c0_57, %c0_58] : memref<9x128x128xbf16, #tpu.memory_space<vmem>>, vector<1x128x128xbf16>
    %69 = vector.shape_cast %68 : vector<1x128x128xbf16> to vector<128x128xbf16>
    %cst_59 = arith.constant dense<0.000000e+00> : vector<64x128xf32>
    %70 = tpu.matmul %67, %69, %cst_59 {dimension_numbers = #tpu.dot_dimension_numbers<[1], [0], [0], [1], [0, 0, 1, 1], [], []>} : vector<64x128xbf16>, vector<128x128xbf16>, vector<64x128xf32> -> vector<64x128xf32>
    %71 = arith.addf %64, %70 : vector<64x128xf32>
    %c27_60 = arith.constant 27 : index
    %c0_61 = arith.constant 0 : index
    %c0_62 = arith.constant 0 : index
    %72 = vector.load %arg7[%c27_60, %c0_61, %c0_62] : memref<36x9x128xf32, #tpu.memory_space<vmem>>, vector<8x8x128xf32>
    %73 = vector.shape_cast %72 : vector<8x8x128xf32> to vector<64x128xf32>
    %74 = arith.truncf %73 : vector<64x128xf32> to vector<64x128xbf16>
    %c4_63 = arith.constant 4 : index
    %c0_64 = arith.constant 0 : index
    %c0_65 = arith.constant 0 : index
    %75 = vector.load %arg3[%c4_63, %c0_64, %c0_65] : memref<9x128x128xbf16, #tpu.memory_space<vmem>>, vector<1x128x128xbf16>
    %76 = vector.shape_cast %75 : vector<1x128x128xbf16> to vector<128x128xbf16>
    %cst_66 = arith.constant dense<0.000000e+00> : vector<64x128xf32>
    %77 = tpu.matmul %74, %76, %cst_66 {dimension_numbers = #tpu.dot_dimension_numbers<[1], [0], [0], [1], [0, 0, 1, 1], [], []>} : vector<64x128xbf16>, vector<128x128xbf16>, vector<64x128xf32> -> vector<64x128xf32>
    %78 = arith.addf %71, %77 : vector<64x128xf32>
    %c18_67 = arith.constant 18 : index
    %c1_68 = arith.constant 1 : index
    %c0_69 = arith.constant 0 : index
    %79 = vector.load %arg7[%c18_67, %c1_68, %c0_69] : memref<36x9x128xf32, #tpu.memory_space<vmem>>, vector<8x8x128xf32>
    %80 = vector.shape_cast %79 : vector<8x8x128xf32> to vector<64x128xf32>
    %81 = arith.truncf %80 : vector<64x128xf32> to vector<64x128xbf16>
    %c5 = arith.constant 5 : index
    %c0_70 = arith.constant 0 : index
    %c0_71 = arith.constant 0 : index
    %82 = vector.load %arg3[%c5, %c0_70, %c0_71] : memref<9x128x128xbf16, #tpu.memory_space<vmem>>, vector<1x128x128xbf16>
    %83 = vector.shape_cast %82 : vector<1x128x128xbf16> to vector<128x128xbf16>
    %cst_72 = arith.constant dense<0.000000e+00> : vector<64x128xf32>
    %84 = tpu.matmul %81, %83, %cst_72 {dimension_numbers = #tpu.dot_dimension_numbers<[1], [0], [0], [1], [0, 0, 1, 1], [], []>} : vector<64x128xbf16>, vector<128x128xbf16>, vector<64x128xf32> -> vector<64x128xf32>
    %85 = arith.addf %78, %84 : vector<64x128xf32>
    %c1_73 = arith.constant 1 : index
    %c0_74 = arith.constant 0 : index
    %c0_75 = arith.constant 0 : index
    %86 = vector.load %arg7[%c1_73, %c0_74, %c0_75] : memref<36x9x128xf32, #tpu.memory_space<vmem>>, vector<8x8x128xf32>
    %87 = vector.shape_cast %86 : vector<8x8x128xf32> to vector<64x128xf32>
    %88 = arith.truncf %87 : vector<64x128xf32> to vector<64x128xbf16>
    %c6 = arith.constant 6 : index
    %c0_76 = arith.constant 0 : index
    %c0_77 = arith.constant 0 : index
    %89 = vector.load %arg3[%c6, %c0_76, %c0_77] : memref<9x128x128xbf16, #tpu.memory_space<vmem>>, vector<1x128x128xbf16>
    %90 = vector.shape_cast %89 : vector<1x128x128xbf16> to vector<128x128xbf16>
    %cst_78 = arith.constant dense<0.000000e+00> : vector<64x128xf32>
    %91 = tpu.matmul %88, %90, %cst_78 {dimension_numbers = #tpu.dot_dimension_numbers<[1], [0], [0], [1], [0, 0, 1, 1], [], []>} : vector<64x128xbf16>, vector<128x128xbf16>, vector<64x128xf32> -> vector<64x128xf32>
    %92 = arith.addf %85, %91 : vector<64x128xf32>
    %c10_79 = arith.constant 10 : index
    %c0_80 = arith.constant 0 : index
    %c0_81 = arith.constant 0 : index
    %93 = vector.load %arg7[%c10_79, %c0_80, %c0_81] : memref<36x9x128xf32, #tpu.memory_space<vmem>>, vector<8x8x128xf32>
    %94 = vector.shape_cast %93 : vector<8x8x128xf32> to vector<64x128xf32>
    %95 = arith.truncf %94 : vector<64x128xf32> to vector<64x128xbf16>
    %c7 = arith.constant 7 : index
    %c0_82 = arith.constant 0 : index
    %c0_83 = arith.constant 0 : index
    %96 = vector.load %arg3[%c7, %c0_82, %c0_83] : memref<9x128x128xbf16, #tpu.memory_space<vmem>>, vector<1x128x128xbf16>
    %97 = vector.shape_cast %96 : vector<1x128x128xbf16> to vector<128x128xbf16>
    %cst_84 = arith.constant dense<0.000000e+00> : vector<64x128xf32>
    %98 = tpu.matmul %95, %97, %cst_84 {dimension_numbers = #tpu.dot_dimension_numbers<[1], [0], [0], [1], [0, 0, 1, 1], [], []>} : vector<64x128xbf16>, vector<128x128xbf16>, vector<64x128xf32> -> vector<64x128xf32>
    %99 = arith.addf %92, %98 : vector<64x128xf32>
    %c1_85 = arith.constant 1 : index
    %c1_86 = arith.constant 1 : index
    %c0_87 = arith.constant 0 : index
    %100 = vector.load %arg7[%c1_85, %c1_86, %c0_87] : memref<36x9x128xf32, #tpu.memory_space<vmem>>, vector<8x8x128xf32>
    %101 = vector.shape_cast %100 : vector<8x8x128xf32> to vector<64x128xf32>
    %102 = arith.truncf %101 : vector<64x128xf32> to vector<64x128xbf16>
    %c8 = arith.constant 8 : index
    %c0_88 = arith.constant 0 : index
    %c0_89 = arith.constant 0 : index
    %103 = vector.load %arg3[%c8, %c0_88, %c0_89] : memref<9x128x128xbf16, #tpu.memory_space<vmem>>, vector<1x128x128xbf16>
    %104 = vector.shape_cast %103 : vector<1x128x128xbf16> to vector<128x128xbf16>
    %cst_90 = arith.constant dense<0.000000e+00> : vector<64x128xf32>
    %105 = tpu.matmul %102, %104, %cst_90 {dimension_numbers = #tpu.dot_dimension_numbers<[1], [0], [0], [1], [0, 0, 1, 1], [], []>} : vector<64x128xbf16>, vector<128x128xbf16>, vector<64x128xf32> -> vector<64x128xf32>
    %106 = arith.addf %99, %105 : vector<64x128xf32>
    %107 = vector.broadcast %2 : f32 to vector<64x128xf32>
    %108 = arith.addf %106, %107 : vector<64x128xf32>
    %cst_91 = arith.constant 0.000000e+00 : f32
    %109 = vector.broadcast %cst_91 : f32 to vector<64x128xf32>
    %110 = arith.maximumf %108, %109 : vector<64x128xf32>
    %111 = vector.broadcast %3 : f32 to vector<64x128xf32>
    %112 = arith.addf %110, %111 : vector<64x128xf32>
    %cst_92 = arith.constant 0.000000e+00 : f32
    %113 = vector.broadcast %cst_92 : f32 to vector<10x10x128xf32>
    %c0_93 = arith.constant 0 : index
    %c0_94 = arith.constant 0 : index
    %c0_95 = arith.constant 0 : index
    %114 = vector.load %arg8[%c0_93, %c0_94, %c0_95] : memref<10x10x128xf32, #tpu.memory_space<vmem>>, vector<10x10x128xf32>
    tpu.vector_store %arg8[%c0_93, %c0_94, %c0_95], %113 {strides = array<i32>} : memref<10x10x128xf32, #tpu.memory_space<vmem>>, vector<10x10x128xf32>,
    %115 = vector.shape_cast %112 : vector<64x128xf32> to vector<8x8x128xf32>
    %c1_96 = arith.constant 1 : index
    %c1_97 = arith.constant 1 : index
    %c0_98 = arith.constant 0 : index
    %116 = vector.load %arg8[%c1_96, %c1_97, %c0_98] : memref<10x10x128xf32, #tpu.memory_space<vmem>>, vector<8x8x128xf32>
    tpu.vector_store %arg8[%c1_96, %c1_97, %c0_98], %115 {strides = array<i32>} : memref<10x10x128xf32, #tpu.memory_space<vmem>>, vector<8x8x128xf32>,
    %cst_99 = arith.constant 0.000000e+00 : f32
    %117 = vector.broadcast %cst_99 : f32 to vector<64x128xf32>
    %c0_100 = arith.constant 0 : index
    %c0_101 = arith.constant 0 : index
    %c0_102 = arith.constant 0 : index
    %118 = vector.load %arg8[%c0_100, %c0_101, %c0_102] : memref<10x10x128xf32, #tpu.memory_space<vmem>>, vector<8x8x128xf32>
    %119 = vector.shape_cast %118 : vector<8x8x128xf32> to vector<64x128xf32>
    %120 = arith.truncf %119 : vector<64x128xf32> to vector<64x128xbf16>
    %c0_103 = arith.constant 0 : index
    %c0_104 = arith.constant 0 : index
    %c0_105 = arith.constant 0 : index
    %121 = vector.load %arg4[%c0_103, %c0_104, %c0_105] : memref<9x128x128xbf16, #tpu.memory_space<vmem>>, vector<1x128x128xbf16>
    %122 = vector.shape_cast %121 : vector<1x128x128xbf16> to vector<128x128xbf16>
    %cst_106 = arith.constant dense<0.000000e+00> : vector<64x128xf32>
    %123 = tpu.matmul %120, %122, %cst_106 {dimension_numbers = #tpu.dot_dimension_numbers<[1], [0], [0], [1], [0, 0, 1, 1], [], []>} : vector<64x128xbf16>, vector<128x128xbf16>, vector<64x128xf32> -> vector<64x128xf32>
    %124 = arith.addf %117, %123 : vector<64x128xf32>
    %c0_107 = arith.constant 0 : index
    %c1_108 = arith.constant 1 : index
    %c0_109 = arith.constant 0 : index
    %125 = vector.load %arg8[%c0_107, %c1_108, %c0_109] : memref<10x10x128xf32, #tpu.memory_space<vmem>>, vector<8x8x128xf32>
    %126 = vector.shape_cast %125 : vector<8x8x128xf32> to vector<64x128xf32>
    %127 = arith.truncf %126 : vector<64x128xf32> to vector<64x128xbf16>
    %c1_110 = arith.constant 1 : index
    %c0_111 = arith.constant 0 : index
    %c0_112 = arith.constant 0 : index
    %128 = vector.load %arg4[%c1_110, %c0_111, %c0_112] : memref<9x128x128xbf16, #tpu.memory_space<vmem>>, vector<1x128x128xbf16>
    %129 = vector.shape_cast %128 : vector<1x128x128xbf16> to vector<128x128xbf16>
    %cst_113 = arith.constant dense<0.000000e+00> : vector<64x128xf32>
    %130 = tpu.matmul %127, %129, %cst_113 {dimension_numbers = #tpu.dot_dimension_numbers<[1], [0], [0], [1], [0, 0, 1, 1], [], []>} : vector<64x128xbf16>, vector<128x128xbf16>, vector<64x128xf32> -> vector<64x128xf32>
    %131 = arith.addf %124, %130 : vector<64x128xf32>
    %c0_114 = arith.constant 0 : index
    %c2_115 = arith.constant 2 : index
    %c0_116 = arith.constant 0 : index
    %132 = vector.load %arg8[%c0_114, %c2_115, %c0_116] : memref<10x10x128xf32, #tpu.memory_space<vmem>>, vector<8x8x128xf32>
    %133 = vector.shape_cast %132 : vector<8x8x128xf32> to vector<64x128xf32>
    %134 = arith.truncf %133 : vector<64x128xf32> to vector<64x128xbf16>
    %c2_117 = arith.constant 2 : index
    %c0_118 = arith.constant 0 : index
    %c0_119 = arith.constant 0 : index
    %135 = vector.load %arg4[%c2_117, %c0_118, %c0_119] : memref<9x128x128xbf16, #tpu.memory_space<vmem>>, vector<1x128x128xbf16>
    %136 = vector.shape_cast %135 : vector<1x128x128xbf16> to vector<128x128xbf16>
    %cst_120 = arith.constant dense<0.000000e+00> : vector<64x128xf32>
    %137 = tpu.matmul %134, %136, %cst_120 {dimension_numbers = #tpu.dot_dimension_numbers<[1], [0], [0], [1], [0, 0, 1, 1], [], []>} : vector<64x128xbf16>, vector<128x128xbf16>, vector<64x128xf32> -> vector<64x128xf32>
    %138 = arith.addf %131, %137 : vector<64x128xf32>
    %c1_121 = arith.constant 1 : index
    %c0_122 = arith.constant 0 : index
    %c0_123 = arith.constant 0 : index
    %139 = vector.load %arg8[%c1_121, %c0_122, %c0_123] : memref<10x10x128xf32, #tpu.memory_space<vmem>>, vector<8x8x128xf32>
    %140 = vector.shape_cast %139 : vector<8x8x128xf32> to vector<64x128xf32>
    %141 = arith.truncf %140 : vector<64x128xf32> to vector<64x128xbf16>
    %c3_124 = arith.constant 3 : index
    %c0_125 = arith.constant 0 : index
    %c0_126 = arith.constant 0 : index
    %142 = vector.load %arg4[%c3_124, %c0_125, %c0_126] : memref<9x128x128xbf16, #tpu.memory_space<vmem>>, vector<1x128x128xbf16>
    %143 = vector.shape_cast %142 : vector<1x128x128xbf16> to vector<128x128xbf16>
    %cst_127 = arith.constant dense<0.000000e+00> : vector<64x128xf32>
    %144 = tpu.matmul %141, %143, %cst_127 {dimension_numbers = #tpu.dot_dimension_numbers<[1], [0], [0], [1], [0, 0, 1, 1], [], []>} : vector<64x128xbf16>, vector<128x128xbf16>, vector<64x128xf32> -> vector<64x128xf32>
    %145 = arith.addf %138, %144 : vector<64x128xf32>
    %c1_128 = arith.constant 1 : index
    %c1_129 = arith.constant 1 : index
    %c0_130 = arith.constant 0 : index
    %146 = vector.load %arg8[%c1_128, %c1_129, %c0_130] : memref<10x10x128xf32, #tpu.memory_space<vmem>>, vector<8x8x128xf32>
    %147 = vector.shape_cast %146 : vector<8x8x128xf32> to vector<64x128xf32>
    %148 = arith.truncf %147 : vector<64x128xf32> to vector<64x128xbf16>
    %c4_131 = arith.constant 4 : index
    %c0_132 = arith.constant 0 : index
    %c0_133 = arith.constant 0 : index
    %149 = vector.load %arg4[%c4_131, %c0_132, %c0_133] : memref<9x128x128xbf16, #tpu.memory_space<vmem>>, vector<1x128x128xbf16>
    %150 = vector.shape_cast %149 : vector<1x128x128xbf16> to vector<128x128xbf16>
    %cst_134 = arith.constant dense<0.000000e+00> : vector<64x128xf32>
    %151 = tpu.matmul %148, %150, %cst_134 {dimension_numbers = #tpu.dot_dimension_numbers<[1], [0], [0], [1], [0, 0, 1, 1], [], []>} : vector<64x128xbf16>, vector<128x128xbf16>, vector<64x128xf32> -> vector<64x128xf32>
    %152 = arith.addf %145, %151 : vector<64x128xf32>
    %c1_135 = arith.constant 1 : index
    %c2_136 = arith.constant 2 : index
    %c0_137 = arith.constant 0 : index
    %153 = vector.load %arg8[%c1_135, %c2_136, %c0_137] : memref<10x10x128xf32, #tpu.memory_space<vmem>>, vector<8x8x128xf32>
    %154 = vector.shape_cast %153 : vector<8x8x128xf32> to vector<64x128xf32>
    %155 = arith.truncf %154 : vector<64x128xf32> to vector<64x128xbf16>
    %c5_138 = arith.constant 5 : index
    %c0_139 = arith.constant 0 : index
    %c0_140 = arith.constant 0 : index
    %156 = vector.load %arg4[%c5_138, %c0_139, %c0_140] : memref<9x128x128xbf16, #tpu.memory_space<vmem>>, vector<1x128x128xbf16>
    %157 = vector.shape_cast %156 : vector<1x128x128xbf16> to vector<128x128xbf16>
    %cst_141 = arith.constant dense<0.000000e+00> : vector<64x128xf32>
    %158 = tpu.matmul %155, %157, %cst_141 {dimension_numbers = #tpu.dot_dimension_numbers<[1], [0], [0], [1], [0, 0, 1, 1], [], []>} : vector<64x128xbf16>, vector<128x128xbf16>, vector<64x128xf32> -> vector<64x128xf32>
    %159 = arith.addf %152, %158 : vector<64x128xf32>
    %c2_142 = arith.constant 2 : index
    %c0_143 = arith.constant 0 : index
    %c0_144 = arith.constant 0 : index
    %160 = vector.load %arg8[%c2_142, %c0_143, %c0_144] : memref<10x10x128xf32, #tpu.memory_space<vmem>>, vector<8x8x128xf32>
    %161 = vector.shape_cast %160 : vector<8x8x128xf32> to vector<64x128xf32>
    %162 = arith.truncf %161 : vector<64x128xf32> to vector<64x128xbf16>
    %c6_145 = arith.constant 6 : index
    %c0_146 = arith.constant 0 : index
    %c0_147 = arith.constant 0 : index
    %163 = vector.load %arg4[%c6_145, %c0_146, %c0_147] : memref<9x128x128xbf16, #tpu.memory_space<vmem>>, vector<1x128x128xbf16>
    %164 = vector.shape_cast %163 : vector<1x128x128xbf16> to vector<128x128xbf16>
    %cst_148 = arith.constant dense<0.000000e+00> : vector<64x128xf32>
    %165 = tpu.matmul %162, %164, %cst_148 {dimension_numbers = #tpu.dot_dimension_numbers<[1], [0], [0], [1], [0, 0, 1, 1], [], []>} : vector<64x128xbf16>, vector<128x128xbf16>, vector<64x128xf32> -> vector<64x128xf32>
    %166 = arith.addf %159, %165 : vector<64x128xf32>
    %c2_149 = arith.constant 2 : index
    %c1_150 = arith.constant 1 : index
    %c0_151 = arith.constant 0 : index
    %167 = vector.load %arg8[%c2_149, %c1_150, %c0_151] : memref<10x10x128xf32, #tpu.memory_space<vmem>>, vector<8x8x128xf32>
    %168 = vector.shape_cast %167 : vector<8x8x128xf32> to vector<64x128xf32>
    %169 = arith.truncf %168 : vector<64x128xf32> to vector<64x128xbf16>
    %c7_152 = arith.constant 7 : index
    %c0_153 = arith.constant 0 : index
    %c0_154 = arith.constant 0 : index
    %170 = vector.load %arg4[%c7_152, %c0_153, %c0_154] : memref<9x128x128xbf16, #tpu.memory_space<vmem>>, vector<1x128x128xbf16>
    %171 = vector.shape_cast %170 : vector<1x128x128xbf16> to vector<128x128xbf16>
    %cst_155 = arith.constant dense<0.000000e+00> : vector<64x128xf32>
    %172 = tpu.matmul %169, %171, %cst_155 {dimension_numbers = #tpu.dot_dimension_numbers<[1], [0], [0], [1], [0, 0, 1, 1], [], []>} : vector<64x128xbf16>, vector<128x128xbf16>, vector<64x128xf32> -> vector<64x128xf32>
    %173 = arith.addf %166, %172 : vector<64x128xf32>
    %c2_156 = arith.constant 2 : index
    %c2_157 = arith.constant 2 : index
    %c0_158 = arith.constant 0 : index
    %174 = vector.load %arg8[%c2_156, %c2_157, %c0_158] : memref<10x10x128xf32, #tpu.memory_space<vmem>>, vector<8x8x128xf32>
    %175 = vector.shape_cast %174 : vector<8x8x128xf32> to vector<64x128xf32>
    %176 = arith.truncf %175 : vector<64x128xf32> to vector<64x128xbf16>
    %c8_159 = arith.constant 8 : index
    %c0_160 = arith.constant 0 : index
    %c0_161 = arith.constant 0 : index
    %177 = vector.load %arg4[%c8_159, %c0_160, %c0_161] : memref<9x128x128xbf16, #tpu.memory_space<vmem>>, vector<1x128x128xbf16>
    %178 = vector.shape_cast %177 : vector<1x128x128xbf16> to vector<128x128xbf16>
    %cst_162 = arith.constant dense<0.000000e+00> : vector<64x128xf32>
    %179 = tpu.matmul %176, %178, %cst_162 {dimension_numbers = #tpu.dot_dimension_numbers<[1], [0], [0], [1], [0, 0, 1, 1], [], []>} : vector<64x128xbf16>, vector<128x128xbf16>, vector<64x128xf32> -> vector<64x128xf32>
    %180 = arith.addf %173, %179 : vector<64x128xf32>
    %c0_163 = arith.constant 0 : index
    %c27_164 = arith.constant 27 : index
    %c0_165 = arith.constant 0 : index
    %c0_166 = arith.constant 0 : index
    %181 = vector.load %arg2[%c0_163, %c27_164, %c0_165, %c0_166] : memref<1x36x9x128xf32, #tpu.memory_space<vmem>>, vector<1x8x8x128xf32>
    %182 = vector.shape_cast %181 : vector<1x8x8x128xf32> to vector<8x8x128xf32>
    %183 = vector.broadcast %0 : f32 to vector<8x8x128xf32>
    %184 = arith.addf %182, %183 : vector<8x8x128xf32>
    %cst_167 = arith.constant 0.000000e+00 : f32
    %185 = vector.broadcast %cst_167 : f32 to vector<8x8x128xf32>
    %186 = arith.maximumf %184, %185 : vector<8x8x128xf32>
    %187 = arith.truncf %186 : vector<8x8x128xf32> to vector<8x8x128xbf16>
    %188 = vector.shape_cast %187 : vector<8x8x128xbf16> to vector<64x128xbf16>
    %c0_168 = arith.constant 0 : index
    %c0_169 = arith.constant 0 : index
    %189 = vector.load %arg5[%c0_168, %c0_169] : memref<128x128xbf16, #tpu.memory_space<vmem>>, vector<128x128xbf16>
    %cst_170 = arith.constant dense<0.000000e+00> : vector<64x128xf32>
    %190 = tpu.matmul %188, %189, %cst_170 {dimension_numbers = #tpu.dot_dimension_numbers<[1], [0], [0], [1], [0, 0, 1, 1], [], []>} : vector<64x128xbf16>, vector<128x128xbf16>, vector<64x128xf32> -> vector<64x128xf32>
    %191 = vector.broadcast %4 : f32 to vector<64x128xf32>
    %192 = arith.mulf %180, %191 : vector<64x128xf32>
    %193 = arith.addf %192, %190 : vector<64x128xf32>
    %194 = vector.shape_cast %193 : vector<64x128xf32> to vector<8x8x128xf32>
    %c0_171 = arith.constant 0 : index
    %c0_172 = arith.constant 0 : index
    %c0_173 = arith.constant 0 : index
    %c0_174 = arith.constant 0 : index
    %195 = vector.load %arg6[%c0_171, %c0_172, %c0_173, %c0_174] : memref<1x8x8x128xf32, #tpu.memory_space<vmem>>, vector<1x8x8x128xf32>
    %196 = vector.shape_cast %195 : vector<1x8x8x128xf32> to vector<8x8x128xf32>
    %197 = vector.shape_cast %194 : vector<8x8x128xf32> to vector<1x8x8x128xf32>
    tpu.vector_store %arg6[%c0_171, %c0_172, %c0_173, %c0_174], %197 {strides = array<i32>} : memref<1x8x8x128xf32, #tpu.memory_space<vmem>>, vector<1x8x8x128xf32>,
    return
  }
  func.func @transform_0(%arg0: i32) -> i32 {
    %c0_i32 = arith.constant 0 : i32
    %c0_i32_0 = arith.constant 0 : i32
    return %c0_i32 : i32
  }
  func.func @transform_1(%arg0: i32) -> (i32, i32, i32, i32) {
    %c0_i32 = arith.constant 0 : i32
    %c0_i32_0 = arith.constant 0 : i32
    %c0_i32_1 = arith.constant 0 : i32
    %c0_i32_2 = arith.constant 0 : i32
    return %arg0, %c0_i32, %c0_i32_0, %c0_i32_1 : i32, i32, i32, i32
  }
  func.func @transform_2(%arg0: i32) -> (i32, i32, i32) {
    %c0_i32 = arith.constant 0 : i32
    %c0_i32_0 = arith.constant 0 : i32
    %c0_i32_1 = arith.constant 0 : i32
    %c0_i32_2 = arith.constant 0 : i32
    return %c0_i32, %c0_i32_0, %c0_i32_1 : i32, i32, i32
  }
  func.func @transform_3(%arg0: i32) -> (i32, i32, i32) {
    %c0_i32 = arith.constant 0 : i32
    %c0_i32_0 = arith.constant 0 : i32
    %c0_i32_1 = arith.constant 0 : i32
    %c0_i32_2 = arith.constant 0 : i32
    return %c0_i32, %c0_i32_0, %c0_i32_1 : i32, i32, i32
  }
  func.func @transform_4(%arg0: i32) -> (i32, i32) {
    %c0_i32 = arith.constant 0 : i32
    %c0_i32_0 = arith.constant 0 : i32
    %c0_i32_1 = arith.constant 0 : i32
    return %c0_i32, %c0_i32_0 : i32, i32
  }
  func.func @transform_5(%arg0: i32) -> (i32, i32, i32, i32) {
    %c0_i32 = arith.constant 0 : i32
    %c0_i32_0 = arith.constant 0 : i32
    %c0_i32_1 = arith.constant 0 : i32
    %c0_i32_2 = arith.constant 0 : i32
    return %arg0, %c0_i32, %c0_i32_0, %c0_i32_1 : i32, i32, i32, i32
  }
}

</mosaic_0001>

<bundles_post_ra>
// kernel: _lambda_.2
= control target key start
LH: loop header
LB: loop body
LE: loop exit
PB: predicated region body
PF: predicated region fallthrough
CT: control target
= control target key end

     0   :  { %10 = vsyncpa [#allocation7], 0  ;;  %s5982_s0 = inlined_call_operand.hbm [shape: f32[5], index: 0, kind: input, shape index: {}]   ;;  %s5983_s1 = inlined_call_operand.hbm [shape: f32[2,36,9,128], index: 1, kind: input, shape index: {}]   ;;  %s5984_s2 = inlined_call_operand.hbm [shape: bf16[9,128,128], index: 2, kind: input, shape index: {}]   ;;  %s5985_s3 = inlined_call_operand.hbm [shape: bf16[9,128,128], index: 3, kind: input, shape index: {}]   ;;  %s5986_s4 = inlined_call_operand.hbm [shape: bf16[128,128], index: 4, kind: input, shape index: {}]   ;;  %s5987_s5 = inlined_call_operand.hbm [shape: f32[2,8,8,128], index: 5, kind: output, shape index: {}]  }
   0x1   :  { %11 = vsyncpa [#allocation5], 0 }
   0x2   :  { %13 = vsyncpa [#allocation5 + $0x1], 0 }
   0x3   :  { %14 = vsyncpa [#allocation10], 0 }
   0x4   :  { %15 = vsyncpa [#allocation13], 0 }
   0x5   :  { %16 = vsyncpa [#allocation6], 0 }
   0x6   :  { %18 = vsyncpa [#allocation6 + $0x1], 0  ;;  %s5168_s18 = smov 0   ;;  %s5170_s19 = smov 0  }
   0x7   :  { %s5172_s20 = smov 0   ;;  %s5174_s21 = smov 0  }
   0x8 LB: > { %s5189_s22 = sadd.s32 4294967295, %s5123_s21   ;;  %s3608_s23 = sadd.s32 4294967294, %s5123_s21   ;;  %s5123_s21 = sphi %s5174_s21, %s6012_s21   ;;  %s5119_s20 = sphi %s5172_s20, %s6011_s20   ;;  %s5115_s19 = sphi %s5170_s19, %s6010_s19   ;;  %s5111_s18 = sphi %s5168_s18, %s6009_s18  }
   0x9   : > { %p65_p0 = scmp.ne.s32.totalorder %s5115_s19, %s5111_s18  ;;  %p5988_p1 = scmp.eq.s32.totalorder %s5189_s22, 0 }
   0xa   : > { %p158_p3 = scmp.eq.s32.totalorder %s3608_s23, 1  ;;  %p3609_p5 = scmp.ge.s32.totalorder %s5123_s21, 1 }
   0xb   : > { %p5198_p4 = por %p5988_p1, %p65_p0  ;;  %p165_p7 = scmp.lt.s32.totalorder %s5123_s21, 3 }
   0xc   : > { %p5203_p6 = por %p158_p3, %p65_p0  ;;  %s5125_s27 = smov [#allocation9]  }
   0xd   : > { %s5991_s24 = scalar_select %p5198_p4, 1, 0 }
   0xe   : > { %s5992_s25 = scalar_select %p5203_p6, 1, 0 }
   0xf   : > { %p5208_p8 = pnand %p3609_p5, %p165_p7  ;;  %s186_s28 = sshll.u32 %s5125_s27, 4  ;;  %s5212_s28 = int_to_ptr.vmem [resolvable:$true] %s186_s28 }
  0x10   : > { %s5126_s30 = smov [#allocation11]   ;;  %s4918_s9 = scalar_lea.hbm %s5984_s2, 9216 }
  0x11   : > { %s5993_s26 = scalar_select %p5208_p8, 1, 0 }
  0x12   : > { %p4683_p9 = pneg %p5208_p8  ;;  %s199_s6 = sshll.u32 %s5126_s30, 4  ;;  %s5223_s6 = int_to_ptr.vmem [resolvable:$true] %s199_s6 }
  0x13   : > { %p4919_p12 = scmp.ne.s32.totalorder %s5984_s2, %s4918_s9  ;;  %p4925_p5 = scmp.lt.u32.totalorder %s4918_s9, %s5984_s2 }
  0x14   : > { %p5219_p11 = pnand %p4683_p9, %p5988_p1 }
  0x16   : > { %p5233_p13 = pneg %p5219_p11 }
  0x18   : > { %p4921_p0 = pnand %p5233_p13, %p4919_p12 }
  0x1a   : > { %p4922_p3 = pneg %p4921_p0 }
  0x1c   : > { %p4927_p7 = pnand %p4925_p5, %p4922_p3 }
  0x1e   : > { %4930 = shalt.err (!%p4927_p7)
}
  0x1f   : > { %s4931_s15 = scalar_lea.vmem %s5212_s28, 9216  ;;  %p4939_p2 = scmp.lt.s32.totalorder %s5212_s28, %s5212_s28 }
  0x20   : > { %p4932_p9 = scmp.ne.s32.totalorder %s5212_s28, %s4931_s15  ;;  %p4940_p6 = scmp.lt.s32.totalorder %s4931_s15, %s4931_s15 }
  0x22   : > { %p4934_p10 = pnand %p4932_p9, %p5233_p13  ;;  %p4941_p12 = por %p4940_p6, %p4939_p2 }
  0x24   : > { %p4935_p1 = pneg %p4934_p10 }
  0x26   : > { %p4942_p0 = pnand %p4941_p12, %p4935_p1 }
  0x28   : > { %4945 = shalt.err (!%p4942_p0)
}
  0x29   : > { %s5127_s16 = smov 64   ;;  %s5128_s17 = smov 4  }
  0x2a   : > { %4689 = dma.hbm_to_vmem [thread:$0]  (!%p5219_p11), %s5984_s2, 9216, %s5212_s28, [#allocation10], %s5127_s16, %s5127_s16, %s5128_s17  }
  0x2b   : > { %s4946_s8 = scalar_lea.hbm %s5982_s0, 16 }
  0x2c   : > { %p4947_p1 = scmp.ne.s32.totalorder %s5982_s0, %s4946_s8  ;;  %p4953_p10 = scmp.lt.u32.totalorder %s4946_s8, %s5982_s0 }
  0x2e   : > { %p4949_p2 = pnand %p4947_p1, %p5233_p13 }
  0x30   : > { %p4950_p6 = pneg %p4949_p2 }
  0x32   : > { %p4955_p3 = pnand %p4953_p10, %p4950_p6 }
  0x34   : > { %4958 = shalt.err (!%p4955_p3)
}
  0x35   : > { %s5129_s14 = smov [#allocation4]   ;;  %s4959_s30 = scalar_lea.hbm %s5985_s3, 9216 }
  0x36   : > { %4686 = dma.hbm_to_smem (!%p5219_p11), %s5982_s0, 16, %s5129_s14, [#allocation7]  }
  0x37   : > { %p4960_p5 = scmp.ne.s32.totalorder %s5985_s3, %s4959_s30  ;;  %p4966_p12 = scmp.lt.u32.totalorder %s4959_s30, %s5985_s3 }
  0x39   : > { %p4962_p7 = pnand %p4960_p5, %p5233_p13 }
  0x3b   : > { %p4963_p9 = pneg %p4962_p7 }
  0x3d   : > { %p4968_p0 = pnand %p4966_p12, %p4963_p9 }
  0x3f   : > { %4971 = shalt.err (!%p4968_p0)
}
  0x40   : > { %s4972_s11 = scalar_lea.vmem %s5223_s6, 9216  ;;  %p4980_p10 = scmp.lt.s32.totalorder %s5223_s6, %s5223_s6 }
  0x41   : > { %p4973_p1 = scmp.ne.s32.totalorder %s5223_s6, %s4972_s11  ;;  %p4981_p3 = scmp.lt.s32.totalorder %s4972_s11, %s4972_s11 }
  0x43   : > { %p4975_p2 = pnand %p4973_p1, %p5233_p13  ;;  %p4982_p5 = por %p4981_p3, %p4980_p10 }
  0x45   : > { %p4976_p6 = pneg %p4975_p2 }
  0x47   : > { %p4983_p7 = pnand %p4982_p5, %p4976_p6 }
  0x49   : > { %4986 = shalt.err (!%p4983_p7)
}
  0x4a   : > { %4692 = dma.hbm_to_vmem [thread:$0]  (!%p5219_p11), %s5985_s3, 9216, %s5223_s6, [#allocation10], %s5127_s16, %s5127_s16, %s5128_s17  }
  0x4b   : > { %s5130_s28 = smov [#allocation12]   ;;  %s4987_s30 = scalar_lea.hbm %s5986_s4, 1024 }
  0x4c   : > { %s212_s15 = sshll.u32 %s5130_s28, 4  ;;  %p4988_p9 = scmp.ne.s32.totalorder %s5986_s4, %s4987_s30  ;;  %s213_s15 = int_to_ptr.vmem [resolvable:$true] %s212_s15 }
  0x4d   : > { %p4994_p1 = scmp.lt.u32.totalorder %s4987_s30, %s5986_s4 }
  0x4e   : > { %p4990_p12 = pnand %p4988_p9, %p5233_p13 }
  0x50   : > { %p4991_p0 = pneg %p4990_p12 }
  0x52   : > { %p4996_p2 = pnand %p4994_p1, %p4991_p0 }
  0x54   : > { %4999 = shalt.err (!%p4996_p2)
}
  0x55   : > { %s5000_s6 = scalar_lea.vmem %s213_s15, 1024  ;;  %p5008_p5 = scmp.lt.s32.totalorder %s213_s15, %s213_s15 }
  0x56   : > { %p5001_p6 = scmp.ne.s32.totalorder %s213_s15, %s5000_s6  ;;  %p5009_p7 = scmp.lt.s32.totalorder %s5000_s6, %s5000_s6 }
  0x58   : > { %p5003_p10 = pnand %p5001_p6, %p5233_p13  ;;  %p5010_p4 = por %p5009_p7, %p5008_p5 }
  0x5a   : > { %p5004_p3 = pneg %p5003_p10 }
  0x5c   : > { %p5011_p8 = pnand %p5010_p4, %p5004_p3 }
  0x5e   : > { %5014 = shalt.err (!%p5011_p8)
}
  0x5f   : > { %4695 = dma.hbm_to_vmem [thread:$0]  (!%p5219_p11), %s5986_s4, 1024, %s213_s15, [#allocation13], %s5127_s16, %s5127_s16, %s5128_s17  }
  0x60   : > { %s5321_s12 = sadd.s32 1, %s5123_s21   ;;  %s52_s29 = sadd.s32 1, %s5119_s20 }
  0x61   : > { %s49_s14 = ssub.s32 %s5123_s21, %s5321_s12  ;;  %p59_p4 = scmp.ne.s32.totalorder %s5119_s20, %s5115_s19 }
  0x62   : > { %p50_p8 = scmp.eq.s32.totalorder %s49_s14, 0  ;;  %p60_p13 = scmp.eq.s32.totalorder %s5123_s21, 0 }
  0x63   : > { %p5996_p9 = scmp.eq.s32.totalorder %s5189_s22, 1  ;;  %p4708_p0 = scmp.lt.s32.totalorder %s5123_s21, 2 }
  0x64   : > { %s5337_s23 = scalar_select %p50_p8, %s5119_s20, %s52_s29  }
  0x65   : > { %p5331_p12 = por %p5996_p9, %p59_p4  ;;  %p61_p1 = por %p60_p13, %p59_p4 }
  0x66   : > { %s226_s27 = sand.u32 1, %s5119_s20   ;;  %s4661_s16 = smul.u32 9216, %s5123_s21 }
  0x67   : > { %s4660_s30 = smul.u32 576, %s226_s27  ;;  %p5341_p11 = pnand %p4708_p0, %p61_p1 }
  0x68   : > { %s5348_s9 = scalar_lea.hbm %s5983_s1, %s4661_s16  ;;  %s5352_s6 = scalar_lea.sflag [#allocation5], %s226_s27 }
  0x69   : > { %s230_s8 = scalar_lea.vmem [#allocation8], %s4660_s30  ;;  %s5015_s11 = scalar_lea.hbm %s5348_s9, 9216 }
  0x6a   : > { %s237_s10 = sshll.u32 %s230_s8, 4  ;;  %p5016_p2 = scmp.ne.s32.totalorder %s5348_s9, %s5015_s11  ;;  %s5350_s10 = int_to_ptr.vmem [resolvable:$true] %s237_s10 }
  0x6b   : > { %p5017_p6 = pneg %p5341_p11  ;;  %s5020_s14 = scalar_lea.hbm %s5983_s1, 18432 }
  0x6c   : > { %p5021_p5 = scmp.lt.u32.totalorder %s5348_s9, %s5983_s1  ;;  %p5022_p7 = scmp.lt.u32.totalorder %s5020_s14, %s5015_s11 }
  0x6d   : > { %p5018_p10 = pnand %p5017_p6, %p5016_p2  ;;  %p5024_p8 = scmp.lt.u32.totalorder %s5015_s11, %s5348_s9 }
  0x6e   : > { %p5023_p4 = por %p5022_p7, %p5021_p5 }
  0x6f   : > { %p5019_p3 = pneg %p5018_p10 }
  0x70   : > { %p5025_p13 = por %p5024_p8, %p5023_p4 }
  0x72   : > { %p5026_p9 = pnand %p5025_p13, %p5019_p3 }
  0x74   : > { %5029 = shalt.err (!%p5026_p9)
}
  0x75   : > { %s5030_s27 = scalar_lea.vmem %s5350_s10, 9216  ;;  %s5131_s30 = smov [#allocation8]  }
  0x76   : > { %p5031_p0 = scmp.ne.s32.totalorder %s5350_s10, %s5030_s27  ;;  %s5035_s7 = sshll.u32 %s5131_s30, 4  ;;  %s5036_s7 = int_to_ptr.vmem [resolvable:$false] %s5035_s7 }
  0x77   : > { %s5037_s8 = scalar_lea.vmem %s5036_s7, 18432  ;;  %p5038_p10 = scmp.lt.s32.totalorder %s5350_s10, %s5036_s7 }
  0x78   : > { %p5033_p1 = pnand %p5031_p0, %p5017_p6  ;;  %p5039_p5 = scmp.lt.s32.totalorder %s5037_s8, %s5030_s27 }
  0x7a   : > { %p5034_p2 = pneg %p5033_p1  ;;  %p5040_p7 = por %p5039_p5, %p5038_p10 }
  0x7c   : > { %p5041_p4 = pnand %p5040_p7, %p5034_p2 }
  0x7e   : > { %5044 = shalt.err (!%p5041_p4)
}
  0x7f   : > { %s5132_s11 = smov 128   ;;  %s5133_s13 = smov 8  }
  0x80   : > { %4699 = dma.hbm_to_vmem [thread:$0]  (!%p5341_p11), %s5348_s9, 9216, %s5350_s10, %s5352_s6, %s5132_s11, %s5132_s11, %s5133_s13  }
  0x81   : > { %p5999_p6 = scmp.ne.s32.totalorder %s5993_s26, 0 }
  0x82   : > { %p6000_p3 = scmp.eq.s32.totalorder (!%p5999_p6), %s5189_s22, 0 }
  0x83   : > { %249 = sbr.rel (%p5999_p6) target bundleno = 1185 (0x4a1), region = 40 }
  0x8a   : > { %5090 = dma.done.wait (%p6000_p3), [#allocation7], 16   ;;  %p6001_p8 = pmov %p6000_p3 }
  0x8b   : > { %s5387_s29 = sand.u32 1, %s5115_s19   ;;  %p6002_p11 = scmp.ne.s32.totalorder %s5991_s24, 0 }
  0x8c   : > { %5092 = vsyncadd (%p6001_p8), [#allocation7], 4294967280  ;;  %s4662_s14 = smul.u32 576, %s5387_s29  ;;  %s256_s16 = scalar_lea.sflag [#allocation5], %s5387_s29 }
  0x8e   : > { %s5391_s15 = scalar_lea.vmem [#allocation8], %s4662_s14 }
  0x8f   : > { %5094 = dma.done.wait (%p6002_p11), %s256_s16, 9216  }
  0x90   : > { %5096 = vsyncadd (%p6002_p11), %s256_s16, 4294958080  ;;  %p6003_p13 = pmov %p6000_p3 }
  0x91   : > { %p6004_p9 = pmov %p6000_p3 }
  0x92   : > { %5098 = dma.done.wait (%p6003_p13), [#allocation10], 18432  }
  0x93   : > { %5100 = vsyncadd (%p6004_p9), [#allocation10], 4294948864  ;;  %p6005_p0 = pmov %p6000_p3 }
  0x95   : > { %5102 = dma.done.wait (%p6005_p0), [#allocation13], 1024   ;;  %p6006_p1 = pmov %p6005_p0 }
  0x97   : > { %5104 = vsyncadd (%p6006_p1), [#allocation13], 4294966272 }
  0x98   : > { %276 = sfence }
  0x99   : > { %v4757_v0 = vld [vmem:[#allocation9 + $0x40] sm:$0xff]   ;;  %v4758_v1 = vld [vmem:[#allocation9 + $0x48] sm:$0xff]   ;;  %v5134_v2 = vmov 0.0   ;;  %v4759_v3 = vld [vmem:[#allocation9 + $0x50] sm:$0xff]   ;;  %s300_s24 = sld [smem:[#allocation4]]  ;;  %s3622_s26 = sld [smem:[#allocation4 + $0x1]] }
  0x9a   : > { %323 = vst [vmem:[#allocation2 + $0x90] sm:$0xff] %v5134_v2  ;;  %305 = vst [vmem:[#allocation2] sm:$0xff] %v5134_v2  ;;  %4060 = vmatprep.subr.bf16.mxu0 %v4757_v0  ;;  %v4760_v4 = vld [vmem:[#allocation9 + $0x58] sm:$0xff]   ;;  %v4761_v5 = vld [vmem:[#allocation9 + $0x60] sm:$0xff]   ;;  %s3623_s17 = sld [smem:[#allocation4 + $0x2]]  ;;  %s3624_s9 = sld [smem:[#allocation4 + $0x3]] }
  0x9b   : > { %306 = vst [vmem:[#allocation2 + $0x8] sm:$0x1] %v5134_v2  ;;  %307 = vst [vmem:[#allocation2 + $0x10] sm:$0xff] %v5134_v2  ;;  %4061 = vmatpush3.bf16.msra.mxu0 %v4757_v0  ;;  %v3634_v6 = vld [vmem:[%s5391_s15 + $0xa0] sm:$0xff]  ;;  %v3635_v7 = vld [vmem:[%s5391_s15 + $0xb0] sm:$0xff]  ;;  %s3625_s10 = sld [smem:[#allocation4 + $0x4]] }
  0x9c   : > { %308 = vst [vmem:[#allocation2 + $0x18] sm:$0x1] %v5134_v2  ;;  %309 = vst [vmem:[#allocation2 + $0x20] sm:$0xff] %v5134_v2  ;;  %4062 = vmatprep.subr.bf16.mxu0 %v4758_v1  ;;  %v3636_v8 = vld [vmem:[%s5391_s15 + $0xc0] sm:$0xff]  ;;  %v3637_v13 = vld [vmem:[%s5391_s15 + $0xd0] sm:$0xff]  ;;  %s3621_s6 = sshll.u32 %s5387_s29, 6 }
  0x9d   : > { %310 = vst [vmem:[#allocation2 + $0x28] sm:$0x1] %v5134_v2  ;;  %311 = vst [vmem:[#allocation2 + $0x30] sm:$0xff] %v5134_v2  ;;  %v3638_v14 = vld [vmem:[%s5391_s15 + $0xe0] sm:$0xff]  ;;  %v4762_v15 = vld [vmem:[#allocation9 + $0x68] sm:$0xff]   ;;  %s298_s27 = scalar_lea.vmem [#allocation14], %s3621_s6 }
  0x9e   : > { %312 = vst [vmem:[#allocation2 + $0x38] sm:$0x1] %v5134_v2  ;;  %313 = vst [vmem:[#allocation2 + $0x40] sm:$0xff] %v5134_v2  ;;  %v3639_v22 = vld [vmem:[%s5391_s15 + $0xf0] sm:$0xff]  ;;  %v3640_v23 = vld [vmem:[%s5391_s15 + $0x100] sm:$0xff]  ;;  %s3831_s30 = sshll.u32 %s5189_s22, 10 }
  0x9f   : > { %314 = vst [vmem:[#allocation2 + $0x48] sm:$0x1] %v5134_v2  ;;  %315 = vst [vmem:[#allocation2 + $0x50] sm:$0xff] %v5134_v2  ;;  %4063 = vmatpush3.bf16.msra.mxu0 %v4758_v1  ;;  %v5454_v9 = vstv %s300_s24  ;;  %v5461_v16 = vstv %s3622_s26  ;;  %v3626_v31 = vld [vmem:[%s5391_s15 + $0x11] sm:$0xff]  ;;  %v3627_v37 = vld [vmem:[%s5391_s15 + $0x21] sm:$0xff]  ;;  %s3494_s7 = sshll.u32 %s298_s27, 4  ;;  %s5936_s13 = scalar_lea.hbm %s5987_s5, %s3831_s30  ;;  %s5938_s7 = int_to_ptr.vmem [resolvable:$true] %s3494_s7 }
  0xa0   : > { %316 = vst [vmem:[#allocation2 + $0x58] sm:$0x1] %v5134_v2  ;;  %317 = vst [vmem:[#allocation2 + $0x60] sm:$0xff] %v5134_v2  ;;  %4064 = vmatprep.subr.bf16.mxu0 %v4759_v3  ;;  %v430_v10 = vadd.f32 %v3634_v6, %v5454_v9  ;;  %v431_v11 = vadd.f32 %v3635_v7, %v5454_v9  ;;  %v432_v12 = vadd.f32 %v3636_v8, %v5454_v9  ;;  %v4763_v32 = vld [vmem:[#allocation9 + $0x70] sm:$0xff]   ;;  %v4764_v47 = vld [vmem:[#allocation9 + $0x78] sm:$0xff]   ;;  %s3481_s22 = scalar_lea.sflag [#allocation6], %s5387_s29 }
  0xa1   : > { %318 = vst [vmem:[#allocation2 + $0x68] sm:$0x1] %v5134_v2  ;;  %319 = vst [vmem:[#allocation2 + $0x70] sm:$0xff] %v5134_v2  ;;  %v433_v17 = vadd.f32 %v3637_v13, %v5454_v9  ;;  %v434_v18 = vadd.f32 %v3638_v14, %v5454_v9  ;;  %v435_v26 = vadd.f32 %v3639_v22, %v5454_v9  ;;  %v3628_v38 = vld [vmem:[%s5391_s15 + $0x31] sm:$0xff]  ;;  %v3629_v52 = vld [vmem:[%s5391_s15 + $0x41] sm:$0xff]  ;;  %s5045_s14 = scalar_lea.vmem %s5938_s7, 1024 }
  0xa2   : > { %320 = vst [vmem:[#allocation2 + $0x78] sm:$0x1] %v5134_v2  ;;  %321 = vst [vmem:[#allocation2 + $0x80] sm:$0xff] %v5134_v2  ;;  %v438_v19 = vmax.f32 %v430_v10, 0.0  ;;  %v439_v20 = vmax.f32 %v431_v11, 0.0  ;;  %v440_v21 = vmax.f32 %v432_v12, 0.0  ;;  %v436_v27 = vadd.f32 %v3640_v23, %v5454_v9  ;;  %p5046_p2 = scmp.ne.s32.totalorder %s5938_s7, %s5045_s14 }
  0xa3   : > { %341 = vst [vmem:[#allocation2 + $0x120] sm:$0xff] %v5134_v2  ;;  %343 = vst [vmem:[#allocation2 + $0x130] sm:$0xff] %v5134_v2  ;;  %4065 = vmatpush3.bf16.msra.mxu0 %v4759_v3  ;;  %v441_v24 = vmax.f32 %v433_v17, 0.0  ;;  %v442_v25 = vmax.f32 %v434_v18, 0.0  ;;  %v443_v35 = vmax.f32 %v435_v26, 0.0  ;;  %v387_v40 = vadd.f32 %v3626_v31, %v5454_v9  ;;  %v3630_v53 = vld [vmem:[%s5391_s15 + $0x51] sm:$0xff] }
  0xa4   : > { %345 = vst [vmem:[#allocation2 + $0x140] sm:$0xff] %v5134_v2  ;;  %347 = vst [vmem:[#allocation2 + $0x150] sm:$0xff] %v5134_v2  ;;  %4066 = vmatprep.subr.bf16.mxu0 %v4760_v4  ;;  %v446_v28 = vadd.f32 %v438_v19, %v5461_v16  ;;  %v5471_v29 = vadd.f32 %v439_v20, %v5461_v16  ;;  %v448_v30 = vadd.f32 %v440_v21, %v5461_v16  ;;  %v4765_v54 = vld [vmem:[#allocation9] sm:$0xff]   ;;  %v3632_v58 = vld [vmem:[%s5391_s15 + $0x71] sm:$0xff]  ;;  %p5047_p10 = pnand %p5046_p2, %p5331_p12  ;;  %s5135_s16 = smov [#allocation14]  }
  0xa5   : > { %349 = vst [vmem:[#allocation2 + $0x160] sm:$0xff] %v5134_v2  ;;  %351 = vst [vmem:[#allocation2 + $0x170] sm:$0xff] %v5134_v2  ;;  %v449_v33 = vadd.f32 %v441_v24, %v5461_v16  ;;  %v450_v34 = vadd.f32 %v442_v25, %v5461_v16  ;;  %v444_v36 = vmax.f32 %v436_v27, 0.0  ;;  %v388_v41 = vadd.f32 %v3627_v37, %v5454_v9  ;;  %v3631_v57 = vld [vmem:[%s5391_s15 + $0x61] sm:$0xff]  ;;  %v4767_v10 = vld [vmem:[#allocation9 + $0x10] sm:$0xff]  }
  0xa6   : > { %353 = vst [vmem:[#allocation2 + $0x180] sm:$0xff] %v5134_v2  ;;  %355 = vst [vmem:[#allocation2 + $0x190] sm:$0xff] %v5134_v2  ;;  %v584_v39 = vpack.c.bf16 %v446_v28, %v5134_v2  ;;  %v451_v42 = vadd.f32 %v443_v35, %v5461_v16  ;;  %v389_v44 = vadd.f32 %v3628_v38, %v5454_v9  ;;  %v395_v45 = vmax.f32 %v387_v40, 0.0  ;;  %v4766_v6 = vld [vmem:[#allocation9 + $0x8] sm:$0xff]   ;;  %v4768_v17 = vld [vmem:[#allocation9 + $0x18] sm:$0xff]   ;;  %p5048_p5 = pneg %p5047_p10 }
  0xa7   : > { %1907 = vst [vmem:[#allocation3] sm:$0xff] %v5134_v2  ;;  %1908 = vst [vmem:[#allocation3 + $0x8] sm:$0x3] %v5134_v2  ;;  %4067 = vmatpush3.bf16.msra.mxu0 %v4760_v4  ;;  %v452_v43 = vadd.f32 %v444_v36, %v5461_v16  ;;  %v396_v46 = vmax.f32 %v388_v41, 0.0  ;;  %v390_v55 = vadd.f32 %v3629_v52, %v5454_v9  ;;  %v3642_v14 = vld [vmem:[%s5391_s15 + $0x121] sm:$0xff]  ;;  %v3645_v23 = vld [vmem:[%s5391_s15 + $0x151] sm:$0xff] }
  0xa8   : > { %1909 = vst [vmem:[#allocation3 + $0x10] sm:$0xff] %v5134_v2  ;;  %1910 = vst [vmem:[#allocation3 + $0x18] sm:$0x3] %v5134_v2  ;;  %4068 = vmatprep.subr.bf16.mxu0 %v4761_v5  ;;  %4076 = vmatprep.mubr.bf16.mxu0 %v584_v39  ;;  %v397_v48 = vmax.f32 %v389_v44, 0.0  ;;  %v5487_v49 = vadd.f32 %v5461_v16, %v395_v45  ;;  %v391_v56 = vadd.f32 %v3630_v53, %v5454_v9  ;;  %v3644_v20 = vld [vmem:[%s5391_s15 + $0x141] sm:$0xff]  ;;  %v3649_v38 = vld [vmem:[%s5391_s15 + $0x191] sm:$0xff] }
  0xa9   : > { %1911 = vst [vmem:[#allocation3 + $0x20] sm:$0xff] %v5134_v2  ;;  %1912 = vst [vmem:[#allocation3 + $0x28] sm:$0x3] %v5134_v2  ;;  %v5490_v50 = vadd.f32 %v5461_v16, %v396_v46  ;;  %v398_v59 = vmax.f32 %v390_v55, 0.0  ;;  %v392_v61 = vadd.f32 %v3631_v57, %v5454_v9  ;;  %v393_v62 = vadd.f32 %v3632_v58, %v5454_v9  ;;  %v4769_v25 = vld [vmem:[#allocation9 + $0x20] sm:$0xff]   ;;  %v4770_v31 = vld [vmem:[#allocation9 + $0x28] sm:$0xff]  }
  0xaa   : > { %1913 = vst [vmem:[#allocation3 + $0x30] sm:$0xff] %v5134_v2  ;;  %1914 = vst [vmem:[#allocation3 + $0x38] sm:$0x3] %v5134_v2  ;;  %v5493_v51 = vadd.f32 %v5461_v16, %v397_v48  ;;  %v399_v60 = vmax.f32 %v391_v56, 0.0  ;;  %v585_v63 = vpack.c.bf16 %v448_v30, %v5471_v29  ;;  %v586_v0 = vpack.c.bf16 %v450_v34, %v449_v33  ;;  %v3648_v37 = vld [vmem:[%s5391_s15 + $0x181] sm:$0xff]  ;;  %v4771_v45 = vld [vmem:[#allocation9 + $0x30] sm:$0xff]  }
  0xab   : > { %1915 = vst [vmem:[#allocation3 + $0x40] sm:$0xff] %v5134_v2  ;;  %1916 = vst [vmem:[#allocation3 + $0x48] sm:$0x3] %v5134_v2  ;;  %4069 = vmatpush3.bf16.msra.mxu0 %v4761_v5  ;;  %v5508_v1 = vadd.f32 %v5461_v16, %v398_v59  ;;  %v400_v4 = vmax.f32 %v392_v61, 0.0  ;;  %v401_v5 = vmax.f32 %v393_v62, 0.0  ;;  %v587_v12 = vpack.c.bf16 %v452_v43, %v451_v42  ;;  %v3651_v44 = vld [vmem:[%s5391_s15 + $0x1c0] sm:$0xff] }
  0xac   : > { %1917 = vst [vmem:[#allocation3 + $0x50] sm:$0xff] %v5134_v2  ;;  %1918 = vst [vmem:[#allocation3 + $0x58] sm:$0x3] %v5134_v2  ;;  %4070 = vmatprep.subr.bf16.mxu0 %v4762_v15  ;;  %v5511_v3 = vadd.f32 %v5461_v16, %v399_v60  ;;  %v472_v18 = vadd.f32 %v3642_v14, %v5454_v9  ;;  %v474_v24 = vadd.f32 %v3644_v20, %v5454_v9  ;;  %v3652_v55 = vld [vmem:[%s5391_s15 + $0x1d0] sm:$0xff]  ;;  %v3653_v59 = vld [vmem:[%s5391_s15 + $0x1e0] sm:$0xff] }
  0xad   : > { %1919 = vst [vmem:[#allocation3 + $0x60] sm:$0xff] %v5134_v2  ;;  %1920 = vst [vmem:[#allocation3 + $0x68] sm:$0x3] %v5134_v2  ;;  %v5516_v7 = vadd.f32 %v5461_v16, %v400_v4  ;;  %v5519_v8 = vadd.f32 %v5461_v16, %v401_v5  ;;  %v478_v39 = vadd.f32 %v3648_v37, %v5454_v9  ;;  %v3654_v20 = vld [vmem:[%s5391_s15 + $0x1f0] sm:$0xff] }
  0xae   : > { %1921 = vst [vmem:[#allocation3 + $0x70] sm:$0xff] %v5134_v2  ;;  %1922 = vst [vmem:[#allocation3 + $0x78] sm:$0x3] %v5134_v2  ;;  %v480_v21 = vmax.f32 %v472_v18, 0.0  ;;  %v515_v48 = vadd.f32 %v3651_v44, %v5454_v9  ;;  %v516_v61 = vadd.f32 %v3652_v55, %v5454_v9  ;;  %v517_v62 = vadd.f32 %v3653_v59, %v5454_v9  ;;  %v831_v44 = vld [vmem:[#allocation2 + $0x1] sm:$0xff] }
  0xaf   : > { %1923 = vst [vmem:[#allocation3 + $0x80] sm:$0xff] %v5134_v2  ;;  %1924 = vst [vmem:[#allocation3 + $0x88] sm:$0x3] %v5134_v2  ;;  %4071 = vmatpush3.bf16.msra.mxu0 %v4762_v15  ;;  %v3643_v15 = vld [vmem:[%s5391_s15 + $0x131] sm:$0xff]  ;;  %v486_v46 = vmax.f32 %v478_v39, 0.0  ;;  %v839_v59 = vpack.c.bf16 %v5487_v49, %v831_v44  ;;  %v4789_v44 = vld [vmem:[#allocation9 + $0x100] sm:$0xff]  }
  0xb0   : > { %1925 = vst [vmem:[#allocation3 + $0x90] sm:$0xff] %v5134_v2  ;;  %1926 = vst [vmem:[#allocation3 + $0x98] sm:$0x3] %v5134_v2  ;;  %4072 = vmatprep.subr.bf16.mxu0 %v4763_v32  ;;  %v473_v19 = vadd.f32 %v3643_v15, %v5454_v9  ;;  %v5536_v26 = vadd.f32 %v480_v21, %v5461_v16  ;;  %v523_v58 = vmax.f32 %v515_v48, 0.0  ;;  %v3655_v21 = vld [vmem:[%s5391_s15 + $0x200] sm:$0xff] }
  0xb1   : > { %455 = vst [vmem:[#allocation2 + $0xa0] sm:$0xff] %v446_v28  ;;  %456 = vst [vmem:[#allocation2 + $0xb0] sm:$0xff] %v5471_v29  ;;  %v482_v28 = vmax.f32 %v474_v24, 0.0  ;;  %v5571_v56 = vadd.f32 %v486_v46, %v5461_v16  ;;  %v519_v24 = vadd.f32 %v3655_v21, %v5454_v9  ;;  %v4782_v21 = vld [vmem:[#allocation9 + $0xc8] sm:$0xff]  }
  0xb2   : > { %457 = vst [vmem:[#allocation2 + $0xc0] sm:$0xff] %v448_v30  ;;  %458 = vst [vmem:[#allocation2 + $0xd0] sm:$0xff] %v449_v33  ;;  %v481_v22 = vmax.f32 %v473_v19, 0.0  ;;  %v3646_v33 = vld [vmem:[%s5391_s15 + $0x161] sm:$0xff]  ;;  %v5586_v4 = vadd.f32 %v523_v58, %v5461_v16  ;;  %v4776_v58 = vld [vmem:[#allocation9 + $0x98] sm:$0xff]  }
  0xb3   : > { %459 = vst [vmem:[#allocation2 + $0xe0] sm:$0xff] %v450_v34  ;;  %460 = vst [vmem:[#allocation2 + $0xf0] sm:$0xff] %v451_v42  ;;  %4073 = vmatpush3.bf16.msra.mxu0 %v4763_v32  ;;  %v5544_v30 = vadd.f32 %v482_v28, %v5461_v16  ;;  %v3647_v34 = vld [vmem:[%s5391_s15 + $0x171] sm:$0xff]  ;;  %v476_v35 = vadd.f32 %v3646_v33, %v5454_v9  ;;  %v479_v42 = vadd.f32 %v3649_v38, %v5454_v9  ;;  %v3657_v33 = vld [vmem:[%s5391_s15 + $0x220] sm:$0xff] }
  0xb4   : > { %461 = vst [vmem:[#allocation2 + $0x100] sm:$0xff] %v452_v43  ;;  %413 = vst [vmem:[#allocation2 + $0x11] sm:$0xff] %v5487_v49  ;;  %4074 = vmatprep.subr.bf16.mxu0 %v4764_v47  ;;  %v5539_v27 = vadd.f32 %v481_v22, %v5461_v16  ;;  %v477_v36 = vadd.f32 %v3647_v34, %v5454_v9  ;;  %v3650_v43 = vld [vmem:[%s5391_s15 + $0x1b0] sm:$0xff] }
  0xb5   : > { %414 = vst [vmem:[#allocation2 + $0x21] sm:$0xff] %v5490_v50  ;;  %415 = vst [vmem:[#allocation2 + $0x31] sm:$0xff] %v5493_v51  ;;  %v484_v40 = vmax.f32 %v476_v35, 0.0  ;;  %v4774_v35 = vld [vmem:[#allocation9 + $0x88] sm:$0xff]  }
  0xb6   : > { %416 = vst [vmem:[#allocation2 + $0x41] sm:$0xff] %v5508_v1  ;;  %417 = vst [vmem:[#allocation2 + $0x51] sm:$0xff] %v5511_v3  ;;  %v485_v41 = vmax.f32 %v477_v36, 0.0  ;;  %v521_v36 = vadd.f32 %v3657_v33, %v5454_v9  ;;  %v1289_v37 = vpack.c.bf16 %v5539_v27, %v5536_v26 }
  0xb7   : > { %4075 = vmatpush3.bf16.msra.mxu0 %v4764_v47  ;;  %418 = vst [vmem:[#allocation2 + $0x61] sm:$0xff] %v5516_v7  ;;  %419 = vst [vmem:[#allocation2 + $0x71] sm:$0xff] %v5519_v8  ;;  %v514_v47 = vadd.f32 %v3650_v43, %v5454_v9  ;;  %v5564_v52 = vadd.f32 %v484_v40, %v5461_v16 }
  0xb8   : > { %4084 = vmatprep.subr.bf16.mxu0 %v4765_v54  ;;  %497 = vst [vmem:[#allocation2 + $0x121] sm:$0xff] %v5536_v26  ;;  %498 = vst [vmem:[#allocation2 + $0x131] sm:$0xff] %v5539_v27  ;;  %v5567_v53 = vadd.f32 %v485_v41, %v5461_v16  ;;  %v4804_v26 = vld [vmem:[#allocation9 + $0x178] sm:$0xff]   ;;  %v4805_v27 = vld [vmem:[#allocation9 + $0x180] sm:$0xff]  }
  0xb9   : > { %499 = vst [vmem:[#allocation2 + $0x141] sm:$0xff] %v5544_v30  ;;  %v522_v57 = vmax.f32 %v514_v47, 0.0  ;;  %501 = vst [vmem:[#allocation2 + $0x161] sm:$0xff] %v5564_v52 }
  0xba   : > { %4077 = vmatmul.mubr.bf16.vlgmr.msra.gmra.mrb[0].mxu0 %v585_v63  ;;  %502 = vst [vmem:[#allocation2 + $0x171] sm:$0xff] %v5567_v53  ;;  %v4772_v63 = vld [vmem:[#allocation9 + $0x38] sm:$0xff]   ;;  %503 = vst [vmem:[#allocation2 + $0x181] sm:$0xff] %v5571_v56 }
  0xbb   : > { %4085 = vmatpush3.bf16.msra.mxu0 %v4765_v54  ;;  %4080 = vmatprep.mubr.bf16.mxu0 %v586_v0  ;;  %v5523_v11 = vld [vmem:[#allocation2 + $0x10] sm:$0xff]  ;;  %v487_v54 = vmax.f32 %v479_v42, 0.0  ;;  %v5583_v0 = vadd.f32 %v522_v57, %v5461_v16 }
  0xbc   : > { %4086 = vmatprep.subr.bf16.mxu0 %v4766_v6  ;;  %v555_v13 = vpack.c.bf16 %v5523_v11, %v5134_v2  ;;  %v475_v2 = vadd.f32 %v3645_v23, %v5454_v9  ;;  %v5588_v5 = vld [vmem:[#allocation2 + $0x20] sm:$0xff]  ;;  %v518_v23 = vadd.f32 %v3654_v20, %v5454_v9  ;;  %v4775_v42 = vld [vmem:[#allocation9 + $0x90] sm:$0xff]   ;;  %v840_v20 = vpack.c.bf16 %v5493_v51, %v5490_v50  ;;  %v4784_v51 = vld [vmem:[#allocation9 + $0xd8] sm:$0xff]  }
  0xbd   : > { %v5577_v60 = vadd.f32 %v487_v54, %v5461_v16  ;;  %v1139_v14 = vpack.c.bf16 %v5586_v4, %v5583_v0  ;;  %v5595_v15 = vld [vmem:[#allocation2 + $0x40] sm:$0xff]  ;;  %v5603_v19 = vld [vmem:[#allocation2 + $0x50] sm:$0xff]  ;;  %v842_v50 = vpack.c.bf16 %v5519_v8, %v5516_v7  ;;  %v4788_v8 = vld [vmem:[#allocation9 + $0xf8] sm:$0xff]  }
  0xbe   : > { %v483_v29 = vmax.f32 %v475_v2, 0.0  ;;  %v557_v28 = vpack.c.bf16 %v5603_v19, %v5595_v15  ;;  %v5629_v43 = vld [vmem:[#allocation2 + $0x60] sm:$0xff]  ;;  %v5631_v46 = vld [vmem:[#allocation2 + $0x70] sm:$0xff]  ;;  %v4798_v4 = vld [vmem:[#allocation9 + $0x148] sm:$0xff]  }
  0xbf   : > { %4087 = vmatpush3.bf16.msra.mxu0 %v4766_v6  ;;  %504 = vst [vmem:[#allocation2 + $0x191] sm:$0xff] %v5577_v60  ;;  %v524_v6 = vmax.f32 %v516_v61, 0.0  ;;  %v558_v55 = vpack.c.bf16 %v5631_v46, %v5629_v43  ;;  %v4777_v61 = vld [vmem:[#allocation9 + $0xa0] sm:$0xff]   ;;  %v1292_v49 = vpack.c.bf16 %v5577_v60, %v5571_v56  ;;  %v4787_v7 = vld [vmem:[#allocation9 + $0xf0] sm:$0xff]   ;;  %v1441_v60 = vpack.c.bf16 %v5629_v43, %v5603_v19  ;;  %v4820_v43 = vld [vmem:[#allocation9 + $0x1f8] sm:$0xff]  }
  0xc0   : > { %4088 = vmatprep.subr.bf16.mxu0 %v4767_v10  ;;  %v5547_v32 = vadd.f32 %v483_v29, %v5461_v16  ;;  %v526_v29 = vmax.f32 %v518_v23, 0.0  ;;  %v841_v23 = vpack.c.bf16 %v5511_v3, %v5508_v1  ;;  %v3633_v3 = vld [vmem:[%s5391_s15 + $0x81] sm:$0xff] }
  0xc1   : > { %v394_v33 = vadd.f32 %v3633_v3, %v5454_v9  ;;  %v4797_v0 = vld [vmem:[#allocation9 + $0x140] sm:$0xff]  }
  0xc2   : > { %4081 = vmatmul.mubr.bf16.gmra.mrb[4].mxu0 %v587_v12  ;;  %500 = vst [vmem:[#allocation2 + $0x151] sm:$0xff] %v5547_v32  ;;  %v4773_v12 = vld [vmem:[#allocation9 + $0x80] sm:$0xff]   ;;  %v1290_v38 = vpack.c.bf16 %v5547_v32, %v5544_v30  ;;  %v5624_v39 = vadd.f32 %v526_v29, %v5461_v16  ;;  %v982_v29 = vld [vmem:[#allocation2 + $0x130] sm:$0xff]  ;;  %v4810_v32 = vld [vmem:[#allocation9 + $0x1a8] sm:$0xff]  }
  0xc3   : > { %4089 = vmatpush3.bf16.msra.mxu0 %v4767_v10  ;;  %4100 = vmatprep.mubr.bf16.mxu0 %v555_v13  ;;  %v525_v10 = vmax.f32 %v517_v62, 0.0  ;;  %v5591_v13 = vld [vmem:[#allocation2 + $0x30] sm:$0xff]  ;;  %v4778_v62 = vld [vmem:[#allocation9 + $0xa8] sm:$0xff]   ;;  %v4829_v3 = vld [vmem:[#allocation11 + $0x40] sm:$0xff]  }
  0xc4   : > { %4090 = vmatprep.subr.bf16.mxu0 %v4768_v17  ;;  %v556_v2 = vpack.c.bf16 %v5591_v13, %v5588_v5  ;;  %4276 = vmatprep.subr.bf16.mxu1 %v4829_v3  ;;  %v4809_v30 = vld [vmem:[#allocation9 + $0x1a0] sm:$0xff]  }
  0xc5   : > { %v5601_v18 = vadd.f32 %v525_v10, %v5461_v16  ;;  %v1291_v10 = vpack.c.bf16 %v5567_v53, %v5564_v52  ;;  %4277 = vmatpush3.bf16.msra.mxu1 %v4829_v3  ;;  %v4811_v52 = vld [vmem:[#allocation9 + $0x1b0] sm:$0xff]   ;;  %v4812_v53 = vld [vmem:[#allocation9 + $0x1b8] sm:$0xff]   ;;  %v4813_v56 = vld [vmem:[#allocation9 + $0x1c0] sm:$0xff]   ;;  %v1881_v3 = vstv %s3623_s17 }
  0xc6   : > { %v4817_v19 = vld [vmem:[#allocation9 + $0x1e0] sm:$0xff]  }
  0xc7   : > { %4091 = vmatpush3.bf16.msra.mxu0 %v4768_v17  ;;  %v5598_v17 = vadd.f32 %v524_v6, %v5461_v16  ;;  %v4780_v6 = vld [vmem:[#allocation9 + $0xb8] sm:$0xff]  }
  0xc8   : > { %4092 = vmatprep.subr.bf16.mxu0 %v4769_v25 }
  0xc9   : > { %v1140_v22 = vpack.c.bf16 %v5601_v18, %v5598_v17  ;;  %v4801_v17 = vld [vmem:[#allocation9 + $0x160] sm:$0xff]   ;;  %v4831_v18 = vld [vmem:[#allocation11 + $0x50] sm:$0xff]  }
  0xcb   : > { %4093 = vmatpush3.bf16.msra.mxu0 %v4769_v25  ;;  %v3656_v25 = vld [vmem:[%s5391_s15 + $0x210] sm:$0xff] }
  0xcc   : > { %4094 = vmatprep.subr.bf16.mxu0 %v4770_v31  ;;  %v520_v34 = vadd.f32 %v3656_v25, %v5454_v9  ;;  %v4783_v25 = vld [vmem:[#allocation9 + $0xd0] sm:$0xff]  }
  0xce   : > { %v528_v41 = vmax.f32 %v520_v34, 0.0  ;;  %v402_v34 = vmax.f32 %v394_v33, 0.0  ;;  %v1585_v33 = vld [vmem:[#allocation2 + $0xe0] sm:$0xff] }
  0xcf   : > { %4095 = vmatpush3.bf16.msra.mxu0 %v4770_v31  ;;  %v527_v31 = vmax.f32 %v519_v24, 0.0  ;;  %v1439_v24 = vpack.c.bf16 %v5588_v5, %v5523_v11  ;;  %v4814_v11 = vld [vmem:[#allocation9 + $0x1c8] sm:$0xff]  }
  0xd0   : > { %4096 = vmatprep.subr.bf16.mxu0 %v4771_v45  ;;  %v5636_v48 = vadd.f32 %v528_v41, %v5461_v16  ;;  %v983_v41 = vld [vmem:[#allocation2 + $0x140] sm:$0xff] }
  0xd1   : > { %v5627_v40 = vadd.f32 %v527_v31, %v5461_v16  ;;  %v4785_v31 = vld [vmem:[#allocation9 + $0xe0] sm:$0xff]  }
  0xd3   : > { %4097 = vmatpush3.bf16.msra.mxu0 %v4771_v45  ;;  %v529_v45 = vmax.f32 %v521_v36, 0.0  ;;  %v1141_v47 = vpack.c.bf16 %v5627_v40, %v5624_v39  ;;  %v5663_v36 = vadd.f32 %v5461_v16, %v402_v34  ;;  %v4832_v39 = vld [vmem:[#allocation11 + $0x58] sm:$0xff]   ;;  %v4803_v40 = vld [vmem:[#allocation9 + $0x170] sm:$0xff]  }
  0xd4   : > { %4098 = vmatprep.subr.bf16.mxu0 %v4772_v63  ;;  %v4909_v34 = vld [vmem:[#allocation2 + $0xd0] sm:$0xff] }
  0xd5   : > { %v5639_v54 = vadd.f32 %v529_v45, %v5461_v16  ;;  %420 = vst [vmem:[#allocation2 + $0x81] sm:$0xff] %v5663_v36  ;;  %v985_v45 = vld [vmem:[#allocation2 + $0x160] sm:$0xff] }
  0xd7   : > { %4099 = vmatpush3.bf16.msra.mxu0 %v4772_v63  ;;  %v1142_v57 = vpack.c.bf16 %v5639_v54, %v5636_v48  ;;  %v4779_v63 = vld [vmem:[#allocation9 + $0xb0] sm:$0xff]   ;;  %v4808_v48 = vld [vmem:[#allocation9 + $0x198] sm:$0xff]   ;;  %v1581_v54 = vld [vmem:[#allocation2 + $0xa0] sm:$0xff] }
  0xd8   : > { %4108 = vmatprep.subr.bf16.mxu0 %v4773_v12 }
  0xda   : > { %4101 = vmatmul.mubr.bf16.vlgmr.msra.gmra.mrb[0].mxu0 %v556_v2  ;;  %v1440_v2 = vpack.c.bf16 %v5595_v15, %v5591_v13  ;;  %v4818_v13 = vld [vmem:[#allocation9 + $0x1e8] sm:$0xff]   ;;  %v4819_v15 = vld [vmem:[#allocation9 + $0x1f0] sm:$0xff]  }
  0xdb   : > { %4109 = vmatpush3.bf16.msra.mxu0 %v4773_v12  ;;  %4104 = vmatprep.mubr.bf16.mxu0 %v557_v28  ;;  %v4781_v12 = vld [vmem:[#allocation9 + $0xc0] sm:$0xff]  }
  0xdc   : > { %4110 = vmatprep.subr.bf16.mxu0 %v4774_v35  ;;  %v981_v28 = vld [vmem:[#allocation2 + $0x120] sm:$0xff] }
  0xdd   : > { %v989_v1 = vpack.c.bf16 %v982_v29, %v981_v28  ;;  %v4795_v29 = vld [vmem:[#allocation9 + $0x130] sm:$0xff]   ;;  %v1438_v5 = vld [vmem:[#allocation2 + $0x80] sm:$0xff] }
  0xdf   : > { %4111 = vmatpush3.bf16.msra.mxu0 %v4774_v35  ;;  %v4786_v35 = vld [vmem:[#allocation9 + $0xe8] sm:$0xff]  }
  0xe0   : > { %4112 = vmatprep.subr.bf16.mxu0 %v4775_v42 }
  0xe2   : > { %4105 = vmatmul.mubr.bf16.gmra.mrb[4].mxu0 %v558_v55  ;;  %v986_v55 = vld [vmem:[#allocation2 + $0x170] sm:$0xff] }
  0xe3   : > { %4113 = vmatpush3.bf16.msra.mxu0 %v4775_v42  ;;  %4124 = vmatprep.mubr.bf16.mxu0 %v839_v59  ;;  %v984_v42 = vld [vmem:[#allocation2 + $0x150] sm:$0xff]  ;;  %v991_v59 = vpack.c.bf16 %v986_v55, %v985_v45 }
  0xe4   : > { %4114 = vmatprep.subr.bf16.mxu0 %v4776_v58  ;;  %v1731_v45 = vld [vmem:[#allocation2 + $0x11] sm:$0xff] }
  0xe7   : > { %4115 = vmatpush3.bf16.msra.mxu0 %v4776_v58  ;;  %v990_v58 = vpack.c.bf16 %v984_v42, %v983_v41  ;;  %v4822_v41 = vld [vmem:[#allocation9 + $0x208] sm:$0xff]   ;;  %v1587_v42 = vld [vmem:[#allocation2 + $0x100] sm:$0xff] }
  0xe8   : > { %4116 = vmatprep.subr.bf16.mxu0 %v4777_v61 }
  0xeb   : > { %4117 = vmatpush3.bf16.msra.mxu0 %v4777_v61  ;;  %v4790_v61 = vld [vmem:[#allocation9 + $0x108] sm:$0xff]  }
  0xec   : > { %4118 = vmatprep.subr.bf16.mxu0 %v4778_v62 }
  0xef   : > { %4119 = vmatpush3.bf16.msra.mxu0 %v4778_v62  ;;  %v987_v62 = vld [vmem:[#allocation2 + $0x180] sm:$0xff] }
  0xf0   : > { %4120 = vmatprep.subr.bf16.mxu0 %v4779_v63 }
  0xf3   : > { %4121 = vmatpush3.bf16.msra.mxu0 %v4779_v63  ;;  %v4791_v63 = vld [vmem:[#allocation9 + $0x110] sm:$0xff]  }
  0xf4   : > { %4122 = vmatprep.subr.bf16.mxu0 %v4780_v6 }
  0xf7   : > { %4123 = vmatpush3.bf16.msra.mxu0 %v4780_v6  ;;  %v988_v6 = vld [vmem:[#allocation2 + $0x190] sm:$0xff] }
  0xf8   : > { %4132 = vmatprep.subr.bf16.mxu0 %v4781_v12 }
  0xfa   : > { %4125 = vmatmul.mubr.bf16.vlgmr.msra.gmra.mrb[0].mxu0 %v840_v20  ;;  %v4792_v20 = vld [vmem:[#allocation9 + $0x118] sm:$0xff]  }
  0xfb   : > { %4133 = vmatpush3.bf16.msra.mxu0 %v4781_v12  ;;  %4128 = vmatprep.mubr.bf16.mxu0 %v841_v23  ;;  %v992_v12 = vpack.c.bf16 %v988_v6, %v987_v62  ;;  %v4794_v23 = vld [vmem:[#allocation9 + $0x128] sm:$0xff]   ;;  %v4825_v62 = vld [vmem:[#allocation9 + $0x220] sm:$0xff]   ;;  %v4827_v6 = vld [vmem:[#allocation9 + $0x230] sm:$0xff]  }
  0xfc   : > { %4134 = vmatprep.subr.bf16.mxu0 %v4782_v21 }
  0xff   : > { %4135 = vmatpush3.bf16.msra.mxu0 %v4782_v21  ;;  %v4793_v21 = vld [vmem:[#allocation9 + $0x120] sm:$0xff]  }
 0x100   : > { %4136 = vmatprep.subr.bf16.mxu0 %v4783_v25 }
 0x102   : > { %4129 = vmatmul.mubr.bf16.gmra.mrb[4].mxu0 %v842_v50 }
 0x103   : > { %4137 = vmatpush3.bf16.msra.mxu0 %v4783_v25  ;;  %4148 = vmatprep.mubr.bf16.mxu0 %v989_v1  ;;  %v3641_v25 = vld [vmem:[%s5391_s15 + $0x110] sm:$0xff]  ;;  %v4796_v1 = vld [vmem:[#allocation9 + $0x138] sm:$0xff]  }
 0x104   : > { %4138 = vmatprep.subr.bf16.mxu0 %v4784_v51  ;;  %v437_v28 = vadd.f32 %v3641_v25, %v5454_v9  ;;  %v4914_v25 = vld [vmem:[#allocation2 + $0x51] sm:$0xff] }
 0x106   : > { %v445_v50 = vmax.f32 %v437_v28, 0.0  ;;  %v4915_v28 = vld [vmem:[#allocation2 + $0x61] sm:$0xff] }
 0x107   : > { %4139 = vmatpush3.bf16.msra.mxu0 %v4784_v51 }
 0x108   : > { %4140 = vmatprep.subr.bf16.mxu0 %v4785_v31  ;;  %v5672_v51 = vadd.f32 %v445_v50, %v5461_v16  ;;  %v4799_v16 = vld [vmem:[#allocation9 + $0x150] sm:$0xff]  }
 0x109   : > { %v4916_v50 = vld [vmem:[#allocation2 + $0x71] sm:$0xff] }
 0x10a   : > { %v1592_v55 = vpack.c.bf16 %v5672_v51, %v1587_v42  ;;  %v1742_v51 = vpack.c.bf16 %v5663_v36, %v4916_v50 }
 0x10b   : > { %4141 = vmatpush3.bf16.msra.mxu0 %v4785_v31  ;;  %v4830_v31 = vld [vmem:[#allocation11 + $0x48] sm:$0xff]  }
 0x10c   : > { %4142 = vmatprep.subr.bf16.mxu0 %v4786_v35  ;;  %4278 = vmatprep.subr.bf16.mxu1 %v4830_v31 }
 0x10d   : > { %4279 = vmatpush3.bf16.msra.mxu1 %v4830_v31 }
 0x10e   : > { %4280 = vmatprep.subr.bf16.mxu1 %v4831_v18 }
 0x10f   : > { %4143 = vmatpush3.bf16.msra.mxu0 %v4786_v35 }
 0x110   : > { %4144 = vmatprep.subr.bf16.mxu0 %v4787_v7 }
 0x111   : > { %4281 = vmatpush3.bf16.msra.mxu1 %v4831_v18  ;;  %v1898_v18 = vstv %s3624_s9 }
 0x112   : > { %4282 = vmatprep.subr.bf16.mxu1 %v4832_v39 }
 0x113   : > { %4145 = vmatpush3.bf16.msra.mxu0 %v4787_v7  ;;  %v4910_v7 = vld [vmem:[#allocation2 + $0xf0] sm:$0xff] }
 0x114   : > { %4146 = vmatprep.subr.bf16.mxu0 %v4788_v8 }
 0x115   : > { %4283 = vmatpush3.bf16.msra.mxu1 %v4832_v39 }
 0x117   : > { %4147 = vmatpush3.bf16.msra.mxu0 %v4788_v8  ;;  %v1591_v8 = vpack.c.bf16 %v4910_v7, %v1585_v33 }
 0x118   : > { %4156 = vmatprep.subr.bf16.mxu0 %v4789_v44 }
 0x11a   : > { %4149 = vmatmul.mubr.bf16.vlgmr.msra.gmra.mrb[0].mxu0 %v990_v58  ;;  %v4911_v58 = vld [vmem:[#allocation2 + $0x21] sm:$0xff] }
 0x11b   : > { %4157 = vmatpush3.bf16.msra.mxu0 %v4789_v44  ;;  %4152 = vmatprep.mubr.bf16.mxu0 %v991_v59  ;;  %v4823_v44 = vld [vmem:[#allocation9 + $0x210] sm:$0xff]   ;;  %v1739_v59 = vpack.c.bf16 %v4911_v58, %v1731_v45 }
 0x11c   : > { %4158 = vmatprep.subr.bf16.mxu0 %v4790_v61 }
 0x11f   : > { %4159 = vmatpush3.bf16.msra.mxu0 %v4790_v61  ;;  %v4824_v61 = vld [vmem:[#allocation9 + $0x218] sm:$0xff]  }
 0x120   : > { %4160 = vmatprep.subr.bf16.mxu0 %v4791_v63 }
 0x122   : > { %4153 = vmatmul.mubr.bf16.gmra.mrb[4].mxu0 %v992_v12  ;;  %v4828_v12 = vld [vmem:[#allocation9 + $0x238] sm:$0xff]  }
 0x123   : > { %4161 = vmatpush3.bf16.msra.mxu0 %v4791_v63  ;;  %4172 = vmatprep.mubr.bf16.mxu0 %v1139_v14  ;;  %v4800_v14 = vld [vmem:[#allocation9 + $0x158] sm:$0xff]   ;;  %v4826_v63 = vld [vmem:[#allocation9 + $0x228] sm:$0xff]  }
 0x124   : > { %4162 = vmatprep.subr.bf16.mxu0 %v4792_v20 }
 0x127   : > { %4163 = vmatpush3.bf16.msra.mxu0 %v4792_v20  ;;  %v4912_v20 = vld [vmem:[#allocation2 + $0x31] sm:$0xff] }
 0x128   : > { %4164 = vmatprep.subr.bf16.mxu0 %v4793_v21 }
 0x12b   : > { %4165 = vmatpush3.bf16.msra.mxu0 %v4793_v21  ;;  %v4913_v21 = vld [vmem:[#allocation2 + $0x41] sm:$0xff] }
 0x12c   : > { %4166 = vmatprep.subr.bf16.mxu0 %v4794_v23 }
 0x12f   : > { %4167 = vmatpush3.bf16.msra.mxu0 %v4794_v23  ;;  %v1740_v23 = vpack.c.bf16 %v4913_v21, %v4912_v20  ;;  %v5763_v21 = vld [vmem:[#allocation2 + $0x90] sm:$0xff] }
 0x130   : > { %4168 = vmatprep.subr.bf16.mxu0 %v4795_v29 }
 0x133   : > { %4169 = vmatpush3.bf16.msra.mxu0 %v4795_v29  ;;  %v1741_v29 = vpack.c.bf16 %v4915_v28, %v4914_v25 }
 0x134   : > { %4170 = vmatprep.subr.bf16.mxu0 %v4796_v1 }
 0x137   : > { %4171 = vmatpush3.bf16.msra.mxu0 %v4796_v1  ;;  %v4833_v1 = vld [vmem:[#allocation11 + $0x60] sm:$0xff]  }
 0x138   : > { %4180 = vmatprep.subr.bf16.mxu0 %v4797_v0  ;;  %4284 = vmatprep.subr.bf16.mxu1 %v4833_v1 }
 0x139   : > { %4285 = vmatpush3.bf16.msra.mxu1 %v4833_v1  ;;  %v4842_v1 = vld [vmem:[#allocation11 + $0x28] sm:$0xff]  }
 0x13a   : > { %4173 = vmatmul.mubr.bf16.vlgmr.msra.gmra.mrb[0].mxu0 %v1140_v22  ;;  %v4802_v22 = vld [vmem:[#allocation9 + $0x168] sm:$0xff]  }
 0x13b   : > { %4181 = vmatpush3.bf16.msra.mxu0 %v4797_v0  ;;  %4176 = vmatprep.mubr.bf16.mxu0 %v1141_v47  ;;  %v4807_v47 = vld [vmem:[#allocation9 + $0x190] sm:$0xff]   ;;  %v4834_v0 = vld [vmem:[#allocation11 + $0x68] sm:$0xff]  }
 0x13c   : > { %4182 = vmatprep.subr.bf16.mxu0 %v4798_v4  ;;  %4286 = vmatprep.subr.bf16.mxu1 %v4834_v0 }
 0x13d   : > { %4287 = vmatpush3.bf16.msra.mxu1 %v4834_v0 }
 0x13f   : > { %4183 = vmatpush3.bf16.msra.mxu0 %v4798_v4  ;;  %v4835_v4 = vld [vmem:[#allocation11 + $0x70] sm:$0xff]  }
 0x140   : > { %4184 = vmatprep.subr.bf16.mxu0 %v4799_v16  ;;  %4288 = vmatprep.subr.bf16.mxu1 %v4835_v4 }
 0x141   : > { %4289 = vmatpush3.bf16.msra.mxu1 %v4835_v4  ;;  %v4843_v4 = vld [vmem:[#allocation11 + $0x30] sm:$0xff]  }
 0x142   : > { %4177 = vmatmul.mubr.bf16.gmra.mrb[4].mxu0 %v1142_v57  ;;  %v1582_v57 = vld [vmem:[#allocation2 + $0xb0] sm:$0xff] }
 0x143   : > { %4185 = vmatpush3.bf16.msra.mxu0 %v4799_v16  ;;  %4196 = vmatprep.mubr.bf16.mxu0 %v1289_v37  ;;  %v4806_v37 = vld [vmem:[#allocation9 + $0x188] sm:$0xff]   ;;  %v4836_v16 = vld [vmem:[#allocation11 + $0x78] sm:$0xff]  }
 0x144   : > { %4186 = vmatprep.subr.bf16.mxu0 %v4800_v14  ;;  %4290 = vmatprep.subr.bf16.mxu1 %v4836_v16 }
 0x145   : > { %4291 = vmatpush3.bf16.msra.mxu1 %v4836_v16  ;;  %v4844_v16 = vld [vmem:[#allocation11 + $0x38] sm:$0xff]  }
 0x147   : > { %4187 = vmatpush3.bf16.msra.mxu0 %v4800_v14  ;;  %v4837_v14 = vld [vmem:[#allocation11] sm:$0xff]  }
 0x148   : > { %4188 = vmatprep.subr.bf16.mxu0 %v4801_v17  ;;  %4300 = vmatprep.subr.bf16.mxu1 %v4837_v14 }
 0x14b   : > { %4189 = vmatpush3.bf16.msra.mxu0 %v4801_v17 }
 0x14c   : > { %4190 = vmatprep.subr.bf16.mxu0 %v4802_v22 }
 0x14f   : > { %4191 = vmatpush3.bf16.msra.mxu0 %v4802_v22 }
 0x150   : > { %4192 = vmatprep.subr.bf16.mxu0 %v4803_v40 }
 0x153   : > { %4193 = vmatpush3.bf16.msra.mxu0 %v4803_v40 }
 0x154   : > { %4194 = vmatprep.subr.bf16.mxu0 %v4804_v26 }
 0x157   : > { %4195 = vmatpush3.bf16.msra.mxu0 %v4804_v26 }
 0x158   : > { %4204 = vmatprep.subr.bf16.mxu0 %v4805_v27 }
 0x15a   : > { %4197 = vmatmul.mubr.bf16.vlgmr.msra.gmra.mrb[0].mxu0 %v1290_v38  ;;  %v4815_v38 = vld [vmem:[#allocation9 + $0x1d0] sm:$0xff]  }
 0x15b   : > { %4205 = vmatpush3.bf16.msra.mxu0 %v4805_v27  ;;  %4200 = vmatprep.mubr.bf16.mxu0 %v1291_v10  ;;  %v1442_v10 = vpack.c.bf16 %v1438_v5, %v5631_v46  ;;  %v1583_v46 = vld [vmem:[#allocation2 + $0xc0] sm:$0xff] }
 0x15c   : > { %4206 = vmatprep.subr.bf16.mxu0 %v4806_v37  ;;  %v1590_v35 = vpack.c.bf16 %v4909_v34, %v1583_v46 }
 0x15f   : > { %4207 = vmatpush3.bf16.msra.mxu0 %v4806_v37 }
 0x160   : > { %4208 = vmatprep.subr.bf16.mxu0 %v4807_v47 }
 0x162   : > { %4201 = vmatmul.mubr.bf16.gmra.mrb[4].mxu0 %v1292_v49  ;;  %v1589_v49 = vpack.c.bf16 %v1582_v57, %v1581_v54 }
 0x163   : > { %4209 = vmatpush3.bf16.msra.mxu0 %v4807_v47  ;;  %4220 = vmatprep.mubr.bf16.mxu0 %v1439_v24  ;;  %v4816_v24 = vld [vmem:[#allocation9 + $0x1d8] sm:$0xff]  }
 0x164   : > { %4210 = vmatprep.subr.bf16.mxu0 %v4808_v48 }
 0x167   : > { %4211 = vmatpush3.bf16.msra.mxu0 %v4808_v48 }
 0x168   : > { %4212 = vmatprep.subr.bf16.mxu0 %v4809_v30 }
 0x16b   : > { %4213 = vmatpush3.bf16.msra.mxu0 %v4809_v30 }
 0x16c   : > { %4214 = vmatprep.subr.bf16.mxu0 %v4810_v32 }
 0x16f   : > { %4215 = vmatpush3.bf16.msra.mxu0 %v4810_v32  ;;  %v1964_v32 = vld [vmem:[#allocation3 + $0x1] sm:$0xff] }
 0x170   : > { %4216 = vmatprep.subr.bf16.mxu0 %v4811_v52 }
 0x173   : > { %4217 = vmatpush3.bf16.msra.mxu0 %v4811_v52 }
 0x174   : > { %4218 = vmatprep.subr.bf16.mxu0 %v4812_v53 }
 0x177   : > { %4219 = vmatpush3.bf16.msra.mxu0 %v4812_v53 }
 0x178   : > { %4228 = vmatprep.subr.bf16.mxu0 %v4813_v56 }
 0x17a   : > { %4221 = vmatmul.mubr.bf16.vlgmr.msra.gmra.mrb[0].mxu0 %v1440_v2  ;;  %v4821_v2 = vld [vmem:[#allocation9 + $0x200] sm:$0xff]  }
 0x17b   : > { %4229 = vmatpush3.bf16.msra.mxu0 %v4813_v56  ;;  %4224 = vmatprep.mubr.bf16.mxu0 %v1441_v60 }
 0x17c   : > { %4230 = vmatprep.subr.bf16.mxu0 %v4814_v11 }
 0x17f   : > { %4231 = vmatpush3.bf16.msra.mxu0 %v4814_v11 }
 0x180   : > { %4232 = vmatprep.subr.bf16.mxu0 %v4815_v38 }
 0x182   : > { %4225 = vmatmul.mubr.bf16.gmra.mrb[4].mxu0 %v1442_v10 }
 0x183   : > { %4233 = vmatpush3.bf16.msra.mxu0 %v4815_v38  ;;  %4244 = vmatprep.mubr.bf16.mxu0 %v1589_v49 }
 0x184   : > { %4234 = vmatprep.subr.bf16.mxu0 %v4816_v24 }
 0x187   : > { %4235 = vmatpush3.bf16.msra.mxu0 %v4816_v24 }
 0x188   : > { %4236 = vmatprep.subr.bf16.mxu0 %v4817_v19 }
 0x18b   : > { %4237 = vmatpush3.bf16.msra.mxu0 %v4817_v19  ;;  %v4838_v19 = vld [vmem:[#allocation11 + $0x8] sm:$0xff]  }
 0x18c   : > { %4238 = vmatprep.subr.bf16.mxu0 %v4818_v13 }
 0x18f   : > { %4239 = vmatpush3.bf16.msra.mxu0 %v4818_v13 }
 0x190   : > { %4240 = vmatprep.subr.bf16.mxu0 %v4819_v15 }
 0x193   : > { %4241 = vmatpush3.bf16.msra.mxu0 %v4819_v15 }
 0x194   : > { %4242 = vmatprep.subr.bf16.mxu0 %v4820_v43 }
 0x197   : > { %4243 = vmatpush3.bf16.msra.mxu0 %v4820_v43 }
 0x198   : > { %4252 = vmatprep.subr.bf16.mxu0 %v4821_v2 }
 0x19a   : > { %4245 = vmatmul.mubr.bf16.vlgmr.msra.gmra.mrb[0].mxu0 %v1590_v35 }
 0x19b   : > { %4253 = vmatpush3.bf16.msra.mxu0 %v4821_v2  ;;  %4248 = vmatprep.mubr.bf16.mxu0 %v1591_v8 }
 0x19c   : > { %4254 = vmatprep.subr.bf16.mxu0 %v4822_v41 }
 0x19f   : > { %4255 = vmatpush3.bf16.msra.mxu0 %v4822_v41  ;;  %v4839_v41 = vld [vmem:[#allocation11 + $0x10] sm:$0xff]  }
 0x1a0   : > { %4256 = vmatprep.subr.bf16.mxu0 %v4823_v44 }
 0x1a2   : > { %4249 = vmatmul.mubr.bf16.gmra.mrb[4].mxu0 %v1592_v55 }
 0x1a3   : > { %4257 = vmatpush3.bf16.msra.mxu0 %v4823_v44  ;;  %4268 = vmatprep.mubr.bf16.mxu0 %v1739_v59 }
 0x1a4   : > { %4258 = vmatprep.subr.bf16.mxu0 %v4824_v61 }
 0x1a7   : > { %4259 = vmatpush3.bf16.msra.mxu0 %v4824_v61 }
 0x1a8   : > { %4260 = vmatprep.subr.bf16.mxu0 %v4825_v62 }
 0x1ab   : > { %4261 = vmatpush3.bf16.msra.mxu0 %v4825_v62 }
 0x1ac   : > { %4262 = vmatprep.subr.bf16.mxu0 %v4826_v63 }
 0x1af   : > { %4263 = vmatpush3.bf16.msra.mxu0 %v4826_v63 }
 0x1b0   : > { %4264 = vmatprep.subr.bf16.mxu0 %v4827_v6 }
 0x1b3   : > { %4265 = vmatpush3.bf16.msra.mxu0 %v4827_v6 }
 0x1b4   : > { %4266 = vmatprep.subr.bf16.mxu0 %v4828_v12 }
 0x1b7   : > { %4267 = vmatpush3.bf16.msra.mxu0 %v4828_v12  ;;  %v4840_v12 = vld [vmem:[#allocation11 + $0x18] sm:$0xff]  }
 0x1ba   : > { %4269 = vmatmul.mubr.bf16.vlgmr.msra.gmra.mrb[0].mxu0 %v1740_v23 }
 0x1bb   : > { %4272 = vmatprep.mubr.bf16.mxu0 %v1741_v29  ;;  %v4841_v29 = vld [vmem:[#allocation11 + $0x20] sm:$0xff]  }
 0x1c2   : > { %4273 = vmatmul.mubr.bf16.gmra.mrb[4].mxu0 %v1742_v51 }
 0x28d   : > { %v4270_v31 = vpop.f32.mrb[0].mxu0 }
 0x28e   : > { %v1884_v36 = vadd.f32 %v4270_v31, %v1881_v3  ;;  %v1842_v17 = vpop.f32.mrb[1].mxu0 }
 0x28f   : > { %v1882_v22 = vadd.f32 %v1881_v3, %v1842_v17  ;;  %v4271_v39 = vpop.f32.mrb[2].mxu0 }
 0x290   : > { %v1892_v40 = vmax.f32 %v1884_v36, 0.0  ;;  %v1885_v26 = vadd.f32 %v4271_v39, %v1881_v3  ;;  %v1845_v27 = vpop.f32.mrb[3].mxu0 }
 0x291   : > { %v1890_v37 = vmax.f32 %v1882_v22, 0.0  ;;  %v1883_v47 = vadd.f32 %v1881_v3, %v1845_v27  ;;  %v4846_v22 = vld [vmem:[#allocation11 + $0x88] sm:$0xff]  }
 0x292   : > { %v5706_v48 = vadd.f32 %v1898_v18, %v1892_v40  ;;  %v1893_v30 = vmax.f32 %v1885_v26, 0.0  ;;  %v4847_v40 = vld [vmem:[#allocation11 + $0x90] sm:$0xff]   ;;  %v2219_v27 = vld [vmem:[#allocation3 + $0x2] sm:$0xff] }
 0x293   : > { %v5708_v52 = vadd.f32 %v1898_v18, %v1890_v37  ;;  %v1891_v53 = vmax.f32 %v1883_v47, 0.0 }
 0x294   : > { %1930 = vst [vmem:[#allocation3 + $0x31] sm:$0xff] %v5706_v48  ;;  %v5711_v56 = vadd.f32 %v1898_v18, %v1893_v30  ;;  %v4848_v30 = vld [vmem:[#allocation11 + $0x98] sm:$0xff]  }
 0x295   : > { %1928 = vst [vmem:[#allocation3 + $0x11] sm:$0xff] %v5708_v52  ;;  %v5714_v60 = vadd.f32 %v1898_v18, %v1891_v53  ;;  %v4274_v11 = vpop.f32.mrb[4].mxu0  ;;  %v1972_v5 = vpack.c.bf16 %v5708_v52, %v1964_v32  ;;  %v4849_v53 = vld [vmem:[#allocation11 + $0xa0] sm:$0xff]  }
 0x296   : > { %1931 = vst [vmem:[#allocation3 + $0x41] sm:$0xff] %v5711_v56  ;;  %v1888_v38 = vadd.f32 %v4274_v11, %v1881_v3  ;;  %v1858_v54 = vpop.f32.mrb[5].mxu0  ;;  %v2528_v57 = vpack.c.bf16 %v5711_v56, %v5706_v48  ;;  %v4850_v11 = vld [vmem:[#allocation11 + $0xa8] sm:$0xff]  }
 0x297   : > { %1929 = vst [vmem:[#allocation3 + $0x21] sm:$0xff] %v5714_v60  ;;  %v1886_v10 = vadd.f32 %v1881_v3, %v1858_v54  ;;  %v4275_v49 = vpop.f32.mrb[6].mxu0  ;;  %4292 = vmatprep.mubr.bf16.mxu1 %v1972_v5  ;;  %v5723_v24 = vpack.c.bf16 %v5706_v48, %v5714_v60  ;;  %v2527_v13 = vpack.c.bf16 %v5714_v60, %v5708_v52  ;;  %v4851_v5 = vld [vmem:[#allocation11 + $0xb0] sm:$0xff]   ;;  %v4853_v54 = vld [vmem:[#allocation11 + $0xc0] sm:$0xff]   ;;  %v5852_v60 = vld [vmem:[#allocation12 + $0x28] sm:$0xff]  }
 0x298   : > { %v1896_v15 = vmax.f32 %v1888_v38, 0.0  ;;  %v1889_v43 = vadd.f32 %v4275_v49, %v1881_v3  ;;  %v1861_v46 = vpop.f32.mrb[7].mxu0  ;;  %v4852_v38 = vld [vmem:[#allocation11 + $0xb8] sm:$0xff]   ;;  %v4854_v49 = vld [vmem:[#allocation11 + $0xc8] sm:$0xff]   ;;  %v4867_v52 = vld [vmem:[#allocation11 + $0x130] sm:$0xff]  }
 0x299   : > { %v1894_v2 = vmax.f32 %v1886_v10, 0.0  ;;  %v1887_v33 = vadd.f32 %v1881_v3, %v1861_v46  ;;  %4293 = vmatmul.mubr.bf16.vlgmr.msra.gmra.mrb[0].mxu1 %v5723_v24  ;;  %v4873_v48 = vld [vmem:[#allocation11 + $0x160] sm:$0xff]  }
 0x29a   : > { %v5728_v34 = vadd.f32 %v1898_v18, %v1896_v15  ;;  %v1897_v35 = vmax.f32 %v1889_v43, 0.0  ;;  %4301 = vmatpush3.bf16.msra.mxu1 %v4837_v14  ;;  %v4845_v14 = vld [vmem:[#allocation11 + $0x80] sm:$0xff]   ;;  %v4855_v15 = vld [vmem:[#allocation11 + $0xd0] sm:$0xff]  }
 0x29b   : > { %v5730_v7 = vadd.f32 %v1898_v18, %v1894_v2  ;;  %v1895_v8 = vmax.f32 %v1887_v33, 0.0  ;;  %4302 = vmatprep.subr.bf16.mxu1 %v4838_v19  ;;  %v5744_v58 = vld [vmem:[#allocation3 + $0x32] sm:$0xff] }
 0x29c   : > { %1934 = vst [vmem:[#allocation3 + $0x71] sm:$0xff] %v5728_v34  ;;  %v5733_v42 = vadd.f32 %v1898_v18, %v1897_v35  ;;  %v5742_v55 = vld [vmem:[#allocation3 + $0x10] sm:$0xff]  ;;  %v4856_v2 = vld [vmem:[#allocation11 + $0xd8] sm:$0xff]   ;;  %v4857_v35 = vld [vmem:[#allocation11 + $0xe0] sm:$0xff]  }
 0x29d   : > { %1932 = vst [vmem:[#allocation3 + $0x51] sm:$0xff] %v5730_v7  ;;  %v5736_v44 = vadd.f32 %v1898_v18, %v1895_v8  ;;  %v5740_v45 = vpack.c.bf16 %v5730_v7, %v5711_v56  ;;  %v5746_v59 = vld [vmem:[#allocation3 + $0x42] sm:$0xff]  ;;  %v5761_v20 = vld [vmem:[#allocation3 + $0x12] sm:$0xff]  ;;  %v1944_v23 = vpack.c.bf16 %v5742_v55, %v5763_v21 }
 0x29e   : > { %1935 = vst [vmem:[#allocation3 + $0x81] sm:$0xff] %v5733_v42  ;;  %4303 = vmatpush3.bf16.msra.mxu1 %v4838_v19  ;;  %v5749_v61 = vld [vmem:[#allocation3 + $0x22] sm:$0xff]  ;;  %v2530_v62 = vpack.c.bf16 %v5733_v42, %v5728_v34  ;;  %v2678_v63 = vpack.c.bf16 %v5746_v59, %v5744_v58  ;;  %v5780_v36 = vld [vmem:[#allocation3 + $0x30] sm:$0xff]  ;;  %v2227_v32 = vpack.c.bf16 %v5761_v20, %v2219_v27 }
 0x29f   : > { %1933 = vst [vmem:[#allocation3 + $0x61] sm:$0xff] %v5736_v44  ;;  %4296 = vmatprep.mubr.bf16.mxu1 %v5740_v45  ;;  %4304 = vmatprep.subr.bf16.mxu1 %v4839_v41  ;;  %v5759_v6 = vpack.c.bf16 %v5728_v34, %v5736_v44  ;;  %v2529_v25 = vpack.c.bf16 %v5736_v44, %v5730_v7  ;;  %v1938_v3 = vld [vmem:[#allocation3 + $0x20] sm:$0xff]  ;;  %v4858_v8 = vld [vmem:[#allocation11 + $0xe8] sm:$0xff]   ;;  %v4876_v7 = vld [vmem:[#allocation11 + $0x178] sm:$0xff]  }
 0x2a0   : > { %v2677_v28 = vpack.c.bf16 %v5749_v61, %v5761_v20  ;;  %v5783_v17 = vpack.c.bf16 %v5780_v36, %v1938_v3  ;;  %v5785_v18 = vld [vmem:[#allocation3 + $0x40] sm:$0xff]  ;;  %v5805_v10 = vpack.c.bf16 %v5744_v58, %v5749_v61  ;;  %v2377_v33 = vpack.c.bf16 %v1938_v3, %v5742_v55  ;;  %v5831_v3 = vld [vmem:[#allocation12 + $0x8] sm:$0xff]   ;;  %v4879_v61 = vld [vmem:[#allocation11 + $0x190] sm:$0xff]  }
 0x2a1   : > { %4297 = vmatmul.mubr.bf16.gmra.mrb[4].mxu1 %v5759_v6  ;;  %v2378_v55 = vpack.c.bf16 %v5785_v18, %v5780_v36  ;;  %v5848_v27 = vld [vmem:[#allocation12 + $0x20] sm:$0xff]   ;;  %v4874_v56 = vld [vmem:[#allocation11 + $0x168] sm:$0xff]  }
 0x2a2   : > { %4305 = vmatpush3.bf16.msra.mxu1 %v4839_v41  ;;  %4316 = vmatprep.mubr.bf16.mxu1 %v1944_v23  ;;  %v4859_v41 = vld [vmem:[#allocation11 + $0xf0] sm:$0xff]   ;;  %v4861_v23 = vld [vmem:[#allocation11 + $0x100] sm:$0xff]   ;;  %v4878_v44 = vld [vmem:[#allocation11 + $0x188] sm:$0xff]  }
 0x2a3   : > { %4306 = vmatprep.subr.bf16.mxu1 %v4840_v12  ;;  %v5795_v37 = vld [vmem:[#allocation3 + $0x70] sm:$0xff]  ;;  %v4877_v34 = vld [vmem:[#allocation11 + $0x180] sm:$0xff]  }
 0x2a4   : > { %v5772_v50 = vld [vmem:[#allocation3 + $0x52] sm:$0xff]  ;;  %v4881_v58 = vld [vmem:[#allocation11 + $0x1a0] sm:$0xff]  }
 0x2a5   : > { %v5778_v31 = vld [vmem:[#allocation3 + $0x50] sm:$0xff]  ;;  %v5809_v19 = vpack.c.bf16 %v5772_v50, %v5746_v59  ;;  %v4882_v59 = vld [vmem:[#allocation11 + $0x1a8] sm:$0xff]  }
 0x2a6   : > { %4307 = vmatpush3.bf16.msra.mxu1 %v4840_v12  ;;  %v5774_v51 = vld [vmem:[#allocation3 + $0x62] sm:$0xff]  ;;  %v5789_v39 = vpack.c.bf16 %v5778_v31, %v5785_v18  ;;  %v5813_v43 = vld [vmem:[#allocation3 + $0x72] sm:$0xff] }
 0x2a7   : > { %4308 = vmatprep.subr.bf16.mxu1 %v4841_v29  ;;  %v2679_v0 = vpack.c.bf16 %v5774_v51, %v5772_v50  ;;  %v5793_v26 = vld [vmem:[#allocation3 + $0x60] sm:$0xff]  ;;  %v5817_v46 = vpack.c.bf16 %v5813_v43, %v5774_v51  ;;  %v4860_v12 = vld [vmem:[#allocation11 + $0xf8] sm:$0xff]   ;;  %v5837_v18 = vld [vmem:[#allocation12 + $0x10] sm:$0xff]  }
 0x2a8   : > { %v5799_v47 = vpack.c.bf16 %v5795_v37, %v5793_v26  ;;  %v4885_v50 = vld [vmem:[#allocation11 + $0x1c0] sm:$0xff]   ;;  %v4886_v51 = vld [vmem:[#allocation11 + $0x1c8] sm:$0xff]  }
 0x2aa   : > { %4309 = vmatpush3.bf16.msra.mxu1 %v4841_v29  ;;  %v4862_v29 = vld [vmem:[#allocation11 + $0x108] sm:$0xff]  }
 0x2ab   : > { %4310 = vmatprep.subr.bf16.mxu1 %v4842_v1 }
 0x2ae   : > { %4311 = vmatpush3.bf16.msra.mxu1 %v4842_v1  ;;  %v2379_v1 = vpack.c.bf16 %v5793_v26, %v5778_v31  ;;  %v4864_v31 = vld [vmem:[#allocation11 + $0x118] sm:$0xff]   ;;  %v4866_v26 = vld [vmem:[#allocation11 + $0x128] sm:$0xff]  }
 0x2af   : > { %4312 = vmatprep.subr.bf16.mxu1 %v4843_v4 }
 0x2b2   : > { %4313 = vmatpush3.bf16.msra.mxu1 %v4843_v4  ;;  %v5825_v4 = vld [vmem:[#allocation12] sm:$0xff]  }
 0x2b3   : > { %4314 = vmatprep.subr.bf16.mxu1 %v4844_v16  ;;  %4492 = vmatprep.subr.bf16.mxu0 %v5825_v4 }
 0x2b4   : > { %4493 = vmatpush3.bf16.msra.mxu0 %v5825_v4 }
 0x2b5   : > { %4494 = vmatprep.subr.bf16.mxu0 %v5831_v3 }
 0x2b6   : > { %4315 = vmatpush3.bf16.msra.mxu1 %v4844_v16  ;;  %v4863_v16 = vld [vmem:[#allocation11 + $0x110] sm:$0xff]  }
 0x2b7   : > { %4324 = vmatprep.subr.bf16.mxu1 %v4845_v14 }
 0x2b8   : > { %4495 = vmatpush3.bf16.msra.mxu0 %v5831_v3 }
 0x2b9   : > { %4317 = vmatmul.mubr.bf16.vlgmr.msra.gmra.mrb[0].mxu1 %v5783_v17  ;;  %4496 = vmatprep.subr.bf16.mxu0 %v5837_v18 }
 0x2ba   : > { %4320 = vmatprep.mubr.bf16.mxu1 %v5789_v39  ;;  %4325 = vmatpush3.bf16.msra.mxu1 %v4845_v14  ;;  %v5828_v14 = vld [vmem:[#allocation3 + $0x80] sm:$0xff] }
 0x2bb   : > { %4326 = vmatprep.subr.bf16.mxu1 %v4846_v22  ;;  %v2380_v36 = vpack.c.bf16 %v5828_v14, %v5795_v37  ;;  %v5856_v37 = vld [vmem:[#allocation12 + $0x30] sm:$0xff]  }
 0x2bc   : > { %4497 = vmatpush3.bf16.msra.mxu0 %v5837_v18 }
 0x2be   : > { %4327 = vmatpush3.bf16.msra.mxu1 %v4846_v22  ;;  %v4865_v22 = vld [vmem:[#allocation11 + $0x120] sm:$0xff]  }
 0x2bf   : > { %4328 = vmatprep.subr.bf16.mxu1 %v4847_v40 }
 0x2c1   : > { %4321 = vmatmul.mubr.bf16.gmra.mrb[4].mxu1 %v5799_v47 }
 0x2c2   : > { %4329 = vmatpush3.bf16.msra.mxu1 %v4847_v40  ;;  %4340 = vmatprep.mubr.bf16.mxu1 %v2227_v32  ;;  %v5844_v40 = vld [vmem:[#allocation12 + $0x18] sm:$0xff]   ;;  %v3802_v32 = vld [vmem:[%s5391_s15 + $0x1b0] sm:$0xff] }
 0x2c3   : > { %4330 = vmatprep.subr.bf16.mxu1 %v4848_v30  ;;  %4498 = vmatprep.subr.bf16.mxu0 %v5844_v40 }
 0x2c4   : > { %4499 = vmatpush3.bf16.msra.mxu0 %v5844_v40 }
 0x2c5   : > { %4500 = vmatprep.subr.bf16.mxu0 %v5848_v27 }
 0x2c6   : > { %4331 = vmatpush3.bf16.msra.mxu1 %v4848_v30  ;;  %v4869_v30 = vld [vmem:[#allocation11 + $0x140] sm:$0xff]  }
 0x2c7   : > { %4332 = vmatprep.subr.bf16.mxu1 %v4849_v53 }
 0x2c8   : > { %4501 = vmatpush3.bf16.msra.mxu0 %v5848_v27 }
 0x2c9   : > { %4502 = vmatprep.subr.bf16.mxu0 %v5852_v60 }
 0x2ca   : > { %4333 = vmatpush3.bf16.msra.mxu1 %v4849_v53  ;;  %v3803_v53 = vld [vmem:[%s5391_s15 + $0x1c0] sm:$0xff] }
 0x2cb   : > { %4334 = vmatprep.subr.bf16.mxu1 %v4850_v11 }
 0x2cc   : > { %4503 = vmatpush3.bf16.msra.mxu0 %v5852_v60 }
 0x2cd   : > { %4504 = vmatprep.subr.bf16.mxu0 %v5856_v37 }
 0x2ce   : > { %4335 = vmatpush3.bf16.msra.mxu1 %v4850_v11  ;;  %v3278_v11 = vadd.f32 %v3802_v32, %v5454_v9 }
 0x2cf   : > { %4336 = vmatprep.subr.bf16.mxu1 %v4851_v5 }
 0x2d0   : > { %4505 = vmatpush3.bf16.msra.mxu0 %v5856_v37 }
 0x2d2   : > { %4337 = vmatpush3.bf16.msra.mxu1 %v4851_v5  ;;  %v3279_v5 = vadd.f32 %v3803_v53, %v5454_v9 }
 0x2d3   : > { %4338 = vmatprep.subr.bf16.mxu1 %v4852_v38 }
 0x2d6   : > { %4339 = vmatpush3.bf16.msra.mxu1 %v4852_v38  ;;  %v3804_v38 = vld [vmem:[%s5391_s15 + $0x1d0] sm:$0xff] }
 0x2d7   : > { %4348 = vmatprep.subr.bf16.mxu1 %v4853_v54 }
 0x2d9   : > { %4341 = vmatmul.mubr.bf16.vlgmr.msra.gmra.mrb[0].mxu1 %v5805_v10 }
 0x2da   : > { %4344 = vmatprep.mubr.bf16.mxu1 %v5809_v19  ;;  %4349 = vmatpush3.bf16.msra.mxu1 %v4853_v54  ;;  %v3805_v54 = vld [vmem:[%s5391_s15 + $0x1e0] sm:$0xff] }
 0x2db   : > { %4350 = vmatprep.subr.bf16.mxu1 %v4854_v49 }
 0x2de   : > { %4351 = vmatpush3.bf16.msra.mxu1 %v4854_v49  ;;  %v5866_v49 = vld [vmem:[#allocation12 + $0x38] sm:$0xff]  }
 0x2df   : > { %4352 = vmatprep.subr.bf16.mxu1 %v4855_v15  ;;  %4506 = vmatprep.subr.bf16.mxu0 %v5866_v49 }
 0x2e0   : > { %4507 = vmatpush3.bf16.msra.mxu0 %v5866_v49 }
 0x2e1   : > { %4345 = vmatmul.mubr.bf16.gmra.mrb[4].mxu1 %v5817_v46 }
 0x2e2   : > { %4353 = vmatpush3.bf16.msra.mxu1 %v4855_v15  ;;  %4364 = vmatprep.mubr.bf16.mxu1 %v2377_v33  ;;  %v3280_v15 = vadd.f32 %v3804_v38, %v5454_v9  ;;  %v3286_v33 = vmax.f32 %v3278_v11, 0.0 }
 0x2e3   : > { %4354 = vmatprep.subr.bf16.mxu1 %v4856_v2 }
 0x2e6   : > { %4355 = vmatpush3.bf16.msra.mxu1 %v4856_v2  ;;  %v3281_v2 = vadd.f32 %v3805_v54, %v5454_v9 }
 0x2e7   : > { %4356 = vmatprep.subr.bf16.mxu1 %v4857_v35 }
 0x2ea   : > { %4357 = vmatpush3.bf16.msra.mxu1 %v4857_v35  ;;  %v3287_v35 = vmax.f32 %v3279_v5, 0.0  ;;  %v3127_v5 = vld [vmem:[#allocation3 + $0x92] sm:$0xff] }
 0x2eb   : > { %4358 = vmatprep.subr.bf16.mxu1 %v4858_v8 }
 0x2ee   : > { %4359 = vmatpush3.bf16.msra.mxu1 %v4858_v8  ;;  %v4870_v8 = vld [vmem:[#allocation11 + $0x148] sm:$0xff]  }
 0x2ef   : > { %4360 = vmatprep.subr.bf16.mxu1 %v4859_v41 }
 0x2f2   : > { %4361 = vmatpush3.bf16.msra.mxu1 %v4859_v41  ;;  %v3288_v41 = vmax.f32 %v3280_v15, 0.0 }
 0x2f3   : > { %4362 = vmatprep.subr.bf16.mxu1 %v4860_v12 }
 0x2f6   : > { %4363 = vmatpush3.bf16.msra.mxu1 %v4860_v12  ;;  %v3289_v12 = vmax.f32 %v3281_v2, 0.0 }
 0x2f7   : > { %4372 = vmatprep.subr.bf16.mxu1 %v4861_v23 }
 0x2f9   : > { %4365 = vmatmul.mubr.bf16.vlgmr.msra.gmra.mrb[0].mxu1 %v2378_v55  ;;  %v3828_v55 = vpack.c.bf16 %v3289_v12, %v3288_v41 }
 0x2fa   : > { %4368 = vmatprep.mubr.bf16.mxu1 %v2379_v1  ;;  %4373 = vmatpush3.bf16.msra.mxu1 %v4861_v23  ;;  %v3827_v23 = vpack.c.bf16 %v3287_v35, %v3286_v33  ;;  %v4872_v1 = vld [vmem:[#allocation11 + $0x158] sm:$0xff]  }
 0x2fb   : > { %4374 = vmatprep.subr.bf16.mxu1 %v4862_v29 }
 0x2fc   : > { %4508 = vmatprep.mubr.bf16.mxu0 %v3827_v23 }
 0x2fd   : > { %4509 = vmatmul.mubr.bf16.vlgmr.msra.gmra.mrb[8].mxu0 %v3828_v55 }
 0x2fe   : > { %4375 = vmatpush3.bf16.msra.mxu1 %v4862_v29  ;;  %v4871_v29 = vld [vmem:[#allocation11 + $0x150] sm:$0xff]  }
 0x2ff   : > { %4376 = vmatprep.subr.bf16.mxu1 %v4863_v16 }
 0x301   : > { %4369 = vmatmul.mubr.bf16.gmra.mrb[4].mxu1 %v2380_v36  ;;  %v4892_v36 = vld [vmem:[#allocation11 + $0x1f8] sm:$0xff]  }
 0x302   : > { %4377 = vmatpush3.bf16.msra.mxu1 %v4863_v16  ;;  %4388 = vmatprep.mubr.bf16.mxu1 %v2527_v13  ;;  %v4868_v13 = vld [vmem:[#allocation11 + $0x138] sm:$0xff]   ;;  %v4889_v16 = vld [vmem:[#allocation11 + $0x1e0] sm:$0xff]  }
 0x303   : > { %4378 = vmatprep.subr.bf16.mxu1 %v4864_v31 }
 0x306   : > { %4379 = vmatpush3.bf16.msra.mxu1 %v4864_v31  ;;  %v2977_v31 = vld [vmem:[#allocation3 + $0x91] sm:$0xff] }
 0x307   : > { %4380 = vmatprep.subr.bf16.mxu1 %v4865_v22 }
 0x30a   : > { %4381 = vmatpush3.bf16.msra.mxu1 %v4865_v22  ;;  %v2981_v22 = vpack.c.bf16 %v2977_v31, %v5733_v42  ;;  %v3806_v42 = vld [vmem:[%s5391_s15 + $0x1f0] sm:$0xff] }
 0x30b   : > { %4382 = vmatprep.subr.bf16.mxu1 %v4866_v26  ;;  %v3282_v32 = vadd.f32 %v3806_v42, %v5454_v9 }
 0x30d   : > { %v3290_v53 = vmax.f32 %v3282_v32, 0.0 }
 0x30e   : > { %4383 = vmatpush3.bf16.msra.mxu1 %v4866_v26  ;;  %v4899_v26 = vld [vmem:[#allocation11 + $0x218] sm:$0xff]  }
 0x30f   : > { %4384 = vmatprep.subr.bf16.mxu1 %v4867_v52 }
 0x312   : > { %4385 = vmatpush3.bf16.msra.mxu1 %v4867_v52  ;;  %v4901_v52 = vld [vmem:[#allocation11 + $0x220] sm:$0xff]  }
 0x313   : > { %4386 = vmatprep.subr.bf16.mxu1 %v4868_v13 }
 0x316   : > { %4387 = vmatpush3.bf16.msra.mxu1 %v4868_v13  ;;  %v4907_v13 = vld [vmem:[#allocation11 + $0x238] sm:$0xff]  }
 0x317   : > { %4396 = vmatprep.subr.bf16.mxu1 %v4869_v30 }
 0x319   : > { %4389 = vmatmul.mubr.bf16.vlgmr.msra.gmra.mrb[0].mxu1 %v2528_v57  ;;  %v4875_v57 = vld [vmem:[#allocation11 + $0x170] sm:$0xff]  }
 0x31a   : > { %4392 = vmatprep.mubr.bf16.mxu1 %v2529_v25  ;;  %4397 = vmatpush3.bf16.msra.mxu1 %v4869_v30  ;;  %v4880_v25 = vld [vmem:[#allocation11 + $0x198] sm:$0xff]   ;;  %v3807_v30 = vld [vmem:[%s5391_s15 + $0x200] sm:$0xff] }
 0x31b   : > { %4398 = vmatprep.subr.bf16.mxu1 %v4870_v8 }
 0x31e   : > { %4399 = vmatpush3.bf16.msra.mxu1 %v4870_v8 }
 0x31f   : > { %4400 = vmatprep.subr.bf16.mxu1 %v4871_v29 }
 0x321   : > { %4393 = vmatmul.mubr.bf16.gmra.mrb[4].mxu1 %v2530_v62  ;;  %v5890_v62 = vld [vmem:[#allocation3 + $0x82] sm:$0xff] }
 0x322   : > { %4401 = vmatpush3.bf16.msra.mxu1 %v4871_v29  ;;  %4412 = vmatprep.mubr.bf16.mxu1 %v2677_v28  ;;  %v2680_v20 = vpack.c.bf16 %v5890_v62, %v5813_v43  ;;  %v4884_v28 = vld [vmem:[#allocation11 + $0x1b8] sm:$0xff]   ;;  %v3131_v54 = vpack.c.bf16 %v3127_v5, %v5890_v62 }
 0x323   : > { %4402 = vmatprep.subr.bf16.mxu1 %v4872_v1  ;;  %v4888_v43 = vld [vmem:[#allocation11 + $0x1d8] sm:$0xff]  }
 0x326   : > { %4403 = vmatpush3.bf16.msra.mxu1 %v4872_v1 }
 0x327   : > { %4404 = vmatprep.subr.bf16.mxu1 %v4873_v48 }
 0x32a   : > { %4405 = vmatpush3.bf16.msra.mxu1 %v4873_v48 }
 0x32b   : > { %4406 = vmatprep.subr.bf16.mxu1 %v4874_v56 }
 0x32e   : > { %4407 = vmatpush3.bf16.msra.mxu1 %v4874_v56 }
 0x32f   : > { %4408 = vmatprep.subr.bf16.mxu1 %v4875_v57 }
 0x332   : > { %4409 = vmatpush3.bf16.msra.mxu1 %v4875_v57 }
 0x333   : > { %4410 = vmatprep.subr.bf16.mxu1 %v4876_v7 }
 0x336   : > { %4411 = vmatpush3.bf16.msra.mxu1 %v4876_v7 }
 0x337   : > { %4420 = vmatprep.subr.bf16.mxu1 %v4877_v34 }
 0x339   : > { %4413 = vmatmul.mubr.bf16.vlgmr.msra.gmra.mrb[0].mxu1 %v2678_v63  ;;  %v4883_v63 = vld [vmem:[#allocation11 + $0x1b0] sm:$0xff]  }
 0x33a   : > { %4416 = vmatprep.mubr.bf16.mxu1 %v2679_v0  ;;  %4421 = vmatpush3.bf16.msra.mxu1 %v4877_v34  ;;  %v4887_v0 = vld [vmem:[#allocation11 + $0x1d0] sm:$0xff]  }
 0x33b   : > { %4422 = vmatprep.subr.bf16.mxu1 %v4878_v44 }
 0x33e   : > { %4423 = vmatpush3.bf16.msra.mxu1 %v4878_v44 }
 0x33f   : > { %4424 = vmatprep.subr.bf16.mxu1 %v4879_v61 }
 0x341   : > { %4417 = vmatmul.mubr.bf16.gmra.mrb[4].mxu1 %v2680_v20 }
 0x342   : > { %4425 = vmatpush3.bf16.msra.mxu1 %v4879_v61  ;;  %4436 = vmatprep.mubr.bf16.mxu1 %v5783_v17  ;;  %v2831_v17 = vpack.c.bf16 %v5763_v21, %v5828_v14  ;;  %v4893_v21 = vld [vmem:[#allocation11 + $0x200] sm:$0xff]   ;;  %v4895_v14 = vld [vmem:[#allocation11 + $0x208] sm:$0xff]  }
 0x343   : > { %4426 = vmatprep.subr.bf16.mxu1 %v4880_v25 }
 0x346   : > { %4427 = vmatpush3.bf16.msra.mxu1 %v4880_v25 }
 0x347   : > { %4428 = vmatprep.subr.bf16.mxu1 %v4881_v58 }
 0x34a   : > { %4429 = vmatpush3.bf16.msra.mxu1 %v4881_v58 }
 0x34b   : > { %4430 = vmatprep.subr.bf16.mxu1 %v4882_v59 }
 0x34e   : > { %4431 = vmatpush3.bf16.msra.mxu1 %v4882_v59 }
 0x34f   : > { %4432 = vmatprep.subr.bf16.mxu1 %v4883_v63 }
 0x352   : > { %4433 = vmatpush3.bf16.msra.mxu1 %v4883_v63 }
 0x353   : > { %4434 = vmatprep.subr.bf16.mxu1 %v4884_v28 }
 0x356   : > { %4435 = vmatpush3.bf16.msra.mxu1 %v4884_v28 }
 0x357   : > { %4444 = vmatprep.subr.bf16.mxu1 %v4885_v50 }
 0x359   : > { %4437 = vmatmul.mubr.bf16.vlgmr.msra.gmra.mrb[0].mxu1 %v5789_v39  ;;  %v4890_v39 = vld [vmem:[#allocation11 + $0x1e8] sm:$0xff]  }
 0x35a   : > { %4440 = vmatprep.mubr.bf16.mxu1 %v5799_v47  ;;  %4445 = vmatpush3.bf16.msra.mxu1 %v4885_v50  ;;  %v4891_v47 = vld [vmem:[#allocation11 + $0x1f0] sm:$0xff]  }
 0x35b   : > { %4446 = vmatprep.subr.bf16.mxu1 %v4886_v51 }
 0x35e   : > { %4447 = vmatpush3.bf16.msra.mxu1 %v4886_v51 }
 0x35f   : > { %4448 = vmatprep.subr.bf16.mxu1 %v4887_v0 }
 0x361   : > { %4441 = vmatmul.mubr.bf16.gmra.mrb[4].mxu1 %v2831_v17 }
 0x362   : > { %4449 = vmatpush3.bf16.msra.mxu1 %v4887_v0  ;;  %4460 = vmatprep.mubr.bf16.mxu1 %v5723_v24  ;;  %v4897_v24 = vld [vmem:[#allocation11 + $0x210] sm:$0xff]  }
 0x363   : > { %4450 = vmatprep.subr.bf16.mxu1 %v4888_v43 }
 0x366   : > { %4451 = vmatpush3.bf16.msra.mxu1 %v4888_v43 }
 0x367   : > { %4452 = vmatprep.subr.bf16.mxu1 %v4889_v16 }
 0x36a   : > { %4453 = vmatpush3.bf16.msra.mxu1 %v4889_v16 }
 0x36b   : > { %4454 = vmatprep.subr.bf16.mxu1 %v4890_v39 }
 0x36e   : > { %4455 = vmatpush3.bf16.msra.mxu1 %v4890_v39 }
 0x36f   : > { %4456 = vmatprep.subr.bf16.mxu1 %v4891_v47 }
 0x372   : > { %4457 = vmatpush3.bf16.msra.mxu1 %v4891_v47 }
 0x373   : > { %4458 = vmatprep.subr.bf16.mxu1 %v4892_v36 }
 0x376   : > { %4459 = vmatpush3.bf16.msra.mxu1 %v4892_v36 }
 0x377   : > { %4468 = vmatprep.subr.bf16.mxu1 %v4893_v21 }
 0x379   : > { %4461 = vmatmul.mubr.bf16.vlgmr.msra.gmra.mrb[0].mxu1 %v5740_v45  ;;  %v4903_v45 = vld [vmem:[#allocation11 + $0x228] sm:$0xff]  }
 0x37a   : > { %4464 = vmatprep.mubr.bf16.mxu1 %v5759_v6  ;;  %4469 = vmatpush3.bf16.msra.mxu1 %v4893_v21  ;;  %v4905_v6 = vld [vmem:[#allocation11 + $0x230] sm:$0xff]  }
 0x37b   : > { %4470 = vmatprep.subr.bf16.mxu1 %v4895_v14 }
 0x37e   : > { %4471 = vmatpush3.bf16.msra.mxu1 %v4895_v14 }
 0x37f   : > { %4472 = vmatprep.subr.bf16.mxu1 %v4897_v24 }
 0x381   : > { %4465 = vmatmul.mubr.bf16.gmra.mrb[4].mxu1 %v2981_v22 }
 0x382   : > { %4473 = vmatpush3.bf16.msra.mxu1 %v4897_v24  ;;  %4484 = vmatprep.mubr.bf16.mxu1 %v5805_v10  ;;  %v3283_v10 = vadd.f32 %v3807_v30, %v5454_v9 }
 0x383   : > { %4474 = vmatprep.subr.bf16.mxu1 %v4899_v26 }
 0x384   : > { %v3291_v11 = vmax.f32 %v3283_v10, 0.0 }
 0x386   : > { %4475 = vmatpush3.bf16.msra.mxu1 %v4899_v26  ;;  %v3829_v38 = vpack.c.bf16 %v3291_v11, %v3290_v53 }
 0x387   : > { %4476 = vmatprep.subr.bf16.mxu1 %v4901_v52 }
 0x38a   : > { %4477 = vmatpush3.bf16.msra.mxu1 %v4901_v52 }
 0x38b   : > { %4478 = vmatprep.subr.bf16.mxu1 %v4903_v45 }
 0x38e   : > { %4479 = vmatpush3.bf16.msra.mxu1 %v4903_v45 }
 0x38f   : > { %4480 = vmatprep.subr.bf16.mxu1 %v4905_v6 }
 0x392   : > { %4481 = vmatpush3.bf16.msra.mxu1 %v4905_v6 }
 0x393   : > { %4482 = vmatprep.subr.bf16.mxu1 %v4907_v13 }
 0x396   : > { %4483 = vmatpush3.bf16.msra.mxu1 %v4907_v13 }
 0x397   : > { %4516 = vmatprep.subr.bf16.mxu1 %v5825_v4 }
 0x399   : > { %4485 = vmatmul.mubr.bf16.vlgmr.msra.gmra.mrb[0].mxu1 %v5809_v19  ;;  %v3808_v19 = vld [vmem:[%s5391_s15 + $0x210] sm:$0xff] }
 0x39a   : > { %4488 = vmatprep.mubr.bf16.mxu1 %v5817_v46  ;;  %4524 = vmatpush3.bf16.msra.mxu1 %v5825_v4  ;;  %v3809_v46 = vld [vmem:[%s5391_s15 + $0x220] sm:$0xff]  ;;  %v3284_v4 = vadd.f32 %v3808_v19, %v5454_v9  ;;  %s5049_s15 = sshll.u32 %s5135_s16, 4  ;;  %s5050_s15 = int_to_ptr.vmem [resolvable:$false] %s5049_s15 }
 0x39b   : > { %4517 = vmatprep.subr.bf16.mxu1 %v5831_v3  ;;  %s5051_s24 = scalar_lea.vmem %s5050_s15, 2048  ;;  %p5052_p7 = scmp.lt.s32.totalorder %s5938_s7, %s5050_s15 }
 0x39c   : > { %p5053_p4 = scmp.lt.s32.totalorder %s5051_s24, %s5045_s14 }
 0x39e   : > { %4525 = vmatpush3.bf16.msra.mxu1 %v5831_v3  ;;  %v3285_v3 = vadd.f32 %v3809_v46, %v5454_v9  ;;  %v3455_v9 = vstv %s3625_s10  ;;  %p5054_p6 = por %p5053_p4, %p5052_p7 }
 0x39f   : > { %4518 = vmatprep.subr.bf16.mxu1 %v5837_v18 }
 0x3a0   : > { %v3293_v15 = vmax.f32 %v3285_v3, 0.0  ;;  %p5055_p3 = pnand %p5054_p6, %p5048_p5 }
 0x3a1   : > { %4489 = vmatmul.mubr.bf16.gmra.mrb[4].mxu1 %v3131_v54 }
 0x3a2   : > { %4526 = vmatpush3.bf16.msra.mxu1 %v5837_v18  ;;  %4512 = vmatprep.mubr.bf16.mxu1 %v3829_v38  ;;  %v3292_v18 = vmax.f32 %v3284_v4, 0.0 }
 0x3a3   : > { %4519 = vmatprep.subr.bf16.mxu1 %v5844_v40 }
 0x3a6   : > { %4527 = vmatpush3.bf16.msra.mxu1 %v5844_v40  ;;  %v3830_v40 = vpack.c.bf16 %v3293_v15, %v3292_v18 }
 0x3a7   : > { %4520 = vmatprep.subr.bf16.mxu1 %v5848_v27 }
 0x3aa   : > { %4528 = vmatpush3.bf16.msra.mxu1 %v5848_v27 }
 0x3ab   : > { %4521 = vmatprep.subr.bf16.mxu1 %v5852_v60 }
 0x3ae   : > { %4529 = vmatpush3.bf16.msra.mxu1 %v5852_v60 }
 0x3af   : > { %4522 = vmatprep.subr.bf16.mxu1 %v5856_v37 }
 0x3b2   : > { %4530 = vmatpush3.bf16.msra.mxu1 %v5856_v37 }
 0x3b3   : > { %4523 = vmatprep.subr.bf16.mxu1 %v5866_v49 }
 0x3b6   : > { %4531 = vmatpush3.bf16.msra.mxu1 %v5866_v49 }
 0x3b9   : > { %4513 = vmatmul.mubr.bf16.vlgmr.msra.gmra.mrb[8].mxu1 %v3830_v40 }
 0x3d0   : > { %v4510_v27 = vpop.f32.mrb[8].mxu0 }
 0x3d1   : > { %v3424_v2 = vpop.f32.mrb[9].mxu0 }
 0x3d2   : > { %v4511_v33 = vpop.f32.mrb[10].mxu0 }
 0x3d3   : > { %v3427_v35 = vpop.f32.mrb[11].mxu0 }
 0x46c   : > { %v4486_v60 = vpop.f32.mrb[0].mxu1 }
 0x46d   : > { %v3458_v8 = vmul.f32 %v4486_v60, %v3455_v9  ;;  %v3231_v41 = vpop.f32.mrb[1].mxu1 }
 0x46e   : > { %v3456_v12 = vmul.f32 %v3455_v9, %v3231_v41  ;;  %v4487_v23 = vpop.f32.mrb[2].mxu1 }
 0x46f   : > { %v3459_v55 = vmul.f32 %v4487_v23, %v3455_v9  ;;  %v3466_v37 = vadd.f32 %v4510_v27, %v3458_v8  ;;  %v3234_v29 = vpop.f32.mrb[3].mxu1 }
 0x470   : > { %v3457_v1 = vmul.f32 %v3455_v9, %v3234_v29  ;;  %v3464_v48 = vadd.f32 %v3456_v12, %v3424_v2 }
 0x471   : > { %3474 = vst [vmem:[%s298_s27 + $0x10] sm:$0xff] %v3466_v37  ;;  %v3467_v49 = vadd.f32 %v4511_v33, %v3459_v55 }
 0x472   : > { %3472 = vst [vmem:[%s298_s27] sm:$0xff] %v3464_v48  ;;  %v3465_v56 = vadd.f32 %v3457_v1, %v3427_v35 }
 0x473   : > { %3475 = vst [vmem:[%s298_s27 + $0x18] sm:$0xff] %v3467_v49 }
 0x474   : > { %3473 = vst [vmem:[%s298_s27 + $0x8] sm:$0xff] %v3465_v56  ;;  %v4490_v57 = vpop.f32.mrb[4].mxu1 }
 0x475   : > { %v3247_v7 = vpop.f32.mrb[5].mxu1  ;;  %v3462_v61 = vmul.f32 %v4490_v57, %v3455_v9 }
 0x476   : > { %v4491_v34 = vpop.f32.mrb[6].mxu1  ;;  %v3460_v62 = vmul.f32 %v3455_v9, %v3247_v7 }
 0x477   : > { %v3250_v44 = vpop.f32.mrb[7].mxu1  ;;  %v3463_v25 = vmul.f32 %v4491_v34, %v3455_v9 }
 0x478   : > { %v3461_v63 = vmul.f32 %v3455_v9, %v3250_v44 }
 0x48c   : > { %v4514_v20 = vpop.f32.mrb[8].mxu1 }
 0x48d   : > { %v3470_v58 = vadd.f32 %v4514_v20, %v3462_v61  ;;  %v3440_v59 = vpop.f32.mrb[9].mxu1 }
 0x48e   : > { %v3468_v28 = vadd.f32 %v3460_v62, %v3440_v59  ;;  %v4515_v50 = vpop.f32.mrb[10].mxu1 }
 0x48f   : > { %3478 = vst [vmem:[%s298_s27 + $0x30] sm:$0xff] %v3470_v58  ;;  %v3471_v51 = vadd.f32 %v4515_v50, %v3463_v25  ;;  %v3443_v0 = vpop.f32.mrb[11].mxu1 }
 0x490   : > { %3476 = vst [vmem:[%s298_s27 + $0x20] sm:$0xff] %v3468_v28  ;;  %v3469_v17 = vadd.f32 %v3461_v63, %v3443_v0 }
 0x491   : > { %3479 = vst [vmem:[%s298_s27 + $0x38] sm:$0xff] %v3471_v51 }
 0x492   : > { %3477 = vst [vmem:[%s298_s27 + $0x28] sm:$0xff] %v3469_v17 }
 0x493   : > { %5058 = shalt.err (!%p5055_p3)
}
 0x494   : > { %s5059_s26 = scalar_lea.hbm %s5936_s13, 1024  ;;  %s5063_s10 = scalar_lea.hbm %s5987_s5, 2048 }
 0x495   : > { %p5060_p8 = scmp.ne.s32.totalorder %s5936_s13, %s5059_s26  ;;  %p5064_p9 = scmp.lt.u32.totalorder %s5936_s13, %s5987_s5 }
 0x496   : > { %p5065_p0 = scmp.lt.u32.totalorder %s5063_s10, %s5059_s26  ;;  %p5067_p2 = scmp.lt.u32.totalorder %s5059_s26, %s5936_s13 }
 0x497   : > { %p5061_p11 = pnand %p5060_p8, %p5331_p12 }
 0x498   : > { %p5066_p1 = por %p5065_p0, %p5064_p9 }
 0x499   : > { %p5062_p13 = pneg %p5061_p11 }
 0x49a   : > { %p5068_p10 = por %p5067_p2, %p5066_p1 }
 0x49c   : > { %p5069_p5 = pnand %p5068_p10, %p5062_p13 }
 0x49e   : > { %5072 = shalt.err (!%p5069_p5)
}
 0x49f   : > { %s5136_s30 = smov 128   ;;  %s5137_s8 = smov 8  }
 0x4a0   : > { %4681 = dma.vmem_to_hbm [thread:$0]  (%p5331_p12), %s5938_s7, 1024, %s5936_s13, %s3481_s22, %s5136_s30, %s5136_s30, %s5137_s8  }
 0x4a1 PF: > { %s3509_s11 = sand.u32 1, %s5111_s18   ;;  %p6007_p7 = scmp.ne.s32.totalorder %s5992_s25, 0 }
 0x4a2   : > { %p6008_p4 = scmp.ge.s32.totalorder %s5123_s21, 2  ;;  %s3510_s14 = scalar_lea.sflag [#allocation6], %s3509_s11 }
 0x4a4   : > { %p4701_p6 = pnand %p6008_p4, %p6007_p7 }
 0x4a6   : > { %5106 = dma.done.wait (!%p4701_p6), %s3510_s14, 1024  }
 0x4a7   : > { %5108 = vsyncadd (!%p4701_p6), %s3510_s14, 4294966272  ;;  %p21_p3 = scmp.ge.s32.totalorder %s5321_s12, 4   ;;  %s6009_s18 = smov %s5115_s19 }
 0x4a8   : > { %s6010_s19 = smov %s5119_s20  ;;  %s6011_s20 = smov %s5337_s23 }
 0x4a9   : > { %s6012_s21 = smov %s5321_s12  ;;  %23 = sbr.rel (!%p21_p3) target bundleno = 8 (0x8), region = 129 }
 0x4b0   :  { %3515 = vsyncpa [#allocation5], 1 }
 0x4b1   :  { %3517 = vsyncpa [#allocation5 + $0x1], 1 }
 0x4b2   :  { %3518 = vsyncpa [#allocation10], 1 }
 0x4b3   :  { %3519 = vsyncpa [#allocation13], 1 }
 0x4b4   :  { %3520 = vsyncpa [#allocation6], 1 }
 0x4b5   :  { %3522 = vsyncpa [#allocation6 + $0x1], 1 }
 0x4b6   :  { %3523 = vsyncpa [#allocation7], 1 }
 0x4b7   :  { %3525 = vsyncpa [#allocation7 + $0x1], 1 }

// kernel: _lambda_.3
= control target key start
LH: loop header
LB: loop body
LE: loop exit
PB: predicated region body
PF: predicated region fallthrough
CT: control target
= control target key end

     0   :  { %9 = vsyncpa [#allocation7], 0  ;;  %s5250_s0 = inlined_call_operand.hbm [shape: f32[5], index: 0, kind: input, shape index: {}]   ;;  %s5251_s1 = inlined_call_operand.hbm [shape: f32[2,8,8,128], index: 1, kind: input, shape index: {}]   ;;  %s5252_s2 = inlined_call_operand.hbm [shape: bf16[9,128,128], index: 2, kind: input, shape index: {}]   ;;  %s5253_s3 = inlined_call_operand.hbm [shape: bf16[9,128,128], index: 3, kind: input, shape index: {}]   ;;  %s5254_s4 = inlined_call_operand.hbm [shape: f32[2,8,8,128], index: 4, kind: output, shape index: {}]  }
   0x1   :  { %10 = vsyncpa [#allocation5], 0 }
   0x2   :  { %12 = vsyncpa [#allocation5 + $0x1], 0 }
   0x3   :  { %13 = vsyncpa [#allocation10], 0 }
   0x4   :  { %14 = vsyncpa [#allocation6], 0 }
   0x5   :  { %16 = vsyncpa [#allocation6 + $0x1], 0  ;;  %s4587_s15 = smov 0   ;;  %s4589_s16 = smov 0  }
   0x6   :  { %s4591_s17 = smov 0   ;;  %s4593_s18 = smov 0  }
   0x7 LB: > { %s4608_s19 = sadd.s32 4294967295, %s4548_s18   ;;  %s3200_s20 = sadd.s32 4294967294, %s4548_s18   ;;  %s4548_s18 = sphi %s4593_s18, %s5277_s18   ;;  %s4544_s17 = sphi %s4591_s17, %s5276_s17   ;;  %s4540_s16 = sphi %s4589_s16, %s5275_s16   ;;  %s4536_s15 = sphi %s4587_s15, %s5274_s15  }
   0x8   : > { %p63_p0 = scmp.ne.s32.totalorder %s4540_s16, %s4536_s15  ;;  %p5255_p1 = scmp.eq.s32.totalorder %s4608_s19, 0 }
   0x9   : > { %p135_p3 = scmp.eq.s32.totalorder %s3200_s20, 1  ;;  %p3201_p5 = scmp.ge.s32.totalorder %s4548_s18, 1 }
   0xa   : > { %p4617_p4 = por %p5255_p1, %p63_p0  ;;  %p142_p7 = scmp.lt.s32.totalorder %s4548_s18, 3 }
   0xb   : > { %p4622_p6 = por %p135_p3, %p63_p0  ;;  %s4550_s24 = smov [#allocation9]  }
   0xc   : > { %s5258_s21 = scalar_select %p4617_p4, 1, 0 }
   0xd   : > { %s5259_s22 = scalar_select %p4622_p6, 1, 0 }
   0xe   : > { %p4627_p8 = pnand %p3201_p5, %p142_p7  ;;  %s163_s25 = sshll.u32 %s4550_s24, 4  ;;  %s4631_s25 = int_to_ptr.vmem [resolvable:$true] %s163_s25 }
   0xf   : > { %s4551_s27 = smov [#allocation11]   ;;  %s4375_s5 = scalar_lea.hbm %s5252_s2, 9216 }
  0x10   : > { %p4162_p9 = pneg %p4627_p8  ;;  %s176_s28 = sshll.u32 %s4551_s27, 4  ;;  %s4642_s28 = int_to_ptr.vmem [resolvable:$true] %s176_s28 }
  0x11   : > { %p4376_p12 = scmp.ne.s32.totalorder %s5252_s2, %s4375_s5  ;;  %p4382_p5 = scmp.lt.u32.totalorder %s4375_s5, %s5252_s2 }
  0x12   : > { %p4638_p11 = pnand %p4162_p9, %p5255_p1 }
  0x14   : > { %p4652_p13 = pneg %p4638_p11 }
  0x16   : > { %p4378_p0 = pnand %p4652_p13, %p4376_p12 }
  0x18   : > { %p4379_p3 = pneg %p4378_p0 }
  0x1a   : > { %p4384_p7 = pnand %p4382_p5, %p4379_p3 }
  0x1c   : > { %4387 = shalt.err (!%p4384_p7)
}
  0x1d   : > { %s4388_s11 = scalar_lea.vmem %s4631_s25, 9216  ;;  %p4396_p2 = scmp.lt.s32.totalorder %s4631_s25, %s4631_s25 }
  0x1e   : > { %p4389_p9 = scmp.ne.s32.totalorder %s4631_s25, %s4388_s11  ;;  %p4397_p6 = scmp.lt.s32.totalorder %s4388_s11, %s4388_s11 }
  0x20   : > { %p4391_p10 = pnand %p4389_p9, %p4652_p13  ;;  %p4398_p12 = por %p4397_p6, %p4396_p2 }
  0x22   : > { %p4392_p1 = pneg %p4391_p10 }
  0x24   : > { %p4399_p0 = pnand %p4398_p12, %p4392_p1 }
  0x26   : > { %4402 = shalt.err (!%p4399_p0)
}
  0x27   : > { %s4552_s12 = smov 64   ;;  %s4553_s13 = smov 4  }
  0x28   : > { %4168 = dma.hbm_to_vmem [thread:$0]  (!%p4638_p11), %s5252_s2, 9216, %s4631_s25, [#allocation10], %s4552_s12, %s4552_s12, %s4553_s13  }
  0x29   : > { %s4403_s29 = scalar_lea.hbm %s5250_s0, 16 }
  0x2a   : > { %p4404_p1 = scmp.ne.s32.totalorder %s5250_s0, %s4403_s29  ;;  %p4410_p10 = scmp.lt.u32.totalorder %s4403_s29, %s5250_s0 }
  0x2c   : > { %p4406_p2 = pnand %p4404_p1, %p4652_p13 }
  0x2e   : > { %p4407_p6 = pneg %p4406_p2 }
  0x30   : > { %p4412_p3 = pnand %p4410_p10, %p4407_p6 }
  0x32   : > { %4415 = shalt.err (!%p4412_p3)
}
  0x33   : > { %s4554_s9 = smov [#allocation4]   ;;  %s4416_s20 = scalar_lea.hbm %s5253_s3, 9216 }
  0x34   : > { %4165 = dma.hbm_to_smem (!%p4638_p11), %s5250_s0, 16, %s4554_s9, [#allocation7]  }
  0x35   : > { %p4417_p5 = scmp.ne.s32.totalorder %s5253_s3, %s4416_s20  ;;  %p4423_p12 = scmp.lt.u32.totalorder %s4416_s20, %s5253_s3 }
  0x37   : > { %p4419_p7 = pnand %p4417_p5, %p4652_p13 }
  0x39   : > { %p4420_p9 = pneg %p4419_p7 }
  0x3b   : > { %p4425_p0 = pnand %p4423_p12, %p4420_p9 }
  0x3d   : > { %4428 = shalt.err (!%p4425_p0)
}
  0x3e   : > { %s4429_s5 = scalar_lea.vmem %s4642_s28, 9216  ;;  %p4437_p10 = scmp.lt.s32.totalorder %s4642_s28, %s4642_s28 }
  0x3f   : > { %p4430_p1 = scmp.ne.s32.totalorder %s4642_s28, %s4429_s5  ;;  %p4438_p3 = scmp.lt.s32.totalorder %s4429_s5, %s4429_s5 }
  0x41   : > { %p4432_p2 = pnand %p4430_p1, %p4652_p13  ;;  %p4439_p5 = por %p4438_p3, %p4437_p10 }
  0x43   : > { %p4433_p6 = pneg %p4432_p2 }
  0x45   : > { %p4440_p7 = pnand %p4439_p5, %p4433_p6 }
  0x47   : > { %4443 = shalt.err (!%p4440_p7)
}
  0x48   : > { %4171 = dma.hbm_to_vmem [thread:$0]  (!%p4638_p11), %s5253_s3, 9216, %s4642_s28, [#allocation10], %s4552_s12, %s4552_s12, %s4553_s13  }
  0x49   : > { %s4719_s26 = sadd.s32 1, %s4548_s18   ;;  %s50_s9 = sadd.s32 1, %s4544_s17 }
  0x4a   : > { %s47_s8 = ssub.s32 %s4548_s18, %s4719_s26  ;;  %p57_p9 = scmp.ne.s32.totalorder %s4544_s17, %s4540_s16 }
  0x4b   : > { %p48_p13 = scmp.eq.s32.totalorder %s47_s8, 0  ;;  %p58_p12 = scmp.eq.s32.totalorder %s4548_s18, 0 }
  0x4c   : > { %p4183_p0 = scmp.lt.s32.totalorder %s4548_s18, 2  ;;  %p5263_p2 = scmp.eq.s32.totalorder %s4608_s19, 1 }
  0x4d   : > { %s4729_s25 = scalar_select %p48_p13, %s4544_s17, %s50_s9  }
  0x4e   : > { %p59_p1 = por %p58_p12, %p57_p9  ;;  %p4733_p6 = por %p5263_p2, %p57_p9 }
  0x4f   : > { %s190_s11 = sand.u32 1, %s4544_s17   ;;  %s3368_s14 = sshll.u32 %s4548_s18, 10 }
  0x50   : > { %s5264_s10 = scalar_select %p4733_p6, 1, 0 }
  0x51   : > { %s3206_s28 = sshll.u32 %s190_s11, 6  ;;  %s4742_s20 = scalar_lea.hbm %s5251_s1, %s3368_s14 }
  0x52   : > { %s194_s24 = scalar_lea.vmem [#allocation8], %s3206_s28  ;;  %p4744_p11 = pnand %p4183_p0, %p59_p1 }
  0x53   : > { %s201_s27 = sshll.u32 %s194_s24, 4  ;;  %s4750_s30 = scalar_lea.sflag [#allocation5], %s190_s11  ;;  %s4748_s27 = int_to_ptr.vmem [resolvable:$true] %s201_s27 }
  0x54   : > { %s4444_s5 = scalar_lea.hbm %s4742_s20, 1024  ;;  %p4446_p3 = pneg %p4744_p11 }
  0x55   : > { %p4445_p10 = scmp.ne.s32.totalorder %s4742_s20, %s4444_s5  ;;  %s4449_s8 = scalar_lea.hbm %s5251_s1, 2048 }
  0x56   : > { %p4450_p13 = scmp.lt.u32.totalorder %s4742_s20, %s5251_s1  ;;  %p4451_p9 = scmp.lt.u32.totalorder %s4449_s8, %s4444_s5 }
  0x57   : > { %p4447_p5 = pnand %p4446_p3, %p4445_p10  ;;  %p4453_p0 = scmp.lt.u32.totalorder %s4444_s5, %s4742_s20 }
  0x58   : > { %p4452_p12 = por %p4451_p9, %p4450_p13 }
  0x59   : > { %p4448_p7 = pneg %p4447_p5 }
  0x5a   : > { %p4454_p1 = por %p4453_p0, %p4452_p12 }
  0x5c   : > { %p4455_p2 = pnand %p4454_p1, %p4448_p7 }
  0x5e   : > { %4458 = shalt.err (!%p4455_p2)
}
  0x5f   : > { %s4459_s11 = scalar_lea.vmem %s4748_s27, 1024  ;;  %s4555_s28 = smov [#allocation8]  }
  0x60   : > { %p4460_p10 = scmp.ne.s32.totalorder %s4748_s27, %s4459_s11  ;;  %s4464_s12 = sshll.u32 %s4555_s28, 4  ;;  %s4465_s12 = int_to_ptr.vmem [resolvable:$false] %s4464_s12 }
  0x61   : > { %s4466_s13 = scalar_lea.vmem %s4465_s12, 2048  ;;  %p4467_p4 = scmp.lt.s32.totalorder %s4748_s27, %s4465_s12 }
  0x62   : > { %p4462_p5 = pnand %p4460_p10, %p4446_p3  ;;  %p4468_p13 = scmp.lt.s32.totalorder %s4466_s13, %s4459_s11 }
  0x64   : > { %p4463_p6 = pneg %p4462_p5  ;;  %p4469_p9 = por %p4468_p13, %p4467_p4 }
  0x66   : > { %p4470_p12 = pnand %p4469_p9, %p4463_p6 }
  0x68   : > { %4473 = shalt.err (!%p4470_p12)
}
  0x69   : > { %s4556_s24 = smov 128   ;;  %s4557_s5 = smov 8  }
  0x6a   : > { %4175 = dma.hbm_to_vmem [thread:$0]  (!%p4744_p11), %s4742_s20, 1024, %s4748_s27, %s4750_s30, %s4556_s24, %s4556_s24, %s4557_s5  }
  0x6b   : > { %213 = sbr.rel (%p4627_p8) target bundleno = 1134 (0x46e), region = 36  ;;  %p5266_p3 = scmp.eq.s32.totalorder (!%p4627_p8), %s4608_s19, 0 }
  0x72   : > { %4519 = dma.done.wait (%p5266_p3), [#allocation7], 16   ;;  %p5267_p7 = pmov %p5266_p3 }
  0x73   : > { %s4785_s6 = sand.u32 1, %s4540_s16   ;;  %p5268_p4 = scmp.ne.s32.totalorder %s5258_s21, 0 }
  0x74   : > { %4521 = vsyncadd (%p5267_p7), [#allocation7], 4294967280  ;;  %s3211_s7 = sshll.u32 %s4785_s6, 6  ;;  %s220_s8 = scalar_lea.sflag [#allocation5], %s4785_s6 }
  0x75   : > { %s4791_s20 = scalar_lea.vmem [#allocation8], %s3211_s7 }
  0x76   : > { %4523 = dma.done.wait (%p5268_p4), %s220_s8, 1024  }
  0x77   : > { %4525 = vsyncadd (%p5268_p4), %s220_s8, 4294966272  ;;  %p5269_p8 = pmov %p5266_p3 }
  0x78   : > { %p5270_p6 = pmov %p5266_p3 }
  0x79   : > { %4527 = dma.done.wait (%p5269_p8), [#allocation10], 18432  }
  0x7a   : > { %4529 = vsyncadd (%p5270_p6), [#allocation10], 4294948864 }
  0x7b   : > { %236 = sfence }
  0x7c   : > { %v4230_v0 = vld [vmem:[#allocation9 + $0x40] sm:$0xff]   ;;  %v4231_v1 = vld [vmem:[#allocation9 + $0x48] sm:$0xff]   ;;  %v4558_v2 = vmov 0.0   ;;  %v4232_v3 = vld [vmem:[#allocation9 + $0x50] sm:$0xff]   ;;  %s258_s21 = sld [smem:[#allocation4]]  ;;  %s3215_s23 = sld [smem:[#allocation4 + $0x1]] }
  0x7d   : > { %263 = vst [vmem:[#allocation2] sm:$0xff] %v4558_v2  ;;  %264 = vst [vmem:[#allocation2 + $0x8] sm:$0x3] %v4558_v2  ;;  %3586 = vmatprep.subr.bf16.mxu0 %v4230_v0  ;;  %v4233_v4 = vld [vmem:[#allocation9 + $0x58] sm:$0xff]   ;;  %v4234_v5 = vld [vmem:[#allocation9 + $0x60] sm:$0xff]   ;;  %s3216_s27 = sld [smem:[#allocation4 + $0x2]] }
  0x7e   : > { %265 = vst [vmem:[#allocation2 + $0x10] sm:$0xff] %v4558_v2  ;;  %266 = vst [vmem:[#allocation2 + $0x18] sm:$0x3] %v4558_v2  ;;  %3587 = vmatpush3.bf16.msra.mxu0 %v4230_v0  ;;  %v283_v6 = vld [vmem:[%s4791_s20] sm:$0xff]  ;;  %v284_v7 = vld [vmem:[%s4791_s20 + $0x8] sm:$0xff]  ;;  %s3217_s29 = sld [smem:[#allocation4 + $0x3]] }
  0x7f   : > { %267 = vst [vmem:[#allocation2 + $0x20] sm:$0xff] %v4558_v2  ;;  %268 = vst [vmem:[#allocation2 + $0x28] sm:$0x3] %v4558_v2  ;;  %3588 = vmatprep.subr.bf16.mxu0 %v4231_v1  ;;  %v285_v8 = vld [vmem:[%s4791_s20 + $0x10] sm:$0xff]  ;;  %v4235_v10 = vld [vmem:[#allocation9 + $0x68] sm:$0xff]   ;;  %s3218_s30 = sld [smem:[#allocation4 + $0x4]] }
  0x80   : > { %269 = vst [vmem:[#allocation2 + $0x30] sm:$0xff] %v4558_v2  ;;  %270 = vst [vmem:[#allocation2 + $0x38] sm:$0x3] %v4558_v2  ;;  %v286_v14 = vld [vmem:[%s4791_s20 + $0x18] sm:$0xff]  ;;  %v287_v16 = vld [vmem:[%s4791_s20 + $0x20] sm:$0xff]  ;;  %s256_s9 = scalar_lea.vmem [#allocation12], %s3211_s7 }
  0x81   : > { %271 = vst [vmem:[#allocation2 + $0x40] sm:$0xff] %v4558_v2  ;;  %272 = vst [vmem:[#allocation2 + $0x48] sm:$0x3] %v4558_v2  ;;  %v288_v22 = vld [vmem:[%s4791_s20 + $0x28] sm:$0xff]  ;;  %v289_v23 = vld [vmem:[%s4791_s20 + $0x30] sm:$0xff]  ;;  %s3369_s14 = sshll.u32 %s4608_s19, 10 }
  0x82   : > { %273 = vst [vmem:[#allocation2 + $0x50] sm:$0xff] %v4558_v2  ;;  %274 = vst [vmem:[#allocation2 + $0x58] sm:$0x3] %v4558_v2  ;;  %3589 = vmatpush3.bf16.msra.mxu0 %v4231_v1  ;;  %v4844_v9 = vstv %s258_s21  ;;  %v4850_v15 = vstv %s3215_s23  ;;  %v4236_v28 = vld [vmem:[#allocation9 + $0x70] sm:$0xff]   ;;  %v4237_v40 = vld [vmem:[#allocation9 + $0x78] sm:$0xff]   ;;  %s3096_s11 = sshll.u32 %s256_s9, 4  ;;  %s5204_s13 = scalar_lea.hbm %s5254_s4, %s3369_s14  ;;  %s5206_s11 = int_to_ptr.vmem [resolvable:$true] %s3096_s11 }
  0x83   : > { %275 = vst [vmem:[#allocation2 + $0x60] sm:$0xff] %v4558_v2  ;;  %276 = vst [vmem:[#allocation2 + $0x68] sm:$0x3] %v4558_v2  ;;  %3590 = vmatprep.subr.bf16.mxu0 %v4232_v3  ;;  %v292_v11 = vadd.f32 %v4844_v9, %v283_v6  ;;  %v293_v12 = vadd.f32 %v4844_v9, %v284_v7  ;;  %v294_v13 = vadd.f32 %v4844_v9, %v285_v8  ;;  %v4238_v41 = vld [vmem:[#allocation9] sm:$0xff]   ;;  %v4239_v45 = vld [vmem:[#allocation9 + $0x8] sm:$0xff]   ;;  %s3083_s19 = scalar_lea.sflag [#allocation6], %s4785_s6 }
  0x84   : > { %277 = vst [vmem:[#allocation2 + $0x70] sm:$0xff] %v4558_v2  ;;  %278 = vst [vmem:[#allocation2 + $0x78] sm:$0x3] %v4558_v2  ;;  %v295_v17 = vadd.f32 %v4844_v9, %v286_v14  ;;  %v296_v21 = vadd.f32 %v4844_v9, %v287_v16  ;;  %v354_v24 = vld [vmem:[#allocation2 + $0x1] sm:$0xff]  ;;  %v297_v26 = vadd.f32 %v4844_v9, %v288_v22  ;;  %v4240_v47 = vld [vmem:[#allocation9 + $0x10] sm:$0xff]   ;;  %s4474_s24 = scalar_lea.vmem %s5206_s11, 1024 }
  0x85   : > { %279 = vst [vmem:[#allocation2 + $0x80] sm:$0xff] %v4558_v2  ;;  %280 = vst [vmem:[#allocation2 + $0x88] sm:$0x3] %v4558_v2  ;;  %v300_v18 = vmax.f32 %v292_v11, 0.0  ;;  %v301_v19 = vmax.f32 %v293_v12, 0.0  ;;  %v302_v20 = vmax.f32 %v294_v13, 0.0  ;;  %v298_v27 = vadd.f32 %v4844_v9, %v289_v23  ;;  %p4475_p11 = scmp.ne.s32.totalorder %s5206_s11, %s4474_s24 }
  0x86   : > { %281 = vst [vmem:[#allocation2 + $0x90] sm:$0xff] %v4558_v2  ;;  %282 = vst [vmem:[#allocation2 + $0x98] sm:$0x3] %v4558_v2  ;;  %3591 = vmatpush3.bf16.msra.mxu0 %v4232_v3  ;;  %v303_v25 = vmax.f32 %v295_v17, 0.0  ;;  %v304_v32 = vmax.f32 %v296_v21, 0.0  ;;  %v305_v34 = vmax.f32 %v297_v26, 0.0 }
  0x87   : > { %1686 = vst [vmem:[#allocation3] sm:$0xff] %v4558_v2  ;;  %1687 = vst [vmem:[#allocation3 + $0x8] sm:$0x3] %v4558_v2  ;;  %3592 = vmatprep.subr.bf16.mxu0 %v4233_v4  ;;  %v4860_v29 = vadd.f32 %v4850_v15, %v300_v18  ;;  %v4863_v30 = vadd.f32 %v4850_v15, %v301_v19  ;;  %v4866_v31 = vadd.f32 %v4850_v15, %v302_v20  ;;  %v4241_v51 = vld [vmem:[#allocation9 + $0x18] sm:$0xff]   ;;  %v4242_v52 = vld [vmem:[#allocation9 + $0x20] sm:$0xff]   ;;  %p5271_p0 = scmp.ne.s32.totalorder %s5264_s10, 0 }
  0x88   : > { %1688 = vst [vmem:[#allocation3 + $0x10] sm:$0xff] %v4558_v2  ;;  %1689 = vst [vmem:[#allocation3 + $0x18] sm:$0x3] %v4558_v2  ;;  %v4869_v33 = vadd.f32 %v4850_v15, %v303_v25  ;;  %v306_v35 = vmax.f32 %v298_v27, 0.0  ;;  %v4876_v37 = vadd.f32 %v4850_v15, %v304_v32  ;;  %v4880_v38 = vadd.f32 %v4850_v15, %v305_v34  ;;  %v290_v53 = vld [vmem:[%s4791_s20 + $0x38] sm:$0xff]  ;;  %v4243_v54 = vld [vmem:[#allocation9 + $0x28] sm:$0xff]  }
  0x89   : > { %1690 = vst [vmem:[#allocation3 + $0x20] sm:$0xff] %v4558_v2  ;;  %1691 = vst [vmem:[#allocation3 + $0x28] sm:$0x3] %v4558_v2  ;;  %v362_v36 = vpack.c.bf16 %v4860_v29, %v354_v24  ;;  %v4890_v42 = vpack.c.bf16 %v4866_v31, %v4863_v30  ;;  %v917_v44 = vpack.c.bf16 %v4863_v30, %v4860_v29  ;;  %v4244_v57 = vld [vmem:[#allocation9 + $0x30] sm:$0xff]   ;;  %v4245_v59 = vld [vmem:[#allocation9 + $0x38] sm:$0xff]   ;;  %p4476_p1 = pnand %p4475_p11, %p5271_p0  ;;  %s4559_s5 = smov [#allocation12]  }
  0x8a   : > { %1692 = vst [vmem:[#allocation3 + $0x30] sm:$0xff] %v4558_v2  ;;  %1693 = vst [vmem:[#allocation3 + $0x38] sm:$0x3] %v4558_v2  ;;  %3593 = vmatpush3.bf16.msra.mxu0 %v4233_v4  ;;  %v4883_v39 = vadd.f32 %v4850_v15, %v306_v35  ;;  %v4894_v43 = vpack.c.bf16 %v4876_v37, %v4869_v33  ;;  %v918_v46 = vpack.c.bf16 %v4869_v33, %v4866_v31  ;;  %v4246_v63 = vld [vmem:[#allocation9 + $0x80] sm:$0xff]   ;;  %v4247_v6 = vld [vmem:[#allocation9 + $0x88] sm:$0xff]   ;;  %s4478_s7 = sshll.u32 %s4559_s5, 4  ;;  %s4479_s7 = int_to_ptr.vmem [resolvable:$false] %s4478_s7 }
  0x8b   : > { %1694 = vst [vmem:[#allocation3 + $0x40] sm:$0xff] %v4558_v2  ;;  %1695 = vst [vmem:[#allocation3 + $0x48] sm:$0x3] %v4558_v2  ;;  %3594 = vmatprep.subr.bf16.mxu0 %v4234_v5  ;;  %3602 = vmatprep.mubr.bf16.mxu0 %v362_v36  ;;  %v299_v55 = vadd.f32 %v4844_v9, %v290_v53  ;;  %v919_v60 = vpack.c.bf16 %v4880_v38, %v4876_v37  ;;  %v4248_v12 = vld [vmem:[#allocation9 + $0x90] sm:$0xff]   ;;  %v609_v13 = vld [vmem:[#allocation2 + $0x2] sm:$0xff]  ;;  %p4477_p2 = pneg %p4476_p1  ;;  %s4480_s8 = scalar_lea.vmem %s4479_s7, 2048 }
  0x8c   : > { %1696 = vst [vmem:[#allocation3 + $0x50] sm:$0xff] %v4558_v2  ;;  %1697 = vst [vmem:[#allocation3 + $0x58] sm:$0x3] %v4558_v2  ;;  %v4906_v49 = vpack.c.bf16 %v4883_v39, %v4880_v38  ;;  %v4249_v16 = vld [vmem:[#allocation9 + $0x98] sm:$0xff]   ;;  %v4250_v18 = vld [vmem:[#allocation9 + $0xa0] sm:$0xff]   ;;  %p4481_p10 = scmp.lt.s32.totalorder %s5206_s11, %s4479_s7  ;;  %p4482_p5 = scmp.lt.s32.totalorder %s4480_s8, %s4474_s24 }
  0x8d   : > { %1698 = vst [vmem:[#allocation3 + $0x60] sm:$0xff] %v4558_v2  ;;  %1699 = vst [vmem:[#allocation3 + $0x68] sm:$0x3] %v4558_v2  ;;  %v307_v56 = vmax.f32 %v299_v55, 0.0  ;;  %v4251_v19 = vld [vmem:[#allocation9 + $0xa8] sm:$0xff]   ;;  %v4252_v20 = vld [vmem:[#allocation9 + $0xb0] sm:$0xff]  }
  0x8e   : > { %1700 = vst [vmem:[#allocation3 + $0x70] sm:$0xff] %v4558_v2  ;;  %1701 = vst [vmem:[#allocation3 + $0x78] sm:$0x3] %v4558_v2  ;;  %3595 = vmatpush3.bf16.msra.mxu0 %v4234_v5  ;;  %v4253_v24 = vld [vmem:[#allocation9 + $0xb8] sm:$0xff]   ;;  %v4254_v25 = vld [vmem:[#allocation9 + $0xc0] sm:$0xff]   ;;  %p4483_p13 = por %p4482_p5, %p4481_p10 }
  0x8f   : > { %1702 = vst [vmem:[#allocation3 + $0x80] sm:$0xff] %v4558_v2  ;;  %1703 = vst [vmem:[#allocation3 + $0x88] sm:$0x3] %v4558_v2  ;;  %3596 = vmatprep.subr.bf16.mxu0 %v4235_v10  ;;  %v4914_v58 = vadd.f32 %v4850_v15, %v307_v56  ;;  %v4255_v27 = vld [vmem:[#allocation9 + $0xc8] sm:$0xff]   ;;  %v4256_v32 = vld [vmem:[#allocation9 + $0xd0] sm:$0xff]  }
  0x90   : > { %1704 = vst [vmem:[#allocation3 + $0x90] sm:$0xff] %v4558_v2  ;;  %1705 = vst [vmem:[#allocation3 + $0x98] sm:$0x3] %v4558_v2  ;;  %v4257_v36 = vld [vmem:[#allocation9 + $0xd8] sm:$0xff]   ;;  %v4263_v53 = vld [vmem:[#allocation9 + $0x108] sm:$0xff]   ;;  %p4484_p9 = pnand %p4483_p13, %p4477_p2 }
  0x91   : > { %318 = vst [vmem:[#allocation2 + $0x11] sm:$0xff] %v4860_v29  ;;  %319 = vst [vmem:[#allocation2 + $0x21] sm:$0xff] %v4863_v30  ;;  %v4264_v55 = vld [vmem:[#allocation9 + $0x110] sm:$0xff]   ;;  %v920_v30 = vpack.c.bf16 %v4914_v58, %v4883_v39 }
  0x92   : > { %320 = vst [vmem:[#allocation2 + $0x31] sm:$0xff] %v4866_v31  ;;  %321 = vst [vmem:[#allocation2 + $0x41] sm:$0xff] %v4869_v33  ;;  %3597 = vmatpush3.bf16.msra.mxu0 %v4235_v10  ;;  %v4272_v29 = vld [vmem:[#allocation9 + $0x150] sm:$0xff]   ;;  %v4274_v31 = vld [vmem:[#allocation9 + $0x160] sm:$0xff]  }
  0x93   : > { %322 = vst [vmem:[#allocation2 + $0x51] sm:$0xff] %v4876_v37  ;;  %3598 = vmatprep.subr.bf16.mxu0 %v4236_v28  ;;  %323 = vst [vmem:[#allocation2 + $0x61] sm:$0xff] %v4880_v38  ;;  %v4304_v33 = vld [vmem:[#allocation11 + $0x50] sm:$0xff]   ;;  %v4275_v37 = vld [vmem:[#allocation9 + $0x168] sm:$0xff]  }
  0x94   : > { %324 = vst [vmem:[#allocation2 + $0x71] sm:$0xff] %v4883_v39  ;;  %325 = vst [vmem:[#allocation2 + $0x81] sm:$0xff] %v4914_v58  ;;  %v4305_v38 = vld [vmem:[#allocation11 + $0x58] sm:$0xff]   ;;  %v4276_v39 = vld [vmem:[#allocation9 + $0x170] sm:$0xff]  }
  0x96   : > { %3599 = vmatpush3.bf16.msra.mxu0 %v4236_v28 }
  0x97   : > { %3600 = vmatprep.subr.bf16.mxu0 %v4237_v40 }
  0x98   : > { %v4902_v48 = vld [vmem:[#allocation2 + $0x10] sm:$0xff]  ;;  %v4919_v61 = vld [vmem:[#allocation2 + $0x20] sm:$0xff] }
  0x99   : > { %v334_v50 = vpack.c.bf16 %v4902_v48, %v4558_v2  ;;  %v4921_v62 = vld [vmem:[#allocation2 + $0x30] sm:$0xff]  ;;  %v4923_v0 = vld [vmem:[#allocation2 + $0x40] sm:$0xff] }
  0x9a   : > { %3601 = vmatpush3.bf16.msra.mxu0 %v4237_v40  ;;  %v4925_v1 = vld [vmem:[#allocation2 + $0x50] sm:$0xff]  ;;  %v4929_v3 = vld [vmem:[#allocation2 + $0x22] sm:$0xff]  ;;  %v4935_v5 = vpack.c.bf16 %v4921_v62, %v4919_v61  ;;  %v767_v40 = vpack.c.bf16 %v4919_v61, %v4902_v48  ;;  %v768_v48 = vpack.c.bf16 %v4923_v0, %v4921_v62 }
  0x9b   : > { %3610 = vmatprep.subr.bf16.mxu0 %v4238_v41  ;;  %v4927_v2 = vld [vmem:[#allocation2 + $0x12] sm:$0xff]  ;;  %v4939_v7 = vpack.c.bf16 %v4925_v1, %v4923_v0  ;;  %v4941_v8 = vld [vmem:[#allocation2 + $0x42] sm:$0xff] }
  0x9c   : > { %v4931_v4 = vld [vmem:[#allocation2 + $0x32] sm:$0xff]  ;;  %v1067_v9 = vpack.c.bf16 %v4929_v3, %v4927_v2  ;;  %v4947_v11 = vld [vmem:[#allocation2 + $0x60] sm:$0xff]  ;;  %v617_v17 = vpack.c.bf16 %v4927_v2, %v609_v13  ;;  %v4267_v61 = vld [vmem:[#allocation9 + $0x128] sm:$0xff]  }
  0x9d   : > { %3603 = vmatmul.mubr.bf16.vlgmr.msra.gmra.mrb[0].mxu0 %v4890_v42  ;;  %v1068_v10 = vpack.c.bf16 %v4941_v8, %v4931_v4  ;;  %v4951_v14 = vld [vmem:[#allocation2 + $0x70] sm:$0xff]  ;;  %v4961_v22 = vld [vmem:[#allocation2 + $0x62] sm:$0xff]  ;;  %v4967_v26 = vpack.c.bf16 %v4931_v4, %v4929_v3  ;;  %v4281_v13 = vld [vmem:[#allocation9 + $0x198] sm:$0xff]  }
  0x9e   : > { %3611 = vmatpush3.bf16.msra.mxu0 %v4238_v41  ;;  %3606 = vmatprep.mubr.bf16.mxu0 %v4894_v43  ;;  %v4955_v15 = vpack.c.bf16 %v4951_v14, %v4947_v11  ;;  %v4959_v21 = vld [vmem:[#allocation2 + $0x52] sm:$0xff]  ;;  %v4258_v41 = vld [vmem:[#allocation9 + $0xe0] sm:$0xff]   ;;  %v4279_v2 = vld [vmem:[#allocation9 + $0x188] sm:$0xff]  }
  0x9f   : > { %3612 = vmatprep.subr.bf16.mxu0 %v4239_v45  ;;  %v1069_v23 = vpack.c.bf16 %v4961_v22, %v4959_v21  ;;  %v4971_v28 = vpack.c.bf16 %v4959_v21, %v4941_v8  ;;  %v4975_v34 = vld [vmem:[#allocation2 + $0x72] sm:$0xff]  ;;  %v4270_v0 = vld [vmem:[#allocation9 + $0x140] sm:$0xff]   ;;  %v4283_v8 = vld [vmem:[#allocation9 + $0x1a8] sm:$0xff]  }
  0xa0   : > { %v4979_v35 = vpack.c.bf16 %v4975_v34, %v4961_v22  ;;  %v4268_v62 = vld [vmem:[#allocation9 + $0x130] sm:$0xff]   ;;  %v5012_v3 = vld [vmem:[#allocation2 + $0x82] sm:$0xff]  ;;  %v4293_v22 = vld [vmem:[#allocation9 + $0x1f8] sm:$0xff]  }
  0xa1   : > { %v4282_v4 = vld [vmem:[#allocation9 + $0x1a0] sm:$0xff]  }
  0xa2   : > { %3613 = vmatpush3.bf16.msra.mxu0 %v4239_v45  ;;  %v4259_v45 = vld [vmem:[#allocation9 + $0xe8] sm:$0xff]   ;;  %v4290_v21 = vld [vmem:[#allocation9 + $0x1e0] sm:$0xff]  }
  0xa3   : > { %3614 = vmatprep.subr.bf16.mxu0 %v4240_v47 }
  0xa5   : > { %3607 = vmatmul.mubr.bf16.gmra.mrb[4].mxu0 %v4906_v49 }
  0xa6   : > { %3615 = vmatpush3.bf16.msra.mxu0 %v4240_v47  ;;  %3626 = vmatprep.mubr.bf16.mxu0 %v334_v50  ;;  %v4260_v47 = vld [vmem:[#allocation9 + $0xf0] sm:$0xff]   ;;  %v4261_v50 = vld [vmem:[#allocation9 + $0xf8] sm:$0xff]  }
  0xa7   : > { %3616 = vmatprep.subr.bf16.mxu0 %v4241_v51 }
  0xaa   : > { %3617 = vmatpush3.bf16.msra.mxu0 %v4241_v51  ;;  %v4262_v51 = vld [vmem:[#allocation9 + $0x100] sm:$0xff]  }
  0xab   : > { %3618 = vmatprep.subr.bf16.mxu0 %v4242_v52 }
  0xae   : > { %3619 = vmatpush3.bf16.msra.mxu0 %v4242_v52  ;;  %v769_v52 = vpack.c.bf16 %v4947_v11, %v4925_v1  ;;  %v4271_v1 = vld [vmem:[#allocation9 + $0x148] sm:$0xff]  }
  0xaf   : > { %3620 = vmatprep.subr.bf16.mxu0 %v4243_v54  ;;  %v4303_v11 = vld [vmem:[#allocation11 + $0x48] sm:$0xff]  }
  0xb2   : > { %3621 = vmatpush3.bf16.msra.mxu0 %v4243_v54  ;;  %v4988_v54 = vld [vmem:[#allocation2 + $0x80] sm:$0xff] }
  0xb3   : > { %3622 = vmatprep.subr.bf16.mxu0 %v4244_v57  ;;  %v770_v56 = vpack.c.bf16 %v4988_v54, %v4951_v14  ;;  %v4285_v14 = vld [vmem:[#allocation9 + $0x1b8] sm:$0xff]  }
  0xb6   : > { %3623 = vmatpush3.bf16.msra.mxu0 %v4244_v57  ;;  %v4265_v57 = vld [vmem:[#allocation9 + $0x118] sm:$0xff]  }
  0xb7   : > { %3624 = vmatprep.subr.bf16.mxu0 %v4245_v59 }
  0xba   : > { %3625 = vmatpush3.bf16.msra.mxu0 %v4245_v59  ;;  %v4266_v59 = vld [vmem:[#allocation9 + $0x120] sm:$0xff]  }
  0xbb   : > { %3634 = vmatprep.subr.bf16.mxu0 %v4246_v63 }
  0xbd   : > { %3627 = vmatmul.mubr.bf16.vlgmr.msra.gmra.mrb[0].mxu0 %v4935_v5 }
  0xbe   : > { %3635 = vmatpush3.bf16.msra.mxu0 %v4246_v63  ;;  %3630 = vmatprep.mubr.bf16.mxu0 %v4939_v7  ;;  %v4269_v63 = vld [vmem:[#allocation9 + $0x138] sm:$0xff]  }
  0xbf   : > { %3636 = vmatprep.subr.bf16.mxu0 %v4247_v6 }
  0xc2   : > { %3637 = vmatpush3.bf16.msra.mxu0 %v4247_v6  ;;  %v4302_v6 = vld [vmem:[#allocation11 + $0x40] sm:$0xff]  }
  0xc3   : > { %3638 = vmatprep.subr.bf16.mxu0 %v4248_v12  ;;  %3802 = vmatprep.subr.bf16.mxu1 %v4302_v6 }
  0xc4   : > { %3803 = vmatpush3.bf16.msra.mxu1 %v4302_v6 }
  0xc5   : > { %3631 = vmatmul.mubr.bf16.gmra.mrb[4].mxu0 %v4955_v15  ;;  %3804 = vmatprep.subr.bf16.mxu1 %v4303_v11 }
  0xc6   : > { %3639 = vmatpush3.bf16.msra.mxu0 %v4248_v12  ;;  %3650 = vmatprep.mubr.bf16.mxu0 %v617_v17  ;;  %v1070_v12 = vpack.c.bf16 %v5012_v3, %v4975_v34  ;;  %v4287_v17 = vld [vmem:[#allocation9 + $0x1c8] sm:$0xff]   ;;  %v4298_v34 = vld [vmem:[#allocation9 + $0x220] sm:$0xff]  }
  0xc7   : > { %3640 = vmatprep.subr.bf16.mxu0 %v4249_v16 }
  0xc8   : > { %3805 = vmatpush3.bf16.msra.mxu1 %v4303_v11 }
  0xc9   : > { %3806 = vmatprep.subr.bf16.mxu1 %v4304_v33 }
  0xca   : > { %3641 = vmatpush3.bf16.msra.mxu0 %v4249_v16  ;;  %v4286_v16 = vld [vmem:[#allocation9 + $0x1c0] sm:$0xff]  }
  0xcb   : > { %3642 = vmatprep.subr.bf16.mxu0 %v4250_v18 }
  0xcc   : > { %3807 = vmatpush3.bf16.msra.mxu1 %v4304_v33 }
  0xcd   : > { %3808 = vmatprep.subr.bf16.mxu1 %v4305_v38 }
  0xce   : > { %3643 = vmatpush3.bf16.msra.mxu0 %v4250_v18  ;;  %v5019_v18 = vld [vmem:[#allocation2] sm:$0xff] }
  0xcf   : > { %3644 = vmatprep.subr.bf16.mxu0 %v4251_v19 }
  0xd0   : > { %3809 = vmatpush3.bf16.msra.mxu1 %v4305_v38 }
  0xd2   : > { %3645 = vmatpush3.bf16.msra.mxu0 %v4251_v19  ;;  %v1221_v19 = vpack.c.bf16 %v5019_v18, %v4988_v54 }
  0xd3   : > { %3646 = vmatprep.subr.bf16.mxu0 %v4252_v20 }
  0xd6   : > { %3647 = vmatpush3.bf16.msra.mxu0 %v4252_v20  ;;  %v4289_v20 = vld [vmem:[#allocation9 + $0x1d8] sm:$0xff]  }
  0xd7   : > { %3648 = vmatprep.subr.bf16.mxu0 %v4253_v24 }
  0xda   : > { %3649 = vmatpush3.bf16.msra.mxu0 %v4253_v24  ;;  %v4295_v24 = vld [vmem:[#allocation9 + $0x208] sm:$0xff]  }
  0xdb   : > { %3658 = vmatprep.subr.bf16.mxu0 %v4254_v25 }
  0xdd   : > { %3651 = vmatmul.mubr.bf16.vlgmr.msra.gmra.mrb[0].mxu0 %v4967_v26 }
  0xde   : > { %3659 = vmatpush3.bf16.msra.mxu0 %v4254_v25  ;;  %3654 = vmatprep.mubr.bf16.mxu0 %v4971_v28  ;;  %v4296_v25 = vld [vmem:[#allocation9 + $0x210] sm:$0xff]  }
  0xdf   : > { %3660 = vmatprep.subr.bf16.mxu0 %v4255_v27 }
  0xe2   : > { %3661 = vmatpush3.bf16.msra.mxu0 %v4255_v27 }
  0xe3   : > { %3662 = vmatprep.subr.bf16.mxu0 %v4256_v32 }
  0xe5   : > { %3655 = vmatmul.mubr.bf16.gmra.mrb[4].mxu0 %v4979_v35 }
  0xe6   : > { %3663 = vmatpush3.bf16.msra.mxu0 %v4256_v32  ;;  %3674 = vmatprep.mubr.bf16.mxu0 %v767_v40  ;;  %v4297_v32 = vld [vmem:[#allocation9 + $0x218] sm:$0xff]   ;;  %v4306_v40 = vld [vmem:[#allocation11 + $0x60] sm:$0xff]  }
  0xe7   : > { %3664 = vmatprep.subr.bf16.mxu0 %v4257_v36  ;;  %3810 = vmatprep.subr.bf16.mxu1 %v4306_v40 }
  0xe8   : > { %3811 = vmatpush3.bf16.msra.mxu1 %v4306_v40 }
  0xea   : > { %3665 = vmatpush3.bf16.msra.mxu0 %v4257_v36  ;;  %v4301_v36 = vld [vmem:[#allocation9 + $0x238] sm:$0xff]  }
  0xeb   : > { %3666 = vmatprep.subr.bf16.mxu0 %v4258_v41 }
  0xee   : > { %3667 = vmatpush3.bf16.msra.mxu0 %v4258_v41  ;;  %v4307_v41 = vld [vmem:[#allocation11 + $0x68] sm:$0xff]  }
  0xef   : > { %3668 = vmatprep.subr.bf16.mxu0 %v4259_v45  ;;  %3812 = vmatprep.subr.bf16.mxu1 %v4307_v41 }
  0xf0   : > { %3813 = vmatpush3.bf16.msra.mxu1 %v4307_v41  ;;  %v4316_v41 = vld [vmem:[#allocation11 + $0x30] sm:$0xff]  }
  0xf2   : > { %3669 = vmatpush3.bf16.msra.mxu0 %v4259_v45  ;;  %v4308_v45 = vld [vmem:[#allocation11 + $0x70] sm:$0xff]  }
  0xf3   : > { %3670 = vmatprep.subr.bf16.mxu0 %v4260_v47  ;;  %3814 = vmatprep.subr.bf16.mxu1 %v4308_v45 }
  0xf4   : > { %3815 = vmatpush3.bf16.msra.mxu1 %v4308_v45  ;;  %v4317_v45 = vld [vmem:[#allocation11 + $0x38] sm:$0xff]  }
  0xf6   : > { %3671 = vmatpush3.bf16.msra.mxu0 %v4260_v47  ;;  %v4309_v47 = vld [vmem:[#allocation11 + $0x78] sm:$0xff]  }
  0xf7   : > { %3672 = vmatprep.subr.bf16.mxu0 %v4261_v50  ;;  %3816 = vmatprep.subr.bf16.mxu1 %v4309_v47 }
  0xf8   : > { %3817 = vmatpush3.bf16.msra.mxu1 %v4309_v47  ;;  %v4318_v47 = vld [vmem:[#allocation11 + $0x80] sm:$0xff]  }
  0xfa   : > { %3673 = vmatpush3.bf16.msra.mxu0 %v4261_v50  ;;  %v4310_v50 = vld [vmem:[#allocation11] sm:$0xff]  }
  0xfb   : > { %3682 = vmatprep.subr.bf16.mxu0 %v4262_v51  ;;  %3826 = vmatprep.subr.bf16.mxu1 %v4310_v50 }
  0xfd   : > { %3675 = vmatmul.mubr.bf16.vlgmr.msra.gmra.mrb[0].mxu0 %v768_v48 }
  0xfe   : > { %3683 = vmatpush3.bf16.msra.mxu0 %v4262_v51  ;;  %3678 = vmatprep.mubr.bf16.mxu0 %v769_v52  ;;  %v1677_v52 = vstv %s3217_s29 }
  0xff   : > { %3684 = vmatprep.subr.bf16.mxu0 %v4263_v53 }
 0x102   : > { %3685 = vmatpush3.bf16.msra.mxu0 %v4263_v53 }
 0x103   : > { %3686 = vmatprep.subr.bf16.mxu0 %v4264_v55 }
 0x105   : > { %3679 = vmatmul.mubr.bf16.gmra.mrb[4].mxu0 %v770_v56 }
 0x106   : > { %3687 = vmatpush3.bf16.msra.mxu0 %v4264_v55  ;;  %3698 = vmatprep.mubr.bf16.mxu0 %v917_v44  ;;  %v4273_v44 = vld [vmem:[#allocation9 + $0x158] sm:$0xff]  }
 0x107   : > { %3688 = vmatprep.subr.bf16.mxu0 %v4265_v57 }
 0x10a   : > { %3689 = vmatpush3.bf16.msra.mxu0 %v4265_v57 }
 0x10b   : > { %3690 = vmatprep.subr.bf16.mxu0 %v4266_v59 }
 0x10e   : > { %3691 = vmatpush3.bf16.msra.mxu0 %v4266_v59 }
 0x10f   : > { %3692 = vmatprep.subr.bf16.mxu0 %v4267_v61 }
 0x112   : > { %3693 = vmatpush3.bf16.msra.mxu0 %v4267_v61 }
 0x113   : > { %3694 = vmatprep.subr.bf16.mxu0 %v4268_v62 }
 0x116   : > { %3695 = vmatpush3.bf16.msra.mxu0 %v4268_v62 }
 0x117   : > { %3696 = vmatprep.subr.bf16.mxu0 %v4269_v63 }
 0x11a   : > { %3697 = vmatpush3.bf16.msra.mxu0 %v4269_v63 }
 0x11b   : > { %3706 = vmatprep.subr.bf16.mxu0 %v4270_v0 }
 0x11d   : > { %3699 = vmatmul.mubr.bf16.vlgmr.msra.gmra.mrb[0].mxu0 %v918_v46  ;;  %v4277_v46 = vld [vmem:[#allocation9 + $0x178] sm:$0xff]  }
 0x11e   : > { %3707 = vmatpush3.bf16.msra.mxu0 %v4270_v0  ;;  %3702 = vmatprep.mubr.bf16.mxu0 %v919_v60  ;;  %v4278_v60 = vld [vmem:[#allocation9 + $0x180] sm:$0xff]  }
 0x11f   : > { %3708 = vmatprep.subr.bf16.mxu0 %v4271_v1  ;;  %v1743_v0 = vld [vmem:[#allocation3 + $0x1] sm:$0xff] }
 0x122   : > { %3709 = vmatpush3.bf16.msra.mxu0 %v4271_v1 }
 0x123   : > { %3710 = vmatprep.subr.bf16.mxu0 %v4272_v29 }
 0x125   : > { %3703 = vmatmul.mubr.bf16.gmra.mrb[4].mxu0 %v920_v30 }
 0x126   : > { %3711 = vmatpush3.bf16.msra.mxu0 %v4272_v29  ;;  %3722 = vmatprep.mubr.bf16.mxu0 %v1067_v9  ;;  %v4280_v9 = vld [vmem:[#allocation9 + $0x190] sm:$0xff]  }
 0x127   : > { %3712 = vmatprep.subr.bf16.mxu0 %v4273_v44 }
 0x12a   : > { %3713 = vmatpush3.bf16.msra.mxu0 %v4273_v44 }
 0x12b   : > { %3714 = vmatprep.subr.bf16.mxu0 %v4274_v31 }
 0x12e   : > { %3715 = vmatpush3.bf16.msra.mxu0 %v4274_v31 }
 0x12f   : > { %3716 = vmatprep.subr.bf16.mxu0 %v4275_v37 }
 0x132   : > { %3717 = vmatpush3.bf16.msra.mxu0 %v4275_v37 }
 0x133   : > { %3718 = vmatprep.subr.bf16.mxu0 %v4276_v39 }
 0x136   : > { %3719 = vmatpush3.bf16.msra.mxu0 %v4276_v39 }
 0x137   : > { %3720 = vmatprep.subr.bf16.mxu0 %v4277_v46 }
 0x13a   : > { %3721 = vmatpush3.bf16.msra.mxu0 %v4277_v46 }
 0x13b   : > { %3730 = vmatprep.subr.bf16.mxu0 %v4278_v60 }
 0x13d   : > { %3723 = vmatmul.mubr.bf16.vlgmr.msra.gmra.mrb[0].mxu0 %v1068_v10  ;;  %v4284_v10 = vld [vmem:[#allocation9 + $0x1b0] sm:$0xff]  }
 0x13e   : > { %3731 = vmatpush3.bf16.msra.mxu0 %v4278_v60  ;;  %3726 = vmatprep.mubr.bf16.mxu0 %v1069_v23  ;;  %v4294_v23 = vld [vmem:[#allocation9 + $0x200] sm:$0xff]   ;;  %v4311_v60 = vld [vmem:[#allocation11 + $0x8] sm:$0xff]  }
 0x13f   : > { %3732 = vmatprep.subr.bf16.mxu0 %v4279_v2 }
 0x142   : > { %3733 = vmatpush3.bf16.msra.mxu0 %v4279_v2 }
 0x143   : > { %3734 = vmatprep.subr.bf16.mxu0 %v4280_v9 }
 0x145   : > { %3727 = vmatmul.mubr.bf16.gmra.mrb[4].mxu0 %v1070_v12 }
 0x146   : > { %3735 = vmatpush3.bf16.msra.mxu0 %v4280_v9  ;;  %3746 = vmatprep.mubr.bf16.mxu0 %v4935_v5  ;;  %v4288_v5 = vld [vmem:[#allocation9 + $0x1d0] sm:$0xff]  }
 0x147   : > { %3736 = vmatprep.subr.bf16.mxu0 %v4281_v13 }
 0x14a   : > { %3737 = vmatpush3.bf16.msra.mxu0 %v4281_v13 }
 0x14b   : > { %3738 = vmatprep.subr.bf16.mxu0 %v4282_v4 }
 0x14e   : > { %3739 = vmatpush3.bf16.msra.mxu0 %v4282_v4 }
 0x14f   : > { %3740 = vmatprep.subr.bf16.mxu0 %v4283_v8 }
 0x152   : > { %3741 = vmatpush3.bf16.msra.mxu0 %v4283_v8 }
 0x153   : > { %3742 = vmatprep.subr.bf16.mxu0 %v4284_v10 }
 0x156   : > { %3743 = vmatpush3.bf16.msra.mxu0 %v4284_v10 }
 0x157   : > { %3744 = vmatprep.subr.bf16.mxu0 %v4285_v14 }
 0x15a   : > { %3745 = vmatpush3.bf16.msra.mxu0 %v4285_v14 }
 0x15b   : > { %3754 = vmatprep.subr.bf16.mxu0 %v4286_v16 }
 0x15d   : > { %3747 = vmatmul.mubr.bf16.vlgmr.msra.gmra.mrb[0].mxu0 %v4939_v7  ;;  %v4291_v7 = vld [vmem:[#allocation9 + $0x1e8] sm:$0xff]  }
 0x15e   : > { %3755 = vmatpush3.bf16.msra.mxu0 %v4286_v16  ;;  %3750 = vmatprep.mubr.bf16.mxu0 %v4955_v15  ;;  %v4292_v15 = vld [vmem:[#allocation9 + $0x1f0] sm:$0xff]  }
 0x15f   : > { %3756 = vmatprep.subr.bf16.mxu0 %v4287_v17 }
 0x162   : > { %3757 = vmatpush3.bf16.msra.mxu0 %v4287_v17  ;;  %v4312_v17 = vld [vmem:[#allocation11 + $0x10] sm:$0xff]  }
 0x163   : > { %3758 = vmatprep.subr.bf16.mxu0 %v4288_v5 }
 0x165   : > { %3751 = vmatmul.mubr.bf16.gmra.mrb[4].mxu0 %v1221_v19 }
 0x166   : > { %3759 = vmatpush3.bf16.msra.mxu0 %v4288_v5  ;;  %3770 = vmatprep.mubr.bf16.mxu0 %v4890_v42  ;;  %v1367_v42 = vld [vmem:[#allocation2 + $0x91] sm:$0xff] }
 0x167   : > { %3760 = vmatprep.subr.bf16.mxu0 %v4289_v20  ;;  %v1371_v27 = vpack.c.bf16 %v1367_v42, %v4914_v58  ;;  %v1517_v58 = vld [vmem:[#allocation2 + $0x92] sm:$0xff] }
 0x16a   : > { %3761 = vmatpush3.bf16.msra.mxu0 %v4289_v20 }
 0x16b   : > { %3762 = vmatprep.subr.bf16.mxu0 %v4290_v21 }
 0x16e   : > { %3763 = vmatpush3.bf16.msra.mxu0 %v4290_v21 }
 0x16f   : > { %3764 = vmatprep.subr.bf16.mxu0 %v4291_v7 }
 0x172   : > { %3765 = vmatpush3.bf16.msra.mxu0 %v4291_v7 }
 0x173   : > { %3766 = vmatprep.subr.bf16.mxu0 %v4292_v15 }
 0x176   : > { %3767 = vmatpush3.bf16.msra.mxu0 %v4292_v15 }
 0x177   : > { %3768 = vmatprep.subr.bf16.mxu0 %v4293_v22 }
 0x17a   : > { %3769 = vmatpush3.bf16.msra.mxu0 %v4293_v22 }
 0x17b   : > { %3778 = vmatprep.subr.bf16.mxu0 %v4294_v23 }
 0x17d   : > { %3771 = vmatmul.mubr.bf16.vlgmr.msra.gmra.mrb[0].mxu0 %v4894_v43  ;;  %v4299_v43 = vld [vmem:[#allocation9 + $0x228] sm:$0xff]  }
 0x17e   : > { %3779 = vmatpush3.bf16.msra.mxu0 %v4294_v23  ;;  %3774 = vmatprep.mubr.bf16.mxu0 %v4906_v49  ;;  %v4300_v49 = vld [vmem:[#allocation9 + $0x230] sm:$0xff]  }
 0x17f   : > { %3780 = vmatprep.subr.bf16.mxu0 %v4295_v24 }
 0x182   : > { %3781 = vmatpush3.bf16.msra.mxu0 %v4295_v24 }
 0x183   : > { %3782 = vmatprep.subr.bf16.mxu0 %v4296_v25 }
 0x185   : > { %3775 = vmatmul.mubr.bf16.gmra.mrb[4].mxu0 %v1371_v27 }
 0x186   : > { %3783 = vmatpush3.bf16.msra.mxu0 %v4296_v25  ;;  %3794 = vmatprep.mubr.bf16.mxu0 %v4967_v26  ;;  %v1521_v26 = vpack.c.bf16 %v1517_v58, %v5012_v3  ;;  %v4313_v25 = vld [vmem:[#allocation11 + $0x18] sm:$0xff]  }
 0x187   : > { %3784 = vmatprep.subr.bf16.mxu0 %v4297_v32 }
 0x18a   : > { %3785 = vmatpush3.bf16.msra.mxu0 %v4297_v32 }
 0x18b   : > { %3786 = vmatprep.subr.bf16.mxu0 %v4298_v34 }
 0x18e   : > { %3787 = vmatpush3.bf16.msra.mxu0 %v4298_v34 }
 0x18f   : > { %3788 = vmatprep.subr.bf16.mxu0 %v4299_v43 }
 0x192   : > { %3789 = vmatpush3.bf16.msra.mxu0 %v4299_v43 }
 0x193   : > { %3790 = vmatprep.subr.bf16.mxu0 %v4300_v49 }
 0x196   : > { %3791 = vmatpush3.bf16.msra.mxu0 %v4300_v49  ;;  %v4314_v49 = vld [vmem:[#allocation11 + $0x20] sm:$0xff]  }
 0x197   : > { %3792 = vmatprep.subr.bf16.mxu0 %v4301_v36 }
 0x19a   : > { %3793 = vmatpush3.bf16.msra.mxu0 %v4301_v36 }
 0x19d   : > { %3795 = vmatmul.mubr.bf16.vlgmr.msra.gmra.mrb[0].mxu0 %v4971_v28  ;;  %v1660_v28 = vstv %s3216_s27 }
 0x19e   : > { %3798 = vmatprep.mubr.bf16.mxu0 %v4979_v35 }
 0x1a5   : > { %3799 = vmatmul.mubr.bf16.gmra.mrb[4].mxu0 %v1521_v26  ;;  %v4315_v26 = vld [vmem:[#allocation11 + $0x28] sm:$0xff]  }
 0x270   : > { %v3796_v35 = vpop.f32.mrb[0].mxu0 }
 0x271   : > { %v1663_v51 = vadd.f32 %v3796_v35, %v1660_v28  ;;  %v1621_v48 = vpop.f32.mrb[1].mxu0 }
 0x272   : > { %v1661_v53 = vadd.f32 %v1660_v28, %v1621_v48  ;;  %v3797_v54 = vpop.f32.mrb[2].mxu0 }
 0x273   : > { %v1671_v55 = vmax.f32 %v1663_v51, 0.0  ;;  %v1664_v56 = vadd.f32 %v3797_v54, %v1660_v28  ;;  %v1624_v57 = vpop.f32.mrb[3].mxu0  ;;  %v4320_v54 = vld [vmem:[#allocation11 + $0x90] sm:$0xff]  }
 0x274   : > { %v1669_v59 = vmax.f32 %v1661_v53, 0.0  ;;  %v1662_v61 = vadd.f32 %v1660_v28, %v1624_v57 }
 0x275   : > { %v5031_v62 = vadd.f32 %v1677_v52, %v1671_v55  ;;  %v1672_v63 = vmax.f32 %v1664_v56, 0.0  ;;  %v1998_v56 = vld [vmem:[#allocation3 + $0x2] sm:$0xff] }
 0x276   : > { %v5033_v1 = vadd.f32 %v1677_v52, %v1669_v59  ;;  %v1670_v29 = vmax.f32 %v1662_v61, 0.0  ;;  %v4321_v61 = vld [vmem:[#allocation11 + $0x98] sm:$0xff]  }
 0x277   : > { %1709 = vst [vmem:[#allocation3 + $0x31] sm:$0xff] %v5031_v62  ;;  %v5036_v30 = vadd.f32 %v1677_v52, %v1672_v63 }
 0x278   : > { %1707 = vst [vmem:[#allocation3 + $0x11] sm:$0xff] %v5033_v1  ;;  %v5039_v44 = vadd.f32 %v1677_v52, %v1670_v29  ;;  %v3800_v6 = vpop.f32.mrb[4].mxu0  ;;  %v1751_v11 = vpack.c.bf16 %v5033_v1, %v1743_v0  ;;  %v4322_v0 = vld [vmem:[#allocation11 + $0xa0] sm:$0xff]   ;;  %v4323_v29 = vld [vmem:[#allocation11 + $0xa8] sm:$0xff]  }
 0x279   : > { %1710 = vst [vmem:[#allocation3 + $0x41] sm:$0xff] %v5036_v30  ;;  %v1667_v31 = vadd.f32 %v3800_v6, %v1660_v28  ;;  %v1637_v33 = vpop.f32.mrb[5].mxu0  ;;  %v2307_v37 = vpack.c.bf16 %v5036_v30, %v5031_v62  ;;  %v4324_v6 = vld [vmem:[#allocation11 + $0xb0] sm:$0xff]  }
 0x27a   : > { %1708 = vst [vmem:[#allocation3 + $0x21] sm:$0xff] %v5039_v44  ;;  %v1665_v38 = vadd.f32 %v1660_v28, %v1637_v33  ;;  %v3801_v39 = vpop.f32.mrb[6].mxu0  ;;  %3818 = vmatprep.mubr.bf16.mxu1 %v1751_v11  ;;  %v5048_v46 = vpack.c.bf16 %v5031_v62, %v5039_v44  ;;  %v2306_v2 = vpack.c.bf16 %v5039_v44, %v5033_v1  ;;  %v4325_v11 = vld [vmem:[#allocation11 + $0xb8] sm:$0xff]   ;;  %v4344_v1 = vld [vmem:[#allocation11 + $0x150] sm:$0xff]   ;;  %v4346_v62 = vld [vmem:[#allocation11 + $0x160] sm:$0xff]  }
 0x27b   : > { %v1675_v3 = vmax.f32 %v1667_v31, 0.0  ;;  %v1668_v9 = vadd.f32 %v3801_v39, %v1660_v28  ;;  %v1640_v12 = vpop.f32.mrb[7].mxu0  ;;  %v4326_v31 = vld [vmem:[#allocation11 + $0xc0] sm:$0xff]   ;;  %v4345_v44 = vld [vmem:[#allocation11 + $0x158] sm:$0xff]  }
 0x27c   : > { %v1673_v13 = vmax.f32 %v1665_v38, 0.0  ;;  %v1666_v4 = vadd.f32 %v1660_v28, %v1640_v12  ;;  %3819 = vmatmul.mubr.bf16.vlgmr.msra.gmra.mrb[0].mxu1 %v5048_v46  ;;  %v4327_v38 = vld [vmem:[#allocation11 + $0xc8] sm:$0xff]   ;;  %v4329_v12 = vld [vmem:[#allocation11 + $0xd8] sm:$0xff]  }
 0x27d   : > { %v5053_v8 = vadd.f32 %v1677_v52, %v1675_v3  ;;  %v1676_v10 = vmax.f32 %v1668_v9, 0.0  ;;  %3827 = vmatpush3.bf16.msra.mxu1 %v4310_v50 }
 0x27e   : > { %v5055_v14 = vadd.f32 %v1677_v52, %v1673_v13  ;;  %v1674_v16 = vmax.f32 %v1666_v4, 0.0  ;;  %3828 = vmatprep.subr.bf16.mxu1 %v4311_v60  ;;  %v5069_v7 = vld [vmem:[#allocation3 + $0x32] sm:$0xff]  ;;  %v4330_v4 = vld [vmem:[#allocation11 + $0xe0] sm:$0xff]  }
 0x27f   : > { %1713 = vst [vmem:[#allocation3 + $0x71] sm:$0xff] %v5053_v8  ;;  %v5058_v5 = vadd.f32 %v1677_v52, %v1676_v10  ;;  %v5067_v21 = vld [vmem:[#allocation3 + $0x10] sm:$0xff]  ;;  %v4331_v10 = vld [vmem:[#allocation11 + $0xe8] sm:$0xff]  }
 0x280   : > { %1711 = vst [vmem:[#allocation3 + $0x51] sm:$0xff] %v5055_v14  ;;  %v5061_v19 = vadd.f32 %v1677_v52, %v1674_v16  ;;  %v5065_v20 = vpack.c.bf16 %v5055_v14, %v5036_v30  ;;  %v5071_v15 = vld [vmem:[#allocation3 + $0x42] sm:$0xff]  ;;  %v5086_v27 = vld [vmem:[#allocation3 + $0x12] sm:$0xff]  ;;  %v1723_v32 = vpack.c.bf16 %v5067_v21, %v5019_v18 }
 0x281   : > { %1714 = vst [vmem:[#allocation3 + $0x81] sm:$0xff] %v5058_v5  ;;  %3829 = vmatpush3.bf16.msra.mxu1 %v4311_v60  ;;  %v5074_v22 = vld [vmem:[#allocation3 + $0x22] sm:$0xff]  ;;  %v2309_v23 = vpack.c.bf16 %v5058_v5, %v5053_v8  ;;  %v2457_v24 = vpack.c.bf16 %v5071_v15, %v5069_v7  ;;  %v5103_v35 = vld [vmem:[#allocation3 + $0x30] sm:$0xff]  ;;  %v2006_v63 = vpack.c.bf16 %v5086_v27, %v1998_v56 }
 0x282   : > { %1712 = vst [vmem:[#allocation3 + $0x61] sm:$0xff] %v5061_v19  ;;  %3822 = vmatprep.mubr.bf16.mxu1 %v5065_v20  ;;  %3830 = vmatprep.subr.bf16.mxu1 %v4312_v17  ;;  %v5084_v42 = vpack.c.bf16 %v5053_v8, %v5061_v19  ;;  %v2308_v34 = vpack.c.bf16 %v5061_v19, %v5055_v14  ;;  %v1717_v50 = vld [vmem:[#allocation3 + $0x20] sm:$0xff]  ;;  %v4319_v52 = vld [vmem:[#allocation11 + $0x88] sm:$0xff]   ;;  %v4328_v60 = vld [vmem:[#allocation11 + $0xd0] sm:$0xff]  }
 0x283   : > { %v2456_v43 = vpack.c.bf16 %v5074_v22, %v5086_v27  ;;  %v5106_v51 = vpack.c.bf16 %v5103_v35, %v1717_v50  ;;  %v5108_v48 = vld [vmem:[#allocation3 + $0x40] sm:$0xff]  ;;  %v5128_v33 = vpack.c.bf16 %v5069_v7, %v5074_v22  ;;  %v2156_v13 = vpack.c.bf16 %v1717_v50, %v5067_v21  ;;  %v4332_v16 = vld [vmem:[#allocation11 + $0xf0] sm:$0xff]   ;;  %v4347_v30 = vld [vmem:[#allocation11 + $0x168] sm:$0xff]  }
 0x284   : > { %3823 = vmatmul.mubr.bf16.gmra.mrb[4].mxu1 %v5084_v42  ;;  %v2157_v21 = vpack.c.bf16 %v5108_v48, %v5103_v35  ;;  %v4338_v50 = vld [vmem:[#allocation11 + $0x120] sm:$0xff]   ;;  %v4340_v35 = vld [vmem:[#allocation11 + $0x130] sm:$0xff]   ;;  %v4351_v14 = vld [vmem:[#allocation11 + $0x188] sm:$0xff]  }
 0x285   : > { %3831 = vmatpush3.bf16.msra.mxu1 %v4312_v17  ;;  %3842 = vmatprep.mubr.bf16.mxu1 %v1723_v32  ;;  %v4333_v17 = vld [vmem:[#allocation11 + $0xf8] sm:$0xff]   ;;  %v4335_v32 = vld [vmem:[#allocation11 + $0x108] sm:$0xff]   ;;  %v4350_v8 = vld [vmem:[#allocation11 + $0x180] sm:$0xff]  }
 0x286   : > { %3832 = vmatprep.subr.bf16.mxu1 %v4313_v25  ;;  %v5118_v57 = vld [vmem:[#allocation3 + $0x70] sm:$0xff]  ;;  %v4353_v27 = vld [vmem:[#allocation11 + $0x198] sm:$0xff]   ;;  %v4354_v7 = vld [vmem:[#allocation11 + $0x1a0] sm:$0xff]  }
 0x287   : > { %v5095_v36 = vld [vmem:[#allocation3 + $0x52] sm:$0xff] }
 0x288   : > { %v5101_v28 = vld [vmem:[#allocation3 + $0x50] sm:$0xff]  ;;  %v5132_v39 = vpack.c.bf16 %v5095_v36, %v5071_v15  ;;  %v5173_v22 = vld [vmem:[#allocation3 + $0x82] sm:$0xff] }
 0x289   : > { %3833 = vmatpush3.bf16.msra.mxu1 %v4313_v25  ;;  %v5097_v58 = vld [vmem:[#allocation3 + $0x62] sm:$0xff]  ;;  %v5112_v53 = vpack.c.bf16 %v5101_v28, %v5108_v48  ;;  %v5136_v3 = vld [vmem:[#allocation3 + $0x72] sm:$0xff] }
 0x28a   : > { %3834 = vmatprep.subr.bf16.mxu1 %v4314_v49  ;;  %v2458_v40 = vpack.c.bf16 %v5097_v58, %v5095_v36  ;;  %v5116_v55 = vld [vmem:[#allocation3 + $0x60] sm:$0xff]  ;;  %v5140_v9 = vpack.c.bf16 %v5136_v3, %v5097_v58  ;;  %v4341_v48 = vld [vmem:[#allocation11 + $0x138] sm:$0xff]   ;;  %v4352_v19 = vld [vmem:[#allocation11 + $0x190] sm:$0xff]  }
 0x28b   : > { %v5122_v59 = vpack.c.bf16 %v5118_v57, %v5116_v55  ;;  %v4334_v25 = vld [vmem:[#allocation11 + $0x100] sm:$0xff]   ;;  %v4355_v15 = vld [vmem:[#allocation11 + $0x1a8] sm:$0xff]   ;;  %v4360_v58 = vld [vmem:[#allocation11 + $0x1d0] sm:$0xff]  }
 0x28c   : > { %v4359_v36 = vld [vmem:[#allocation11 + $0x1c8] sm:$0xff]   ;;  %v4364_v56 = vld [vmem:[#allocation11 + $0x1f0] sm:$0xff]  }
 0x28d   : > { %3835 = vmatpush3.bf16.msra.mxu1 %v4314_v49  ;;  %v2158_v49 = vpack.c.bf16 %v5116_v55, %v5101_v28  ;;  %v4339_v28 = vld [vmem:[#allocation11 + $0x128] sm:$0xff]   ;;  %v4362_v55 = vld [vmem:[#allocation11 + $0x1e0] sm:$0xff]  }
 0x28e   : > { %3836 = vmatprep.subr.bf16.mxu1 %v4315_v26 }
 0x291   : > { %3837 = vmatpush3.bf16.msra.mxu1 %v4315_v26  ;;  %v4336_v26 = vld [vmem:[#allocation11 + $0x110] sm:$0xff]  }
 0x292   : > { %3838 = vmatprep.subr.bf16.mxu1 %v4316_v41 }
 0x295   : > { %3839 = vmatpush3.bf16.msra.mxu1 %v4316_v41  ;;  %v5148_v41 = vld [vmem:[#allocation3 + $0x80] sm:$0xff] }
 0x296   : > { %3840 = vmatprep.subr.bf16.mxu1 %v4317_v45 }
 0x299   : > { %3841 = vmatpush3.bf16.msra.mxu1 %v4317_v45  ;;  %v2159_v45 = vpack.c.bf16 %v5148_v41, %v5118_v57  ;;  %v4365_v57 = vld [vmem:[#allocation11 + $0x1f8] sm:$0xff]  }
 0x29a   : > { %3850 = vmatprep.subr.bf16.mxu1 %v4318_v47 }
 0x29c   : > { %3843 = vmatmul.mubr.bf16.vlgmr.msra.gmra.mrb[0].mxu1 %v5106_v51 }
 0x29d   : > { %3846 = vmatprep.mubr.bf16.mxu1 %v5112_v53  ;;  %3851 = vmatpush3.bf16.msra.mxu1 %v4318_v47  ;;  %v4337_v47 = vld [vmem:[#allocation11 + $0x118] sm:$0xff]  }
 0x29e   : > { %3852 = vmatprep.subr.bf16.mxu1 %v4319_v52 }
 0x2a1   : > { %3853 = vmatpush3.bf16.msra.mxu1 %v4319_v52  ;;  %v4342_v52 = vld [vmem:[#allocation11 + $0x140] sm:$0xff]  }
 0x2a2   : > { %3854 = vmatprep.subr.bf16.mxu1 %v4320_v54 }
 0x2a4   : > { %3847 = vmatmul.mubr.bf16.gmra.mrb[4].mxu1 %v5122_v59 }
 0x2a5   : > { %3855 = vmatpush3.bf16.msra.mxu1 %v4320_v54  ;;  %3866 = vmatprep.mubr.bf16.mxu1 %v2006_v63  ;;  %v4343_v54 = vld [vmem:[#allocation11 + $0x148] sm:$0xff]  }
 0x2a6   : > { %3856 = vmatprep.subr.bf16.mxu1 %v4321_v61 }
 0x2a9   : > { %3857 = vmatpush3.bf16.msra.mxu1 %v4321_v61  ;;  %v2756_v61 = vld [vmem:[#allocation3 + $0x91] sm:$0xff] }
 0x2aa   : > { %3858 = vmatprep.subr.bf16.mxu1 %v4322_v0  ;;  %v2760_v63 = vpack.c.bf16 %v2756_v61, %v5058_v5  ;;  %v2906_v5 = vld [vmem:[#allocation3 + $0x92] sm:$0xff] }
 0x2ad   : > { %3859 = vmatpush3.bf16.msra.mxu1 %v4322_v0  ;;  %v4369_v0 = vld [vmem:[#allocation11 + $0x218] sm:$0xff]  }
 0x2ae   : > { %3860 = vmatprep.subr.bf16.mxu1 %v4323_v29 }
 0x2b1   : > { %3861 = vmatpush3.bf16.msra.mxu1 %v4323_v29  ;;  %v4370_v29 = vld [vmem:[#allocation11 + $0x220] sm:$0xff]  }
 0x2b2   : > { %3862 = vmatprep.subr.bf16.mxu1 %v4324_v6 }
 0x2b5   : > { %3863 = vmatpush3.bf16.msra.mxu1 %v4324_v6  ;;  %v4373_v6 = vld [vmem:[#allocation11 + $0x238] sm:$0xff]  }
 0x2b6   : > { %3864 = vmatprep.subr.bf16.mxu1 %v4325_v11 }
 0x2b9   : > { %3865 = vmatpush3.bf16.msra.mxu1 %v4325_v11  ;;  %v2910_v11 = vpack.c.bf16 %v2906_v5, %v5173_v22 }
 0x2ba   : > { %3874 = vmatprep.subr.bf16.mxu1 %v4326_v31 }
 0x2bc   : > { %3867 = vmatmul.mubr.bf16.vlgmr.msra.gmra.mrb[0].mxu1 %v5128_v33 }
 0x2bd   : > { %3870 = vmatprep.mubr.bf16.mxu1 %v5132_v39  ;;  %3875 = vmatpush3.bf16.msra.mxu1 %v4326_v31  ;;  %v3057_v31 = vstv %s3218_s30 }
 0x2be   : > { %3876 = vmatprep.subr.bf16.mxu1 %v4327_v38 }
 0x2c1   : > { %3877 = vmatpush3.bf16.msra.mxu1 %v4327_v38  ;;  %v3051_v38 = vld [vmem:[%s4791_s20 + $0x10] sm:$0xff] }
 0x2c2   : > { %3878 = vmatprep.subr.bf16.mxu1 %v4328_v60 }
 0x2c4   : > { %3871 = vmatmul.mubr.bf16.gmra.mrb[4].mxu1 %v5140_v9 }
 0x2c5   : > { %3879 = vmatpush3.bf16.msra.mxu1 %v4328_v60  ;;  %3890 = vmatprep.mubr.bf16.mxu1 %v2156_v13 }
 0x2c6   : > { %3880 = vmatprep.subr.bf16.mxu1 %v4329_v12 }
 0x2c9   : > { %3881 = vmatpush3.bf16.msra.mxu1 %v4329_v12  ;;  %v3049_v12 = vld [vmem:[%s4791_s20] sm:$0xff] }
 0x2ca   : > { %3882 = vmatprep.subr.bf16.mxu1 %v4330_v4 }
 0x2cd   : > { %3883 = vmatpush3.bf16.msra.mxu1 %v4330_v4 }
 0x2ce   : > { %3884 = vmatprep.subr.bf16.mxu1 %v4331_v10 }
 0x2d1   : > { %3885 = vmatpush3.bf16.msra.mxu1 %v4331_v10  ;;  %v3052_v10 = vld [vmem:[%s4791_s20 + $0x18] sm:$0xff] }
 0x2d2   : > { %3886 = vmatprep.subr.bf16.mxu1 %v4332_v16 }
 0x2d5   : > { %3887 = vmatpush3.bf16.msra.mxu1 %v4332_v16 }
 0x2d6   : > { %3888 = vmatprep.subr.bf16.mxu1 %v4333_v17 }
 0x2d9   : > { %3889 = vmatpush3.bf16.msra.mxu1 %v4333_v17  ;;  %v3050_v17 = vld [vmem:[%s4791_s20 + $0x8] sm:$0xff] }
 0x2da   : > { %3898 = vmatprep.subr.bf16.mxu1 %v4334_v25 }
 0x2dc   : > { %3891 = vmatmul.mubr.bf16.vlgmr.msra.gmra.mrb[0].mxu1 %v2157_v21 }
 0x2dd   : > { %3894 = vmatprep.mubr.bf16.mxu1 %v2158_v49  ;;  %3899 = vmatpush3.bf16.msra.mxu1 %v4334_v25 }
 0x2de   : > { %3900 = vmatprep.subr.bf16.mxu1 %v4335_v32 }
 0x2e1   : > { %3901 = vmatpush3.bf16.msra.mxu1 %v4335_v32 }
 0x2e2   : > { %3902 = vmatprep.subr.bf16.mxu1 %v4336_v26 }
 0x2e4   : > { %3895 = vmatmul.mubr.bf16.gmra.mrb[4].mxu1 %v2159_v45 }
 0x2e5   : > { %3903 = vmatpush3.bf16.msra.mxu1 %v4336_v26  ;;  %3914 = vmatprep.mubr.bf16.mxu1 %v2306_v2  ;;  %v4349_v2 = vld [vmem:[#allocation11 + $0x178] sm:$0xff]  }
 0x2e6   : > { %3904 = vmatprep.subr.bf16.mxu1 %v4337_v47 }
 0x2e9   : > { %3905 = vmatpush3.bf16.msra.mxu1 %v4337_v47 }
 0x2ea   : > { %3906 = vmatprep.subr.bf16.mxu1 %v4338_v50 }
 0x2ed   : > { %3907 = vmatpush3.bf16.msra.mxu1 %v4338_v50  ;;  %v3053_v50 = vld [vmem:[%s4791_s20 + $0x20] sm:$0xff] }
 0x2ee   : > { %3908 = vmatprep.subr.bf16.mxu1 %v4339_v28 }
 0x2f1   : > { %3909 = vmatpush3.bf16.msra.mxu1 %v4339_v28 }
 0x2f2   : > { %3910 = vmatprep.subr.bf16.mxu1 %v4340_v35 }
 0x2f5   : > { %3911 = vmatpush3.bf16.msra.mxu1 %v4340_v35 }
 0x2f6   : > { %3912 = vmatprep.subr.bf16.mxu1 %v4341_v48 }
 0x2f9   : > { %3913 = vmatpush3.bf16.msra.mxu1 %v4341_v48  ;;  %v3056_v48 = vld [vmem:[%s4791_s20 + $0x38] sm:$0xff] }
 0x2fa   : > { %3922 = vmatprep.subr.bf16.mxu1 %v4342_v52 }
 0x2fc   : > { %3915 = vmatmul.mubr.bf16.vlgmr.msra.gmra.mrb[0].mxu1 %v2307_v37  ;;  %v4348_v37 = vld [vmem:[#allocation11 + $0x170] sm:$0xff]  }
 0x2fd   : > { %3918 = vmatprep.mubr.bf16.mxu1 %v2308_v34  ;;  %3923 = vmatpush3.bf16.msra.mxu1 %v4342_v52  ;;  %v4357_v34 = vld [vmem:[#allocation11 + $0x1b8] sm:$0xff]  }
 0x2fe   : > { %3924 = vmatprep.subr.bf16.mxu1 %v4343_v54 }
 0x301   : > { %3925 = vmatpush3.bf16.msra.mxu1 %v4343_v54 }
 0x302   : > { %3926 = vmatprep.subr.bf16.mxu1 %v4344_v1 }
 0x304   : > { %3919 = vmatmul.mubr.bf16.gmra.mrb[4].mxu1 %v2309_v23  ;;  %v2459_v23 = vpack.c.bf16 %v5173_v22, %v5136_v3 }
 0x305   : > { %3927 = vmatpush3.bf16.msra.mxu1 %v4344_v1  ;;  %3938 = vmatprep.mubr.bf16.mxu1 %v2456_v43  ;;  %v4358_v43 = vld [vmem:[#allocation11 + $0x1c0] sm:$0xff]  }
 0x306   : > { %3928 = vmatprep.subr.bf16.mxu1 %v4345_v44 }
 0x309   : > { %3929 = vmatpush3.bf16.msra.mxu1 %v4345_v44  ;;  %v3054_v44 = vld [vmem:[%s4791_s20 + $0x28] sm:$0xff] }
 0x30a   : > { %3930 = vmatprep.subr.bf16.mxu1 %v4346_v62 }
 0x30d   : > { %3931 = vmatpush3.bf16.msra.mxu1 %v4346_v62 }
 0x30e   : > { %3932 = vmatprep.subr.bf16.mxu1 %v4347_v30 }
 0x311   : > { %3933 = vmatpush3.bf16.msra.mxu1 %v4347_v30 }
 0x312   : > { %3934 = vmatprep.subr.bf16.mxu1 %v4348_v37 }
 0x315   : > { %3935 = vmatpush3.bf16.msra.mxu1 %v4348_v37 }
 0x316   : > { %3936 = vmatprep.subr.bf16.mxu1 %v4349_v2 }
 0x319   : > { %3937 = vmatpush3.bf16.msra.mxu1 %v4349_v2 }
 0x31a   : > { %3946 = vmatprep.subr.bf16.mxu1 %v4350_v8 }
 0x31c   : > { %3939 = vmatmul.mubr.bf16.vlgmr.msra.gmra.mrb[0].mxu1 %v2457_v24  ;;  %v4356_v24 = vld [vmem:[#allocation11 + $0x1b0] sm:$0xff]  }
 0x31d   : > { %3942 = vmatprep.mubr.bf16.mxu1 %v2458_v40  ;;  %3947 = vmatpush3.bf16.msra.mxu1 %v4350_v8  ;;  %v2610_v40 = vpack.c.bf16 %v5019_v18, %v5148_v41  ;;  %v4366_v18 = vld [vmem:[#allocation11 + $0x200] sm:$0xff]   ;;  %v3055_v41 = vld [vmem:[%s4791_s20 + $0x30] sm:$0xff] }
 0x31e   : > { %3948 = vmatprep.subr.bf16.mxu1 %v4351_v14 }
 0x321   : > { %3949 = vmatpush3.bf16.msra.mxu1 %v4351_v14 }
 0x322   : > { %3950 = vmatprep.subr.bf16.mxu1 %v4352_v19 }
 0x324   : > { %3943 = vmatmul.mubr.bf16.gmra.mrb[4].mxu1 %v2459_v23 }
 0x325   : > { %3951 = vmatpush3.bf16.msra.mxu1 %v4352_v19  ;;  %3962 = vmatprep.mubr.bf16.mxu1 %v5106_v51  ;;  %v4361_v51 = vld [vmem:[#allocation11 + $0x1d8] sm:$0xff]  }
 0x326   : > { %3952 = vmatprep.subr.bf16.mxu1 %v4353_v27 }
 0x329   : > { %3953 = vmatpush3.bf16.msra.mxu1 %v4353_v27 }
 0x32a   : > { %3954 = vmatprep.subr.bf16.mxu1 %v4354_v7 }
 0x32d   : > { %3955 = vmatpush3.bf16.msra.mxu1 %v4354_v7 }
 0x32e   : > { %3956 = vmatprep.subr.bf16.mxu1 %v4355_v15 }
 0x331   : > { %3957 = vmatpush3.bf16.msra.mxu1 %v4355_v15 }
 0x332   : > { %3958 = vmatprep.subr.bf16.mxu1 %v4356_v24 }
 0x335   : > { %3959 = vmatpush3.bf16.msra.mxu1 %v4356_v24 }
 0x336   : > { %3960 = vmatprep.subr.bf16.mxu1 %v4357_v34 }
 0x339   : > { %3961 = vmatpush3.bf16.msra.mxu1 %v4357_v34 }
 0x33a   : > { %3970 = vmatprep.subr.bf16.mxu1 %v4358_v43 }
 0x33c   : > { %3963 = vmatmul.mubr.bf16.vlgmr.msra.gmra.mrb[0].mxu1 %v5112_v53  ;;  %v4363_v53 = vld [vmem:[#allocation11 + $0x1e8] sm:$0xff]  }
 0x33d   : > { %3966 = vmatprep.mubr.bf16.mxu1 %v5122_v59  ;;  %3971 = vmatpush3.bf16.msra.mxu1 %v4358_v43  ;;  %v4367_v59 = vld [vmem:[#allocation11 + $0x208] sm:$0xff]  }
 0x33e   : > { %3972 = vmatprep.subr.bf16.mxu1 %v4359_v36 }
 0x341   : > { %3973 = vmatpush3.bf16.msra.mxu1 %v4359_v36 }
 0x342   : > { %3974 = vmatprep.subr.bf16.mxu1 %v4360_v58 }
 0x344   : > { %3967 = vmatmul.mubr.bf16.gmra.mrb[4].mxu1 %v2610_v40 }
 0x345   : > { %3975 = vmatpush3.bf16.msra.mxu1 %v4360_v58  ;;  %3986 = vmatprep.mubr.bf16.mxu1 %v5048_v46  ;;  %v4368_v46 = vld [vmem:[#allocation11 + $0x210] sm:$0xff]  }
 0x346   : > { %3976 = vmatprep.subr.bf16.mxu1 %v4361_v51 }
 0x349   : > { %3977 = vmatpush3.bf16.msra.mxu1 %v4361_v51 }
 0x34a   : > { %3978 = vmatprep.subr.bf16.mxu1 %v4362_v55 }
 0x34d   : > { %3979 = vmatpush3.bf16.msra.mxu1 %v4362_v55 }
 0x34e   : > { %3980 = vmatprep.subr.bf16.mxu1 %v4363_v53 }
 0x351   : > { %3981 = vmatpush3.bf16.msra.mxu1 %v4363_v53 }
 0x352   : > { %3982 = vmatprep.subr.bf16.mxu1 %v4364_v56 }
 0x355   : > { %3983 = vmatpush3.bf16.msra.mxu1 %v4364_v56 }
 0x356   : > { %3984 = vmatprep.subr.bf16.mxu1 %v4365_v57 }
 0x359   : > { %3985 = vmatpush3.bf16.msra.mxu1 %v4365_v57 }
 0x35a   : > { %3994 = vmatprep.subr.bf16.mxu1 %v4366_v18 }
 0x35c   : > { %3987 = vmatmul.mubr.bf16.vlgmr.msra.gmra.mrb[0].mxu1 %v5065_v20  ;;  %v4371_v20 = vld [vmem:[#allocation11 + $0x228] sm:$0xff]  }
 0x35d   : > { %3990 = vmatprep.mubr.bf16.mxu1 %v5084_v42  ;;  %3995 = vmatpush3.bf16.msra.mxu1 %v4366_v18  ;;  %v4372_v42 = vld [vmem:[#allocation11 + $0x230] sm:$0xff]  }
 0x35e   : > { %3996 = vmatprep.subr.bf16.mxu1 %v4367_v59 }
 0x361   : > { %3997 = vmatpush3.bf16.msra.mxu1 %v4367_v59 }
 0x362   : > { %3998 = vmatprep.subr.bf16.mxu1 %v4368_v46 }
 0x364   : > { %3991 = vmatmul.mubr.bf16.gmra.mrb[4].mxu1 %v2760_v63 }
 0x365   : > { %3999 = vmatpush3.bf16.msra.mxu1 %v4368_v46  ;;  %4010 = vmatprep.mubr.bf16.mxu1 %v5128_v33 }
 0x366   : > { %4000 = vmatprep.subr.bf16.mxu1 %v4369_v0 }
 0x369   : > { %4001 = vmatpush3.bf16.msra.mxu1 %v4369_v0 }
 0x36a   : > { %4002 = vmatprep.subr.bf16.mxu1 %v4370_v29 }
 0x36d   : > { %4003 = vmatpush3.bf16.msra.mxu1 %v4370_v29 }
 0x36e   : > { %4004 = vmatprep.subr.bf16.mxu1 %v4371_v20 }
 0x371   : > { %4005 = vmatpush3.bf16.msra.mxu1 %v4371_v20 }
 0x372   : > { %4006 = vmatprep.subr.bf16.mxu1 %v4372_v42 }
 0x375   : > { %4007 = vmatpush3.bf16.msra.mxu1 %v4372_v42 }
 0x376   : > { %4008 = vmatprep.subr.bf16.mxu1 %v4373_v6 }
 0x379   : > { %4009 = vmatpush3.bf16.msra.mxu1 %v4373_v6 }
 0x37c   : > { %4011 = vmatmul.mubr.bf16.vlgmr.msra.gmra.mrb[0].mxu1 %v5132_v39 }
 0x37d   : > { %4014 = vmatprep.mubr.bf16.mxu1 %v5140_v9 }
 0x384   : > { %4015 = vmatmul.mubr.bf16.gmra.mrb[4].mxu1 %v2910_v11 }
 0x44f   : > { %v4012_v33 = vpop.f32.mrb[0].mxu1 }
 0x450   : > { %v3060_v60 = vmul.f32 %v4012_v33, %v3057_v31  ;;  %v3010_v3 = vpop.f32.mrb[1].mxu1 }
 0x451   : > { %v3058_v13 = vmul.f32 %v3057_v31, %v3010_v3  ;;  %v4013_v4 = vpop.f32.mrb[2].mxu1 }
 0x452   : > { %v3068_v39 = vadd.f32 %v3060_v60, %v3051_v38  ;;  %v3061_v16 = vmul.f32 %v4013_v4, %v3057_v31  ;;  %v3013_v9 = vpop.f32.mrb[3].mxu1 }
 0x453   : > { %v3066_v25 = vadd.f32 %v3058_v13, %v3049_v12  ;;  %v3059_v21 = vmul.f32 %v3057_v31, %v3013_v9 }
 0x454   : > { %3076 = vst [vmem:[%s256_s9 + $0x10] sm:$0xff] %v3068_v39  ;;  %v3069_v32 = vadd.f32 %v3061_v16, %v3052_v10 }
 0x455   : > { %3074 = vst [vmem:[%s256_s9] sm:$0xff] %v3066_v25  ;;  %v3067_v49 = vadd.f32 %v3059_v21, %v3050_v17 }
 0x456   : > { %3077 = vst [vmem:[%s256_s9 + $0x18] sm:$0xff] %v3069_v32 }
 0x457   : > { %3075 = vst [vmem:[%s256_s9 + $0x8] sm:$0xff] %v3067_v49  ;;  %v4016_v26 = vpop.f32.mrb[4].mxu1 }
 0x458   : > { %v3064_v45 = vmul.f32 %v4016_v26, %v3057_v31  ;;  %v3026_v47 = vpop.f32.mrb[5].mxu1 }
 0x459   : > { %v3062_v28 = vmul.f32 %v3057_v31, %v3026_v47  ;;  %v4017_v35 = vpop.f32.mrb[6].mxu1 }
 0x45a   : > { %v3072_v52 = vadd.f32 %v3064_v45, %v3055_v41  ;;  %v3065_v54 = vmul.f32 %v4017_v35, %v3057_v31  ;;  %v3029_v1 = vpop.f32.mrb[7].mxu1 }
 0x45b   : > { %v3070_v62 = vadd.f32 %v3062_v28, %v3053_v50  ;;  %v3063_v30 = vmul.f32 %v3057_v31, %v3029_v1 }
 0x45c   : > { %3080 = vst [vmem:[%s256_s9 + $0x30] sm:$0xff] %v3072_v52  ;;  %v3073_v37 = vadd.f32 %v3065_v54, %v3056_v48 }
 0x45d   : > { %3078 = vst [vmem:[%s256_s9 + $0x20] sm:$0xff] %v3070_v62  ;;  %v3071_v2 = vadd.f32 %v3063_v30, %v3054_v44 }
 0x45e   : > { %3081 = vst [vmem:[%s256_s9 + $0x38] sm:$0xff] %v3073_v37 }
 0x45f   : > { %3079 = vst [vmem:[%s256_s9 + $0x28] sm:$0xff] %v3071_v2 }
 0x460   : > { %4487 = shalt.err (!%p4484_p9)
}
 0x461   : > { %s4488_s20 = scalar_lea.hbm %s5204_s13, 1024  ;;  %s4492_s27 = scalar_lea.hbm %s5254_s4, 2048 }
 0x462   : > { %p4489_p12 = scmp.ne.s32.totalorder %s5204_s13, %s4488_s20  ;;  %p4493_p4 = scmp.lt.u32.totalorder %s5204_s13, %s5254_s4 }
 0x463   : > { %p4494_p8 = scmp.lt.u32.totalorder %s4492_s27, %s4488_s20  ;;  %p4496_p11 = scmp.lt.u32.totalorder %s4488_s20, %s5204_s13 }
 0x464   : > { %p4490_p3 = pnand %p4489_p12, %p5271_p0 }
 0x465   : > { %p4495_p6 = por %p4494_p8, %p4493_p4 }
 0x466   : > { %p4491_p7 = pneg %p4490_p3 }
 0x467   : > { %p4497_p1 = por %p4496_p11, %p4495_p6 }
 0x469   : > { %p4498_p2 = pnand %p4497_p1, %p4491_p7 }
 0x46b   : > { %4501 = shalt.err (!%p4498_p2)
}
 0x46c   : > { %s4560_s9 = smov 128   ;;  %s4561_s14 = smov 8  }
 0x46d   : > { %4160 = dma.vmem_to_hbm [thread:$0]  (%p5271_p0), %s5206_s11, 1024, %s5204_s13, %s3083_s19, %s4560_s9, %s4560_s9, %s4561_s14  }
 0x46e PF: > { %s3111_s28 = sand.u32 1, %s4536_s15   ;;  %p5272_p10 = scmp.ne.s32.totalorder %s5259_s22, 0 }
 0x46f   : > { %p5273_p5 = scmp.ge.s32.totalorder %s4548_s18, 2  ;;  %s3112_s12 = scalar_lea.sflag [#allocation6], %s3111_s28 }
 0x471   : > { %p4177_p13 = pnand %p5273_p5, %p5272_p10 }
 0x473   : > { %4531 = dma.done.wait (!%p4177_p13), %s3112_s12, 1024  }
 0x474   : > { %4533 = vsyncadd (!%p4177_p13), %s3112_s12, 4294966272  ;;  %p19_p9 = scmp.ge.s32.totalorder %s4719_s26, 4   ;;  %s5274_s15 = smov %s4540_s16 }
 0x475   : > { %s5275_s16 = smov %s4544_s17  ;;  %s5276_s17 = smov %s4729_s25 }
 0x476   : > { %s5277_s18 = smov %s4719_s26  ;;  %21 = sbr.rel (!%p19_p9) target bundleno = 7 (0x7), region = 114 }
 0x47d   :  { %3117 = vsyncpa [#allocation5], 1 }
 0x47e   :  { %3119 = vsyncpa [#allocation5 + $0x1], 1 }
 0x47f   :  { %3120 = vsyncpa [#allocation10], 1 }
 0x480   :  { %3121 = vsyncpa [#allocation6], 1 }
 0x481   :  { %3123 = vsyncpa [#allocation6 + $0x1], 1 }
 0x482   :  { %3124 = vsyncpa [#allocation7], 1 }
 0x483   :  { %3126 = vsyncpa [#allocation7 + $0x1], 1 }

</bundles_post_ra>
